<compile_context>
chip_gen: v5e
topology: v5e:2x2
jax: 0.10.0
libtpu: 0.0.40
codegen_flags: <defaults>
</compile_context>

<pallas_src>
import functools

import jax
import jax.numpy as jnp
from jax import lax
from jax.experimental import pallas as pl
from jax.experimental.pallas import tpu as pltpu

EPS = 1e-5
LANE = 128


def _round_up(x, m):
    return (x + m - 1) // m * m


def _vmem_limit(block_bytes):
    try:
        phys = pltpu.get_tpu_info().vmem_capacity_bytes
    except Exception:
        phys = 64 << 20                      # conservative: v7x per-TC VMEM
    cap = (phys * 3) // 4                    # ~48 MiB on v7x, ~96 MiB on v5e/v6e
    return int(min(max(2 * block_bytes + (8 << 20), 16 << 20), cap))


def _compiler_params(block_bytes):
    return pltpu.CompilerParams(
        dimension_semantics=("parallel",),   # shard image grid across TCs (v7x)
        vmem_limit_bytes=_vmem_limit(block_bytes))


def _pad_rows(a, rows):
    # Pads a (m, C) value with zero rows up to `rows` (no-op when m == rows).
    if a.shape[0] == rows:
        return a
    return jnp.concatenate(
        [a, jnp.zeros((rows - a.shape[0],) + a.shape[1:], a.dtype)], axis=0)


# ------------------------------------------------------------------------- #
# XLA-side prep: phase decomposition so every 3x3 tap is a contiguous slice.
# ------------------------------------------------------------------------- #

def _make_phases(xb, stride, Ho, Wo):
    """xb: channel-padded NHWC bf16.  Returns stride**2 phase planes shaped
    (N*PH, PW, C); tap (kh,kw) == phase[(kh%s)*s+(kw%s)][kh//s:..., kw//s:...]."""
    N, H, W, C = xb.shape
    PH = Ho - 1 + (3 + stride - 1) // stride
    PW = Wo - 1 + (3 + stride - 1) // stride
    xp = jnp.pad(xb, ((0, 0), (1, stride * PH - H - 1),
                      (1, stride * PW - W - 1), (0, 0)))
    phases = []
    for p in range(stride):
        for q in range(stride):
            ph = xp[:, p::stride, q::stride, :]          # (N, PH, PW, C)
            phases.append(ph.reshape(N * PH, PW, C))
    return phases, PH, PW


# ------------------------------------------------------------------------- #
# Pass 1: conv1 (in-kernel im2col) + fused 1x1 shortcut + per-image stats.
# ------------------------------------------------------------------------- #

def _conv1_kernel(stride, has_sc, Ho, Wo, Mp, *refs):
    ns = stride * stride
    phase_refs = refs[:ns]
    w_ref = refs[ns]
    idx = ns + 1
    wsc_ref = refs[idx] if has_sc else None
    idx += 1 if has_sc else 0
    y_ref = refs[idx]
    idx += 1
    res_ref = refs[idx] if has_sc else None
    idx += 1 if has_sc else 0
    st_ref = refs[idx]

    M = Ho * Wo
    Cp = y_ref.shape[-1]
    acc = jnp.zeros((M, Cp), jnp.float32)
    ctr = None
    for kh in range(3):
        for kw in range(3):
            ph = phase_refs[(kh % stride) * stride + (kw % stride)]
            r0, c0 = kh // stride, kw // stride
            tap = ph[r0:r0 + Ho, c0:c0 + Wo, :].reshape(M, -1)   # bf16
            if kh == 1 and kw == 1:
                ctr = tap                                        # shortcut operand
            acc = acc + jnp.dot(tap, w_ref[kh * 3 + kw],
                                preferred_element_type=jnp.float32)
    y_ref[...] = _pad_rows(acc, Mp).astype(y_ref.dtype)

    # Per-image centred stats (mean, M2) -> Chan merge in XLA glue.
    mean = jnp.sum(acc, axis=0, keepdims=True) * (1.0 / M)
    m2 = jnp.sum((acc - mean) ** 2, axis=0, keepdims=True)
    rows = [mean, m2]
    if has_sc:
        racc = jnp.dot(ctr, wsc_ref[...], preferred_element_type=jnp.float32)
        res_ref[...] = _pad_rows(racc, Mp).astype(res_ref.dtype)
        rmean = jnp.sum(racc, axis=0, keepdims=True) * (1.0 / M)
        rm2 = jnp.sum((racc - rmean) ** 2, axis=0, keepdims=True)
        rows += [rmean, rm2]
    rows.append(jnp.zeros((8 - len(rows), Cp), jnp.float32))
    st_ref[...] = jnp.concatenate(rows, axis=0)[None]            # (1, 8, Cp)


def conv_bn_stage1(phases, w_taps, wsc, N, PH, PW, Ho, Wo, Mp, Cpad):
    stride = int(round(len(phases) ** 0.5))
    has_sc = wsc is not None
    Cin_p = phases[0].shape[-1]

    in_specs = [pl.BlockSpec((PH, PW, Cin_p), lambda n: (n, 0, 0))
                for _ in phases]
    in_specs.append(pl.BlockSpec((9, Cin_p, Cpad), lambda n: (0, 0, 0)))
    args = list(phases) + [w_taps]
    if has_sc:
        in_specs.append(pl.BlockSpec((Cin_p, Cpad), lambda n: (0, 0)))
        args.append(wsc)

    out_shape = [jax.ShapeDtypeStruct((N * Mp, Cpad), jnp.bfloat16)]
    out_specs = [pl.BlockSpec((Mp, Cpad), lambda n: (n, 0))]
    if has_sc:
        out_shape.append(jax.ShapeDtypeStruct((N * Mp, Cpad), jnp.bfloat16))
        out_specs.append(pl.BlockSpec((Mp, Cpad), lambda n: (n, 0)))
    out_shape.append(jax.ShapeDtypeStruct((N, 8, Cpad), jnp.float32))
    out_specs.append(pl.BlockSpec((1, 8, Cpad), lambda n: (n, 0, 0)))

    block_bytes = (len(phases) * PH * PW * Cin_p * 2 + 9 * Cin_p * Cpad * 2
                   + (Cin_p * Cpad * 2 if has_sc else 0)
                   + (2 if has_sc else 1) * Mp * Cpad * 2 + 8 * Cpad * 4)

    kernel = functools.partial(_conv1_kernel, stride, has_sc, Ho, Wo, Mp)
    outs = pl.pallas_call(
        kernel,
        out_shape=tuple(out_shape),
        grid_spec=pltpu.PrefetchScalarGridSpec(
            num_scalar_prefetch=0, grid=(N,),
            in_specs=in_specs, out_specs=out_specs),
        compiler_params=_compiler_params(block_bytes),
    )(*args)
    if has_sc:
        y, res, st = outs
    else:
        (y, st), res = outs, None
    return y, res, st


# ------------------------------------------------------------------------- #
# Pass 2: BN1+ReLU prologue + conv2 (in-kernel im2col + in-VMEM zero pad).
# ------------------------------------------------------------------------- #

def _conv2_kernel(Ho, Wo, Mp, y1_ref, s1_ref, t1_ref, w_ref, y2_ref, st_ref):
    M = Ho * Wo
    Cp = y1_ref.shape[-1]
    act = jnp.maximum(
        y1_ref[...].astype(jnp.float32) * s1_ref[...] + t1_ref[...], 0.0)
    act = act[:M].astype(jnp.bfloat16).reshape(Ho, Wo, Cp)
    # Rebuild the conv's spatial zero padding in VMEM (never touches HBM).
    zr = jnp.zeros((1, Wo, Cp), jnp.bfloat16)
    act = jnp.concatenate([zr, act, zr], axis=0)                 # (Ho+2, Wo, Cp)
    zc = jnp.zeros((Ho + 2, 1, Cp), jnp.bfloat16)
    act = jnp.concatenate([zc, act, zc], axis=1)                 # (Ho+2, Wo+2, Cp)

    acc = jnp.zeros((M, Cp), jnp.float32)
    for kh in range(3):
        for kw in range(3):
            tap = act[kh:kh + Ho, kw:kw + Wo, :].reshape(M, Cp)
            acc = acc + jnp.dot(tap, w_ref[kh * 3 + kw],
                                preferred_element_type=jnp.float32)
    y2_ref[...] = _pad_rows(acc, Mp).astype(y2_ref.dtype)
    mean = jnp.sum(acc, axis=0, keepdims=True) * (1.0 / M)
    m2 = jnp.sum((acc - mean) ** 2, axis=0, keepdims=True)
    st_ref[...] = jnp.concatenate(
        [mean, m2, jnp.zeros((6, Cp), jnp.float32)], axis=0)[None]


def conv_bn_stage2(y1, s1, t1, w2_taps, N, Ho, Wo, Mp, Cpad):
    in_specs = [pl.BlockSpec((Mp, Cpad), lambda n: (n, 0)),
                pl.BlockSpec((1, Cpad), lambda n: (0, 0)),
                pl.BlockSpec((1, Cpad), lambda n: (0, 0)),
                pl.BlockSpec((9, Cpad, Cpad), lambda n: (0, 0, 0))]
    out_shape = (jax.ShapeDtypeStruct((N * Mp, Cpad), jnp.bfloat16),
                 jax.ShapeDtypeStruct((N, 8, Cpad), jnp.float32))
    out_specs = [pl.BlockSpec((Mp, Cpad), lambda n: (n, 0)),
                 pl.BlockSpec((1, 8, Cpad), lambda n: (n, 0, 0))]
    block_bytes = (2 * Mp * Cpad * 2 + 9 * Cpad * Cpad * 2
                   + (Ho + 2) * (Wo + 2) * Cpad * 2
                   + 8 * Cpad * 4 + 2 * Cpad * 4)
    kernel = functools.partial(_conv2_kernel, Ho, Wo, Mp)
    return pl.pallas_call(
        kernel,
        out_shape=out_shape,
        grid_spec=pltpu.PrefetchScalarGridSpec(
            num_scalar_prefetch=0, grid=(N,),
            in_specs=in_specs, out_specs=out_specs),
        compiler_params=_compiler_params(block_bytes),
    )(y1, s1, t1, w2_taps)


# ------------------------------------------------------------------------- #
# Glue: Chan-merge of per-image stats, fold BN into (scale, shift).
# ------------------------------------------------------------------------- #

def bn_fold(mean_t, m2_t, gamma_p, beta_p, m_tile, m_total):
    mean = jnp.mean(mean_t, axis=0)                              # (Cpad,)
    var = (jnp.sum(m2_t, axis=0)
           + m_tile * jnp.sum((mean_t - mean[None, :]) ** 2, axis=0)) / m_total
    var = jnp.maximum(var, 0.0)
    scale = gamma_p * lax.rsqrt(var + EPS)
    shift = beta_p - mean * scale
    return (scale.reshape(1, -1).astype(jnp.float32),
            shift.reshape(1, -1).astype(jnp.float32))


# ------------------------------------------------------------------------- #
# Pass 3: BN2 + residual (already BN-folded) + ReLU, lane-dense M tiles.
# ------------------------------------------------------------------------- #

def _finalize_kernel(y2_ref, res_ref, s2_ref, t2_ref, rs_ref, rt_ref, o_ref):
    out = y2_ref[...].astype(jnp.float32) * s2_ref[...] + t2_ref[...]
    out = out + res_ref[...].astype(jnp.float32) * rs_ref[...] + rt_ref[...]
    o_ref[...] = jnp.maximum(out, 0.0).astype(o_ref.dtype)


def _rows_per_step(N, Mp, Cpad, target_bytes=8 << 20):
    g = 1
    for cand in range(N, 0, -1):
        if N % cand == 0 and cand * Mp * Cpad * 8 <= target_bytes:
            g = cand
            break
    return g * Mp


def bn_residual_relu(y2, res, s2, t2, rs, rt, N, Mp, Cpad):
    rows = _rows_per_step(N, Mp, Cpad)
    nt = (N * Mp) // rows
    row_spec = pl.BlockSpec((rows, Cpad), lambda i: (i, 0))
    vec_spec = pl.BlockSpec((1, Cpad), lambda i: (0, 0))
    block_bytes = rows * Cpad * (2 + 2 + 4) + 4 * Cpad * 4
    return pl.pallas_call(
        _finalize_kernel,
        out_shape=jax.ShapeDtypeStruct((N * Mp, Cpad), jnp.float32),
        grid_spec=pltpu.PrefetchScalarGridSpec(
            num_scalar_prefetch=0, grid=(nt,),
            in_specs=[row_spec, row_spec, vec_spec, vec_spec, vec_spec,
                      vec_spec],
            out_specs=row_spec),
        compiler_params=_compiler_params(block_bytes),
    )(y2, res, s2, t2, rs, rt)


# ------------------------------------------------------------------------- #
# Full BasicBlock forward.
# ------------------------------------------------------------------------- #

def basic_block_forward(x_nchw, params, stride):
    x = jnp.transpose(x_nchw, (0, 2, 3, 1)).astype(jnp.float32)      # NHWC
    N, H, W, Cin = x.shape
    Cout = params["w1"].shape[-1]
    Cpad = _round_up(Cout, LANE)
    Cin_p = _round_up(Cin, 8)

    Ho = (H - 1) // stride + 1
    Wo = (W - 1) // stride + 1
    M = Ho * Wo
    Mp = _round_up(M, 8)

    xb = jnp.pad(x, ((0, 0), (0, 0), (0, 0),
                     (0, Cin_p - Cin))).astype(jnp.bfloat16)
    phases, PH, PW = _make_phases(xb, stride, Ho, Wo)

    gpad = lambda k: jnp.pad(params[k], (0, Cpad - Cout)).astype(jnp.float32)

    w1 = jnp.pad(params["w1"].reshape(9, Cin, Cout),
                 ((0, 0), (0, Cin_p - Cin),
                  (0, Cpad - Cout))).astype(jnp.bfloat16)

    has_proj = (stride != 1) or (Cin != Cout)
    wsc = None
    if has_proj:
        wsc = jnp.pad(params["wsc"].reshape(Cin, Cout),
                      ((0, Cin_p - Cin), (0, Cpad - Cout))).astype(jnp.bfloat16)

    # pass 1: conv1 (+ fused projection shortcut) + per-image stats
    y1, res, st1 = conv_bn_stage1(phases, w1, wsc, N, PH, PW, Ho, Wo, Mp, Cpad)
    s1, t1 = bn_fold(st1[:, 0], st1[:, 1], gpad("g1"), gpad("b1"), M, N * M)

    if has_proj:
        rs, rt = bn_fold(st1[:, 2], st1[:, 3], gpad("gsc"), gpad("bsc"),
                         M, N * M)
    else:
        # identity shortcut: residual is x itself (channel padded), scale 1.
        res = jnp.pad(x.reshape(N, M, Cin),
                      ((0, 0), (0, Mp - M), (0, Cpad - Cin))
                      ).reshape(N * Mp, Cpad).astype(jnp.bfloat16)
        rs = jnp.ones((1, Cpad), jnp.float32)
        rt = jnp.zeros((1, Cpad), jnp.float32)

    # pass 2: BN1+ReLU prologue fused into conv2 + per-image stats
    w2 = jnp.pad(params["w2"].reshape(9, Cout, Cout),
                 ((0, 0), (0, Cpad - Cout),
                  (0, Cpad - Cout))).astype(jnp.bfloat16)
    y2, st2 = conv_bn_stage2(y1, s1, t1, w2, N, Ho, Wo, Mp, Cpad)
    s2, t2 = bn_fold(st2[:, 0], st2[:, 1], gpad("g2"), gpad("b2"), M, N * M)

    # pass 3: BN2 + residual + ReLU
    out = bn_residual_relu(y2, res, s2, t2, rs, rt, N, Mp, Cpad)

    out = out.reshape(N, Mp, Cpad)[:, :M, :Cout].reshape(N, Ho, Wo, Cout)
    return jnp.transpose(out, (0, 3, 1, 2))                         # NCHW


# ------------------------------------------------------------------------- #
# Pure-JAX reference (training-mode BatchNorm, matches the PyTorch module).
# ------------------------------------------------------------------------- #

def _ref_conv(x, w, stride, pad):
    return lax.conv_general_dilated(
        x, w, window_strides=(stride, stride),
        padding=[(pad, pad), (pad, pad)],
        dimension_numbers=("NHWC", "HWIO", "NHWC"))


def _ref_bn(y, g, b):
    mu = jnp.mean(y, axis=(0, 1, 2), keepdims=True)
    var = jnp.mean((y - mu) ** 2, axis=(0, 1, 2), keepdims=True)
    return g * (y - mu) / jnp.sqrt(var + EPS) + b


def reference_forward(x_nchw, params, stride):
    x = jnp.transpose(x_nchw, (0, 2, 3, 1)).astype(jnp.float32)
    Cin, Cout = x.shape[-1], params["w1"].shape[-1]
    out = jax.nn.relu(_ref_bn(_ref_conv(x, params["w1"], stride, 1),
                              params["g1"], params["b1"]))
    out = _ref_bn(_ref_conv(out, params["w2"], 1, 1),
                  params["g2"], params["b2"])
    if stride != 1 or Cin != Cout:
        sc = _ref_bn(_ref_conv(x, params["wsc"], stride, 0),
                     params["gsc"], params["bsc"])
    else:
        sc = x
    out = jax.nn.relu(out + sc)
    return jnp.transpose(out, (0, 3, 1, 2))


# ---------------------------------- main ---------------------------------- #

def _make_params(key, in_ch, out_ch):
    ks = jax.random.split(key, 9)
    return {
        "w1": jax.random.normal(ks[0], (3, 3, in_ch, out_ch), jnp.float32)
              * (1.0 / (9 * in_ch) ** 0.5),
        "w2": jax.random.normal(ks[1], (3, 3, out_ch, out_ch), jnp.float32)
              * (1.0 / (9 * out_ch) ** 0.5),
        "wsc": jax.random.normal(ks[2], (1, 1, in_ch, out_ch), jnp.float32)
               * (1.0 / in_ch ** 0.5),
        "g1": 1.0 + 0.1 * jax.random.normal(ks[3], (out_ch,), jnp.float32),
        "b1": 0.1 * jax.random.normal(ks[4], (out_ch,), jnp.float32),
        "g2": 1.0 + 0.1 * jax.random.normal(ks[5], (out_ch,), jnp.float32),
        "b2": 0.1 * jax.random.normal(ks[6], (out_ch,), jnp.float32),
        "gsc": 1.0 + 0.1 * jax.random.normal(ks[7], (out_ch,), jnp.float32),
        "bsc": 0.1 * jax.random.normal(ks[8], (out_ch,), jnp.float32),
    }


def _run_case(key, in_ch, out_ch, stride, N, H, W):
    kp, kx = jax.random.split(key)
    params = _make_params(kp, in_ch, out_ch)
    x = jax.random.normal(kx, (N, in_ch, H, W), jnp.float32)          # NCHW

    fwd = jax.jit(functools.partial(basic_block_forward, stride=stride))
    out = jax.block_until_ready(fwd(x, params))

    ref = reference_forward(x, params, stride)
    Ho = (H - 1) // stride + 1
    Wo = (W - 1) // stride + 1
    assert out.shape == (N, out_ch, Ho, Wo), out.shape
    # Tolerance reflects bf16 MXU operands and bf16 intermediates (y1/res/y2);
    # all accumulation and BN statistics/scale math stays in f32.
    assert jnp.allclose(out, ref, atol=6e-2, rtol=5e-2), float(
        jnp.max(jnp.abs(out - ref)))


if __name__ == "__main__":
    key = jax.random.PRNGKey(0)
    k1, k2 = jax.random.split(key)

    # Downsampling block with the 1x1 projection shortcut (matches the spec's
    # typical instantiation): in=4, out=8, stride=2, x = (2, 4, 16, 16).
    _run_case(k1, in_ch=4, out_ch=8, stride=2, N=2, H=16, W=16)

    # Identity-shortcut block (stride 1, in == out) to exercise the other path.
    _run_case(k2, in_ch=8, out_ch=8, stride=1, N=2, H=8, W=8)

    print("KERNEL_OK")
</pallas_src>

<mosaic_0001>
module attributes {stable_mosaic.version = 11 : i64} {
  func.func @_conv1_kernel(%arg0: i32, %arg1: memref<9x9x8xbf16, #tpu.memory_space<vmem>>, %arg2: memref<9x9x8xbf16, #tpu.memory_space<vmem>>, %arg3: memref<9x9x8xbf16, #tpu.memory_space<vmem>>, %arg4: memref<9x9x8xbf16, #tpu.memory_space<vmem>>, %arg5: memref<9x8x128xbf16, #tpu.memory_space<vmem>>, %arg6: memref<8x128xbf16, #tpu.memory_space<vmem>>, %arg7: memref<64x128xbf16, #tpu.memory_space<vmem>>, %arg8: memref<64x128xbf16, #tpu.memory_space<vmem>>, %arg9: memref<1x8x128xf32, #tpu.memory_space<vmem>>) attributes {dimension_semantics = [#tpu.dimension_semantics<parallel>], iteration_bounds = array<i64: 2>, scalar_prefetch = 0 : i64, scratch_operands = 0 : i64, tpu.core_type = #tpu.core_type<tc>, window_params = [{transform_indices = @transform_0, window_bounds = array<i64: 9, 9, 8>}, {transform_indices = @transform_1, window_bounds = array<i64: 9, 9, 8>}, {transform_indices = @transform_2, window_bounds = array<i64: 9, 9, 8>}, {transform_indices = @transform_3, window_bounds = array<i64: 9, 9, 8>}, {pipeline_mode = #tpu.pipeline_mode<synchronous>, transform_indices = @transform_4, window_bounds = array<i64: 9, 8, 128>}, {pipeline_mode = #tpu.pipeline_mode<synchronous>, transform_indices = @transform_5, window_bounds = array<i64: 8, 128>}, {transform_indices = @transform_6, window_bounds = array<i64: 64, 128>}, {transform_indices = @transform_7, window_bounds = array<i64: 64, 128>}, {transform_indices = @transform_8, window_bounds = array<i64: 1, 8, 128>}]} {
    %cst = arith.constant 0.000000e+00 : f32
    %0 = vector.broadcast %cst : f32 to vector<64x128xf32>
    %c0 = arith.constant 0 : index
    %c0_0 = arith.constant 0 : index
    %c0_1 = arith.constant 0 : index
    %1 = vector.load %arg1[%c0, %c0_0, %c0_1] : memref<9x9x8xbf16, #tpu.memory_space<vmem>>, vector<8x8x8xbf16>
    %2 = vector.shape_cast %1 : vector<8x8x8xbf16> to vector<64x8xbf16>
    %c0_2 = arith.constant 0 : index
    %c0_3 = arith.constant 0 : index
    %c0_4 = arith.constant 0 : index
    %3 = vector.load %arg5[%c0_2, %c0_3, %c0_4] : memref<9x8x128xbf16, #tpu.memory_space<vmem>>, vector<1x8x128xbf16>
    %4 = vector.shape_cast %3 : vector<1x8x128xbf16> to vector<8x128xbf16>
    %cst_5 = arith.constant dense<0.000000e+00> : vector<64x128xf32>
    %5 = tpu.matmul %2, %4, %cst_5 {dimension_numbers = #tpu.dot_dimension_numbers<[1], [0], [0], [1], [0, 0, 1, 1], [], []>} : vector<64x8xbf16>, vector<8x128xbf16>, vector<64x128xf32> -> vector<64x128xf32>
    %6 = arith.addf %0, %5 : vector<64x128xf32>
    %c0_6 = arith.constant 0 : index
    %c0_7 = arith.constant 0 : index
    %c0_8 = arith.constant 0 : index
    %7 = vector.load %arg2[%c0_6, %c0_7, %c0_8] : memref<9x9x8xbf16, #tpu.memory_space<vmem>>, vector<8x8x8xbf16>
    %8 = vector.shape_cast %7 : vector<8x8x8xbf16> to vector<64x8xbf16>
    %c1 = arith.constant 1 : index
    %c0_9 = arith.constant 0 : index
    %c0_10 = arith.constant 0 : index
    %9 = vector.load %arg5[%c1, %c0_9, %c0_10] : memref<9x8x128xbf16, #tpu.memory_space<vmem>>, vector<1x8x128xbf16>
    %10 = vector.shape_cast %9 : vector<1x8x128xbf16> to vector<8x128xbf16>
    %cst_11 = arith.constant dense<0.000000e+00> : vector<64x128xf32>
    %11 = tpu.matmul %8, %10, %cst_11 {dimension_numbers = #tpu.dot_dimension_numbers<[1], [0], [0], [1], [0, 0, 1, 1], [], []>} : vector<64x8xbf16>, vector<8x128xbf16>, vector<64x128xf32> -> vector<64x128xf32>
    %12 = arith.addf %6, %11 : vector<64x128xf32>
    %c0_12 = arith.constant 0 : index
    %c1_13 = arith.constant 1 : index
    %c0_14 = arith.constant 0 : index
    %13 = vector.load %arg1[%c0_12, %c1_13, %c0_14] : memref<9x9x8xbf16, #tpu.memory_space<vmem>>, vector<8x8x8xbf16>
    %14 = vector.shape_cast %13 : vector<8x8x8xbf16> to vector<64x8xbf16>
    %c2 = arith.constant 2 : index
    %c0_15 = arith.constant 0 : index
    %c0_16 = arith.constant 0 : index
    %15 = vector.load %arg5[%c2, %c0_15, %c0_16] : memref<9x8x128xbf16, #tpu.memory_space<vmem>>, vector<1x8x128xbf16>
    %16 = vector.shape_cast %15 : vector<1x8x128xbf16> to vector<8x128xbf16>
    %cst_17 = arith.constant dense<0.000000e+00> : vector<64x128xf32>
    %17 = tpu.matmul %14, %16, %cst_17 {dimension_numbers = #tpu.dot_dimension_numbers<[1], [0], [0], [1], [0, 0, 1, 1], [], []>} : vector<64x8xbf16>, vector<8x128xbf16>, vector<64x128xf32> -> vector<64x128xf32>
    %18 = arith.addf %12, %17 : vector<64x128xf32>
    %c0_18 = arith.constant 0 : index
    %c0_19 = arith.constant 0 : index
    %c0_20 = arith.constant 0 : index
    %19 = vector.load %arg3[%c0_18, %c0_19, %c0_20] : memref<9x9x8xbf16, #tpu.memory_space<vmem>>, vector<8x8x8xbf16>
    %20 = vector.shape_cast %19 : vector<8x8x8xbf16> to vector<64x8xbf16>
    %c3 = arith.constant 3 : index
    %c0_21 = arith.constant 0 : index
    %c0_22 = arith.constant 0 : index
    %21 = vector.load %arg5[%c3, %c0_21, %c0_22] : memref<9x8x128xbf16, #tpu.memory_space<vmem>>, vector<1x8x128xbf16>
    %22 = vector.shape_cast %21 : vector<1x8x128xbf16> to vector<8x128xbf16>
    %cst_23 = arith.constant dense<0.000000e+00> : vector<64x128xf32>
    %23 = tpu.matmul %20, %22, %cst_23 {dimension_numbers = #tpu.dot_dimension_numbers<[1], [0], [0], [1], [0, 0, 1, 1], [], []>} : vector<64x8xbf16>, vector<8x128xbf16>, vector<64x128xf32> -> vector<64x128xf32>
    %24 = arith.addf %18, %23 : vector<64x128xf32>
    %c0_24 = arith.constant 0 : index
    %c0_25 = arith.constant 0 : index
    %c0_26 = arith.constant 0 : index
    %25 = vector.load %arg4[%c0_24, %c0_25, %c0_26] : memref<9x9x8xbf16, #tpu.memory_space<vmem>>, vector<8x8x8xbf16>
    %26 = vector.shape_cast %25 : vector<8x8x8xbf16> to vector<64x8xbf16>
    %c4 = arith.constant 4 : index
    %c0_27 = arith.constant 0 : index
    %c0_28 = arith.constant 0 : index
    %27 = vector.load %arg5[%c4, %c0_27, %c0_28] : memref<9x8x128xbf16, #tpu.memory_space<vmem>>, vector<1x8x128xbf16>
    %28 = vector.shape_cast %27 : vector<1x8x128xbf16> to vector<8x128xbf16>
    %cst_29 = arith.constant dense<0.000000e+00> : vector<64x128xf32>
    %29 = tpu.matmul %26, %28, %cst_29 {dimension_numbers = #tpu.dot_dimension_numbers<[1], [0], [0], [1], [0, 0, 1, 1], [], []>} : vector<64x8xbf16>, vector<8x128xbf16>, vector<64x128xf32> -> vector<64x128xf32>
    %30 = arith.addf %24, %29 : vector<64x128xf32>
    %c0_30 = arith.constant 0 : index
    %c1_31 = arith.constant 1 : index
    %c0_32 = arith.constant 0 : index
    %31 = vector.load %arg3[%c0_30, %c1_31, %c0_32] : memref<9x9x8xbf16, #tpu.memory_space<vmem>>, vector<8x8x8xbf16>
    %32 = vector.shape_cast %31 : vector<8x8x8xbf16> to vector<64x8xbf16>
    %c5 = arith.constant 5 : index
    %c0_33 = arith.constant 0 : index
    %c0_34 = arith.constant 0 : index
    %33 = vector.load %arg5[%c5, %c0_33, %c0_34] : memref<9x8x128xbf16, #tpu.memory_space<vmem>>, vector<1x8x128xbf16>
    %34 = vector.shape_cast %33 : vector<1x8x128xbf16> to vector<8x128xbf16>
    %cst_35 = arith.constant dense<0.000000e+00> : vector<64x128xf32>
    %35 = tpu.matmul %32, %34, %cst_35 {dimension_numbers = #tpu.dot_dimension_numbers<[1], [0], [0], [1], [0, 0, 1, 1], [], []>} : vector<64x8xbf16>, vector<8x128xbf16>, vector<64x128xf32> -> vector<64x128xf32>
    %36 = arith.addf %30, %35 : vector<64x128xf32>
    %c1_36 = arith.constant 1 : index
    %c0_37 = arith.constant 0 : index
    %c0_38 = arith.constant 0 : index
    %37 = vector.load %arg1[%c1_36, %c0_37, %c0_38] : memref<9x9x8xbf16, #tpu.memory_space<vmem>>, vector<8x8x8xbf16>
    %38 = vector.shape_cast %37 : vector<8x8x8xbf16> to vector<64x8xbf16>
    %c6 = arith.constant 6 : index
    %c0_39 = arith.constant 0 : index
    %c0_40 = arith.constant 0 : index
    %39 = vector.load %arg5[%c6, %c0_39, %c0_40] : memref<9x8x128xbf16, #tpu.memory_space<vmem>>, vector<1x8x128xbf16>
    %40 = vector.shape_cast %39 : vector<1x8x128xbf16> to vector<8x128xbf16>
    %cst_41 = arith.constant dense<0.000000e+00> : vector<64x128xf32>
    %41 = tpu.matmul %38, %40, %cst_41 {dimension_numbers = #tpu.dot_dimension_numbers<[1], [0], [0], [1], [0, 0, 1, 1], [], []>} : vector<64x8xbf16>, vector<8x128xbf16>, vector<64x128xf32> -> vector<64x128xf32>
    %42 = arith.addf %36, %41 : vector<64x128xf32>
    %c1_42 = arith.constant 1 : index
    %c0_43 = arith.constant 0 : index
    %c0_44 = arith.constant 0 : index
    %43 = vector.load %arg2[%c1_42, %c0_43, %c0_44] : memref<9x9x8xbf16, #tpu.memory_space<vmem>>, vector<8x8x8xbf16>
    %44 = vector.shape_cast %43 : vector<8x8x8xbf16> to vector<64x8xbf16>
    %c7 = arith.constant 7 : index
    %c0_45 = arith.constant 0 : index
    %c0_46 = arith.constant 0 : index
    %45 = vector.load %arg5[%c7, %c0_45, %c0_46] : memref<9x8x128xbf16, #tpu.memory_space<vmem>>, vector<1x8x128xbf16>
    %46 = vector.shape_cast %45 : vector<1x8x128xbf16> to vector<8x128xbf16>
    %cst_47 = arith.constant dense<0.000000e+00> : vector<64x128xf32>
    %47 = tpu.matmul %44, %46, %cst_47 {dimension_numbers = #tpu.dot_dimension_numbers<[1], [0], [0], [1], [0, 0, 1, 1], [], []>} : vector<64x8xbf16>, vector<8x128xbf16>, vector<64x128xf32> -> vector<64x128xf32>
    %48 = arith.addf %42, %47 : vector<64x128xf32>
    %c1_48 = arith.constant 1 : index
    %c1_49 = arith.constant 1 : index
    %c0_50 = arith.constant 0 : index
    %49 = vector.load %arg1[%c1_48, %c1_49, %c0_50] : memref<9x9x8xbf16, #tpu.memory_space<vmem>>, vector<8x8x8xbf16>
    %50 = vector.shape_cast %49 : vector<8x8x8xbf16> to vector<64x8xbf16>
    %c8 = arith.constant 8 : index
    %c0_51 = arith.constant 0 : index
    %c0_52 = arith.constant 0 : index
    %51 = vector.load %arg5[%c8, %c0_51, %c0_52] : memref<9x8x128xbf16, #tpu.memory_space<vmem>>, vector<1x8x128xbf16>
    %52 = vector.shape_cast %51 : vector<1x8x128xbf16> to vector<8x128xbf16>
    %cst_53 = arith.constant dense<0.000000e+00> : vector<64x128xf32>
    %53 = tpu.matmul %50, %52, %cst_53 {dimension_numbers = #tpu.dot_dimension_numbers<[1], [0], [0], [1], [0, 0, 1, 1], [], []>} : vector<64x8xbf16>, vector<8x128xbf16>, vector<64x128xf32> -> vector<64x128xf32>
    %54 = arith.addf %48, %53 : vector<64x128xf32>
    %55 = arith.truncf %54 : vector<64x128xf32> to vector<64x128xbf16>
    %c0_54 = arith.constant 0 : index
    %c0_55 = arith.constant 0 : index
    %56 = vector.load %arg7[%c0_54, %c0_55] : memref<64x128xbf16, #tpu.memory_space<vmem>>, vector<64x128xbf16>
    tpu.vector_store %arg7[%c0_54, %c0_55], %55 {strides = array<i32>} : memref<64x128xbf16, #tpu.memory_space<vmem>>, vector<64x128xbf16>,
    %cst_56 = arith.constant dense<0.000000e+00> : vector<128xf32>
    %57 = vector.multi_reduction <add>, %54, %cst_56 [0] : vector<64x128xf32> to vector<128xf32>
    %58 = vector.shape_cast %57 : vector<128xf32> to vector<1x128xf32>
    %cst_57 = arith.constant 1.562500e-02 : f32
    %59 = vector.broadcast %cst_57 : f32 to vector<1x128xf32>
    %60 = arith.mulf %58, %59 : vector<1x128xf32>
    %61 = vector.broadcast %60 : vector<1x128xf32> to vector<64x128xf32>
    %62 = arith.subf %54, %61 : vector<64x128xf32>
    %63 = arith.mulf %62, %62 : vector<64x128xf32>
    %cst_58 = arith.constant dense<0.000000e+00> : vector<128xf32>
    %64 = vector.multi_reduction <add>, %63, %cst_58 [0] : vector<64x128xf32> to vector<128xf32>
    %65 = vector.shape_cast %64 : vector<128xf32> to vector<1x128xf32>
    %c0_59 = arith.constant 0 : index
    %c0_60 = arith.constant 0 : index
    %66 = vector.load %arg6[%c0_59, %c0_60] : memref<8x128xbf16, #tpu.memory_space<vmem>>, vector<8x128xbf16>
    %cst_61 = arith.constant dense<0.000000e+00> : vector<64x128xf32>
    %67 = tpu.matmul %26, %66, %cst_61 {dimension_numbers = #tpu.dot_dimension_numbers<[1], [0], [0], [1], [0, 0, 1, 1], [], []>} : vector<64x8xbf16>, vector<8x128xbf16>, vector<64x128xf32> -> vector<64x128xf32>
    %68 = arith.truncf %67 : vector<64x128xf32> to vector<64x128xbf16>
    %c0_62 = arith.constant 0 : index
    %c0_63 = arith.constant 0 : index
    %69 = vector.load %arg8[%c0_62, %c0_63] : memref<64x128xbf16, #tpu.memory_space<vmem>>, vector<64x128xbf16>
    tpu.vector_store %arg8[%c0_62, %c0_63], %68 {strides = array<i32>} : memref<64x128xbf16, #tpu.memory_space<vmem>>, vector<64x128xbf16>,
    %cst_64 = arith.constant dense<0.000000e+00> : vector<128xf32>
    %70 = vector.multi_reduction <add>, %67, %cst_64 [0] : vector<64x128xf32> to vector<128xf32>
    %71 = vector.shape_cast %70 : vector<128xf32> to vector<1x128xf32>
    %cst_65 = arith.constant 1.562500e-02 : f32
    %72 = vector.broadcast %cst_65 : f32 to vector<1x128xf32>
    %73 = arith.mulf %71, %72 : vector<1x128xf32>
    %74 = vector.broadcast %73 : vector<1x128xf32> to vector<64x128xf32>
    %75 = arith.subf %67, %74 : vector<64x128xf32>
    %76 = arith.mulf %75, %75 : vector<64x128xf32>
    %cst_66 = arith.constant dense<0.000000e+00> : vector<128xf32>
    %77 = vector.multi_reduction <add>, %76, %cst_66 [0] : vector<64x128xf32> to vector<128xf32>
    %78 = vector.shape_cast %77 : vector<128xf32> to vector<1x128xf32>
    %cst_67 = arith.constant 0.000000e+00 : f32
    %79 = vector.broadcast %cst_67 : f32 to vector<4x128xf32>
    %80 = tpu.concatenate %60, %65, %73, %78, %79 in 0 : vector<1x128xf32>, vector<1x128xf32>, vector<1x128xf32>, vector<1x128xf32>, vector<4x128xf32> -> vector<8x128xf32>
    %81 = vector.shape_cast %80 : vector<8x128xf32> to vector<1x8x128xf32>
    %c0_68 = arith.constant 0 : index
    %c0_69 = arith.constant 0 : index
    %c0_70 = arith.constant 0 : index
    %82 = vector.load %arg9[%c0_68, %c0_69, %c0_70] : memref<1x8x128xf32, #tpu.memory_space<vmem>>, vector<1x8x128xf32>
    tpu.vector_store %arg9[%c0_68, %c0_69, %c0_70], %81 {strides = array<i32>} : memref<1x8x128xf32, #tpu.memory_space<vmem>>, vector<1x8x128xf32>,
    return
  }
  func.func @transform_0(%arg0: i32) -> (i32, i32, i32) {
    %c0_i32 = arith.constant 0 : i32
    %c0_i32_0 = arith.constant 0 : i32
    %c0_i32_1 = arith.constant 0 : i32
    return %arg0, %c0_i32, %c0_i32_0 : i32, i32, i32
  }
  func.func @transform_1(%arg0: i32) -> (i32, i32, i32) {
    %c0_i32 = arith.constant 0 : i32
    %c0_i32_0 = arith.constant 0 : i32
    %c0_i32_1 = arith.constant 0 : i32
    return %arg0, %c0_i32, %c0_i32_0 : i32, i32, i32
  }
  func.func @transform_2(%arg0: i32) -> (i32, i32, i32) {
    %c0_i32 = arith.constant 0 : i32
    %c0_i32_0 = arith.constant 0 : i32
    %c0_i32_1 = arith.constant 0 : i32
    return %arg0, %c0_i32, %c0_i32_0 : i32, i32, i32
  }
  func.func @transform_3(%arg0: i32) -> (i32, i32, i32) {
    %c0_i32 = arith.constant 0 : i32
    %c0_i32_0 = arith.constant 0 : i32
    %c0_i32_1 = arith.constant 0 : i32
    return %arg0, %c0_i32, %c0_i32_0 : i32, i32, i32
  }
  func.func @transform_4(%arg0: i32) -> (i32, i32, i32) {
    %c0_i32 = arith.constant 0 : i32
    %c0_i32_0 = arith.constant 0 : i32
    %c0_i32_1 = arith.constant 0 : i32
    %c0_i32_2 = arith.constant 0 : i32
    return %c0_i32, %c0_i32_0, %c0_i32_1 : i32, i32, i32
  }
  func.func @transform_5(%arg0: i32) -> (i32, i32) {
    %c0_i32 = arith.constant 0 : i32
    %c0_i32_0 = arith.constant 0 : i32
    %c0_i32_1 = arith.constant 0 : i32
    return %c0_i32, %c0_i32_0 : i32, i32
  }
  func.func @transform_6(%arg0: i32) -> (i32, i32) {
    %c0_i32 = arith.constant 0 : i32
    %c0_i32_0 = arith.constant 0 : i32
    return %arg0, %c0_i32 : i32, i32
  }
  func.func @transform_7(%arg0: i32) -> (i32, i32) {
    %c0_i32 = arith.constant 0 : i32
    %c0_i32_0 = arith.constant 0 : i32
    return %arg0, %c0_i32 : i32, i32
  }
  func.func @transform_8(%arg0: i32) -> (i32, i32, i32) {
    %c0_i32 = arith.constant 0 : i32
    %c0_i32_0 = arith.constant 0 : i32
    %c0_i32_1 = arith.constant 0 : i32
    return %arg0, %c0_i32, %c0_i32_0 : i32, i32, i32
  }
}

module attributes {stable_mosaic.version = 11 : i64} {
  func.func @_conv2_kernel(%arg0: i32, %arg1: memref<64x128xbf16, #tpu.memory_space<vmem>>, %arg2: memref<1x128xf32, #tpu.memory_space<vmem>>, %arg3: memref<1x128xf32, #tpu.memory_space<vmem>>, %arg4: memref<9x128x128xbf16, #tpu.memory_space<vmem>>, %arg5: memref<64x128xbf16, #tpu.memory_space<vmem>>, %arg6: memref<1x8x128xf32, #tpu.memory_space<vmem>>) attributes {dimension_semantics = [#tpu.dimension_semantics<parallel>], iteration_bounds = array<i64: 2>, scalar_prefetch = 0 : i64, scratch_operands = 0 : i64, tpu.core_type = #tpu.core_type<tc>, window_params = [{transform_indices = @transform_0, window_bounds = array<i64: 64, 128>}, {pipeline_mode = #tpu.pipeline_mode<synchronous>, transform_indices = @transform_1, window_bounds = array<i64: 1, 128>}, {pipeline_mode = #tpu.pipeline_mode<synchronous>, transform_indices = @transform_2, window_bounds = array<i64: 1, 128>}, {pipeline_mode = #tpu.pipeline_mode<synchronous>, transform_indices = @transform_3, window_bounds = array<i64: 9, 128, 128>}, {transform_indices = @transform_4, window_bounds = array<i64: 64, 128>}, {transform_indices = @transform_5, window_bounds = array<i64: 1, 8, 128>}]} {
    %c0 = arith.constant 0 : index
    %c0_0 = arith.constant 0 : index
    %0 = vector.load %arg1[%c0, %c0_0] : memref<64x128xbf16, #tpu.memory_space<vmem>>, vector<64x128xbf16>
    %1 = arith.extf %0 : vector<64x128xbf16> to vector<64x128xf32>
    %c0_1 = arith.constant 0 : index
    %c0_2 = arith.constant 0 : index
    %2 = vector.load %arg2[%c0_1, %c0_2] : memref<1x128xf32, #tpu.memory_space<vmem>>, vector<1x128xf32>
    %3 = vector.broadcast %2 : vector<1x128xf32> to vector<64x128xf32>
    %4 = arith.mulf %1, %3 : vector<64x128xf32>
    %c0_3 = arith.constant 0 : index
    %c0_4 = arith.constant 0 : index
    %5 = vector.load %arg3[%c0_3, %c0_4] : memref<1x128xf32, #tpu.memory_space<vmem>>, vector<1x128xf32>
    %6 = vector.broadcast %5 : vector<1x128xf32> to vector<64x128xf32>
    %7 = arith.addf %4, %6 : vector<64x128xf32>
    %cst = arith.constant 0.000000e+00 : f32
    %8 = vector.broadcast %cst : f32 to vector<64x128xf32>
    %9 = arith.maximumf %7, %8 : vector<64x128xf32>
    %10 = arith.truncf %9 : vector<64x128xf32> to vector<64x128xbf16>
    %11 = vector.shape_cast %10 : vector<64x128xbf16> to vector<8x8x128xbf16>
    %cst_5 = arith.constant 0.000000e+00 : bf16
    %12 = vector.broadcast %cst_5 : bf16 to vector<1x8x128xbf16>
    %13 = tpu.concatenate %12, %11, %12 in 0 : vector<1x8x128xbf16>, vector<8x8x128xbf16>, vector<1x8x128xbf16> -> vector<10x8x128xbf16>
    %cst_6 = arith.constant 0.000000e+00 : bf16
    %14 = vector.broadcast %cst_6 : bf16 to vector<10x1x128xbf16>
    %15 = tpu.concatenate %14, %13, %14 in 1 : vector<10x1x128xbf16>, vector<10x8x128xbf16>, vector<10x1x128xbf16> -> vector<10x10x128xbf16>
    %cst_7 = arith.constant 0.000000e+00 : f32
    %16 = vector.broadcast %cst_7 : f32 to vector<64x128xf32>
    %17 = vector.extract_strided_slice %15 {offsets = [0, 0, 0], sizes = [8, 8, 128], strides = [1, 1, 1]} : vector<10x10x128xbf16> to vector<8x8x128xbf16>
    %18 = vector.shape_cast %17 : vector<8x8x128xbf16> to vector<64x128xbf16>
    %c0_8 = arith.constant 0 : index
    %c0_9 = arith.constant 0 : index
    %c0_10 = arith.constant 0 : index
    %19 = vector.load %arg4[%c0_8, %c0_9, %c0_10] : memref<9x128x128xbf16, #tpu.memory_space<vmem>>, vector<1x128x128xbf16>
    %20 = vector.shape_cast %19 : vector<1x128x128xbf16> to vector<128x128xbf16>
    %cst_11 = arith.constant dense<0.000000e+00> : vector<64x128xf32>
    %21 = tpu.matmul %18, %20, %cst_11 {dimension_numbers = #tpu.dot_dimension_numbers<[1], [0], [0], [1], [0, 0, 1, 1], [], []>} : vector<64x128xbf16>, vector<128x128xbf16>, vector<64x128xf32> -> vector<64x128xf32>
    %22 = arith.addf %16, %21 : vector<64x128xf32>
    %23 = vector.extract_strided_slice %15 {offsets = [0, 1, 0], sizes = [8, 8, 128], strides = [1, 1, 1]} : vector<10x10x128xbf16> to vector<8x8x128xbf16>
    %24 = vector.shape_cast %23 : vector<8x8x128xbf16> to vector<64x128xbf16>
    %c1 = arith.constant 1 : index
    %c0_12 = arith.constant 0 : index
    %c0_13 = arith.constant 0 : index
    %25 = vector.load %arg4[%c1, %c0_12, %c0_13] : memref<9x128x128xbf16, #tpu.memory_space<vmem>>, vector<1x128x128xbf16>
    %26 = vector.shape_cast %25 : vector<1x128x128xbf16> to vector<128x128xbf16>
    %cst_14 = arith.constant dense<0.000000e+00> : vector<64x128xf32>
    %27 = tpu.matmul %24, %26, %cst_14 {dimension_numbers = #tpu.dot_dimension_numbers<[1], [0], [0], [1], [0, 0, 1, 1], [], []>} : vector<64x128xbf16>, vector<128x128xbf16>, vector<64x128xf32> -> vector<64x128xf32>
    %28 = arith.addf %22, %27 : vector<64x128xf32>
    %29 = vector.extract_strided_slice %15 {offsets = [0, 2, 0], sizes = [8, 8, 128], strides = [1, 1, 1]} : vector<10x10x128xbf16> to vector<8x8x128xbf16>
    %30 = vector.shape_cast %29 : vector<8x8x128xbf16> to vector<64x128xbf16>
    %c2 = arith.constant 2 : index
    %c0_15 = arith.constant 0 : index
    %c0_16 = arith.constant 0 : index
    %31 = vector.load %arg4[%c2, %c0_15, %c0_16] : memref<9x128x128xbf16, #tpu.memory_space<vmem>>, vector<1x128x128xbf16>
    %32 = vector.shape_cast %31 : vector<1x128x128xbf16> to vector<128x128xbf16>
    %cst_17 = arith.constant dense<0.000000e+00> : vector<64x128xf32>
    %33 = tpu.matmul %30, %32, %cst_17 {dimension_numbers = #tpu.dot_dimension_numbers<[1], [0], [0], [1], [0, 0, 1, 1], [], []>} : vector<64x128xbf16>, vector<128x128xbf16>, vector<64x128xf32> -> vector<64x128xf32>
    %34 = arith.addf %28, %33 : vector<64x128xf32>
    %35 = vector.extract_strided_slice %15 {offsets = [1, 0, 0], sizes = [8, 8, 128], strides = [1, 1, 1]} : vector<10x10x128xbf16> to vector<8x8x128xbf16>
    %36 = vector.shape_cast %35 : vector<8x8x128xbf16> to vector<64x128xbf16>
    %c3 = arith.constant 3 : index
    %c0_18 = arith.constant 0 : index
    %c0_19 = arith.constant 0 : index
    %37 = vector.load %arg4[%c3, %c0_18, %c0_19] : memref<9x128x128xbf16, #tpu.memory_space<vmem>>, vector<1x128x128xbf16>
    %38 = vector.shape_cast %37 : vector<1x128x128xbf16> to vector<128x128xbf16>
    %cst_20 = arith.constant dense<0.000000e+00> : vector<64x128xf32>
    %39 = tpu.matmul %36, %38, %cst_20 {dimension_numbers = #tpu.dot_dimension_numbers<[1], [0], [0], [1], [0, 0, 1, 1], [], []>} : vector<64x128xbf16>, vector<128x128xbf16>, vector<64x128xf32> -> vector<64x128xf32>
    %40 = arith.addf %34, %39 : vector<64x128xf32>
    %41 = vector.extract_strided_slice %15 {offsets = [1, 1, 0], sizes = [8, 8, 128], strides = [1, 1, 1]} : vector<10x10x128xbf16> to vector<8x8x128xbf16>
    %42 = vector.shape_cast %41 : vector<8x8x128xbf16> to vector<64x128xbf16>
    %c4 = arith.constant 4 : index
    %c0_21 = arith.constant 0 : index
    %c0_22 = arith.constant 0 : index
    %43 = vector.load %arg4[%c4, %c0_21, %c0_22] : memref<9x128x128xbf16, #tpu.memory_space<vmem>>, vector<1x128x128xbf16>
    %44 = vector.shape_cast %43 : vector<1x128x128xbf16> to vector<128x128xbf16>
    %cst_23 = arith.constant dense<0.000000e+00> : vector<64x128xf32>
    %45 = tpu.matmul %42, %44, %cst_23 {dimension_numbers = #tpu.dot_dimension_numbers<[1], [0], [0], [1], [0, 0, 1, 1], [], []>} : vector<64x128xbf16>, vector<128x128xbf16>, vector<64x128xf32> -> vector<64x128xf32>
    %46 = arith.addf %40, %45 : vector<64x128xf32>
    %47 = vector.extract_strided_slice %15 {offsets = [1, 2, 0], sizes = [8, 8, 128], strides = [1, 1, 1]} : vector<10x10x128xbf16> to vector<8x8x128xbf16>
    %48 = vector.shape_cast %47 : vector<8x8x128xbf16> to vector<64x128xbf16>
    %c5 = arith.constant 5 : index
    %c0_24 = arith.constant 0 : index
    %c0_25 = arith.constant 0 : index
    %49 = vector.load %arg4[%c5, %c0_24, %c0_25] : memref<9x128x128xbf16, #tpu.memory_space<vmem>>, vector<1x128x128xbf16>
    %50 = vector.shape_cast %49 : vector<1x128x128xbf16> to vector<128x128xbf16>
    %cst_26 = arith.constant dense<0.000000e+00> : vector<64x128xf32>
    %51 = tpu.matmul %48, %50, %cst_26 {dimension_numbers = #tpu.dot_dimension_numbers<[1], [0], [0], [1], [0, 0, 1, 1], [], []>} : vector<64x128xbf16>, vector<128x128xbf16>, vector<64x128xf32> -> vector<64x128xf32>
    %52 = arith.addf %46, %51 : vector<64x128xf32>
    %53 = vector.extract_strided_slice %15 {offsets = [2, 0, 0], sizes = [8, 8, 128], strides = [1, 1, 1]} : vector<10x10x128xbf16> to vector<8x8x128xbf16>
    %54 = vector.shape_cast %53 : vector<8x8x128xbf16> to vector<64x128xbf16>
    %c6 = arith.constant 6 : index
    %c0_27 = arith.constant 0 : index
    %c0_28 = arith.constant 0 : index
    %55 = vector.load %arg4[%c6, %c0_27, %c0_28] : memref<9x128x128xbf16, #tpu.memory_space<vmem>>, vector<1x128x128xbf16>
    %56 = vector.shape_cast %55 : vector<1x128x128xbf16> to vector<128x128xbf16>
    %cst_29 = arith.constant dense<0.000000e+00> : vector<64x128xf32>
    %57 = tpu.matmul %54, %56, %cst_29 {dimension_numbers = #tpu.dot_dimension_numbers<[1], [0], [0], [1], [0, 0, 1, 1], [], []>} : vector<64x128xbf16>, vector<128x128xbf16>, vector<64x128xf32> -> vector<64x128xf32>
    %58 = arith.addf %52, %57 : vector<64x128xf32>
    %59 = vector.extract_strided_slice %15 {offsets = [2, 1, 0], sizes = [8, 8, 128], strides = [1, 1, 1]} : vector<10x10x128xbf16> to vector<8x8x128xbf16>
    %60 = vector.shape_cast %59 : vector<8x8x128xbf16> to vector<64x128xbf16>
    %c7 = arith.constant 7 : index
    %c0_30 = arith.constant 0 : index
    %c0_31 = arith.constant 0 : index
    %61 = vector.load %arg4[%c7, %c0_30, %c0_31] : memref<9x128x128xbf16, #tpu.memory_space<vmem>>, vector<1x128x128xbf16>
    %62 = vector.shape_cast %61 : vector<1x128x128xbf16> to vector<128x128xbf16>
    %cst_32 = arith.constant dense<0.000000e+00> : vector<64x128xf32>
    %63 = tpu.matmul %60, %62, %cst_32 {dimension_numbers = #tpu.dot_dimension_numbers<[1], [0], [0], [1], [0, 0, 1, 1], [], []>} : vector<64x128xbf16>, vector<128x128xbf16>, vector<64x128xf32> -> vector<64x128xf32>
    %64 = arith.addf %58, %63 : vector<64x128xf32>
    %65 = vector.extract_strided_slice %15 {offsets = [2, 2, 0], sizes = [8, 8, 128], strides = [1, 1, 1]} : vector<10x10x128xbf16> to vector<8x8x128xbf16>
    %66 = vector.shape_cast %65 : vector<8x8x128xbf16> to vector<64x128xbf16>
    %c8 = arith.constant 8 : index
    %c0_33 = arith.constant 0 : index
    %c0_34 = arith.constant 0 : index
    %67 = vector.load %arg4[%c8, %c0_33, %c0_34] : memref<9x128x128xbf16, #tpu.memory_space<vmem>>, vector<1x128x128xbf16>
    %68 = vector.shape_cast %67 : vector<1x128x128xbf16> to vector<128x128xbf16>
    %cst_35 = arith.constant dense<0.000000e+00> : vector<64x128xf32>
    %69 = tpu.matmul %66, %68, %cst_35 {dimension_numbers = #tpu.dot_dimension_numbers<[1], [0], [0], [1], [0, 0, 1, 1], [], []>} : vector<64x128xbf16>, vector<128x128xbf16>, vector<64x128xf32> -> vector<64x128xf32>
    %70 = arith.addf %64, %69 : vector<64x128xf32>
    %71 = arith.truncf %70 : vector<64x128xf32> to vector<64x128xbf16>
    %c0_36 = arith.constant 0 : index
    %c0_37 = arith.constant 0 : index
    %72 = vector.load %arg5[%c0_36, %c0_37] : memref<64x128xbf16, #tpu.memory_space<vmem>>, vector<64x128xbf16>
    tpu.vector_store %arg5[%c0_36, %c0_37], %71 {strides = array<i32>} : memref<64x128xbf16, #tpu.memory_space<vmem>>, vector<64x128xbf16>,
    %cst_38 = arith.constant dense<0.000000e+00> : vector<128xf32>
    %73 = vector.multi_reduction <add>, %70, %cst_38 [0] : vector<64x128xf32> to vector<128xf32>
    %74 = vector.shape_cast %73 : vector<128xf32> to vector<1x128xf32>
    %cst_39 = arith.constant 1.562500e-02 : f32
    %75 = vector.broadcast %cst_39 : f32 to vector<1x128xf32>
    %76 = arith.mulf %74, %75 : vector<1x128xf32>
    %77 = vector.broadcast %76 : vector<1x128xf32> to vector<64x128xf32>
    %78 = arith.subf %70, %77 : vector<64x128xf32>
    %79 = arith.mulf %78, %78 : vector<64x128xf32>
    %cst_40 = arith.constant dense<0.000000e+00> : vector<128xf32>
    %80 = vector.multi_reduction <add>, %79, %cst_40 [0] : vector<64x128xf32> to vector<128xf32>
    %81 = vector.shape_cast %80 : vector<128xf32> to vector<1x128xf32>
    %cst_41 = arith.constant 0.000000e+00 : f32
    %82 = vector.broadcast %cst_41 : f32 to vector<6x128xf32>
    %83 = tpu.concatenate %76, %81, %82 in 0 : vector<1x128xf32>, vector<1x128xf32>, vector<6x128xf32> -> vector<8x128xf32>
    %84 = vector.shape_cast %83 : vector<8x128xf32> to vector<1x8x128xf32>
    %c0_42 = arith.constant 0 : index
    %c0_43 = arith.constant 0 : index
    %c0_44 = arith.constant 0 : index
    %85 = vector.load %arg6[%c0_42, %c0_43, %c0_44] : memref<1x8x128xf32, #tpu.memory_space<vmem>>, vector<1x8x128xf32>
    tpu.vector_store %arg6[%c0_42, %c0_43, %c0_44], %84 {strides = array<i32>} : memref<1x8x128xf32, #tpu.memory_space<vmem>>, vector<1x8x128xf32>,
    return
  }
  func.func @transform_0(%arg0: i32) -> (i32, i32) {
    %c0_i32 = arith.constant 0 : i32
    %c0_i32_0 = arith.constant 0 : i32
    return %arg0, %c0_i32 : i32, i32
  }
  func.func @transform_1(%arg0: i32) -> (i32, i32) {
    %c0_i32 = arith.constant 0 : i32
    %c0_i32_0 = arith.constant 0 : i32
    %c0_i32_1 = arith.constant 0 : i32
    return %c0_i32, %c0_i32_0 : i32, i32
  }
  func.func @transform_2(%arg0: i32) -> (i32, i32) {
    %c0_i32 = arith.constant 0 : i32
    %c0_i32_0 = arith.constant 0 : i32
    %c0_i32_1 = arith.constant 0 : i32
    return %c0_i32, %c0_i32_0 : i32, i32
  }
  func.func @transform_3(%arg0: i32) -> (i32, i32, i32) {
    %c0_i32 = arith.constant 0 : i32
    %c0_i32_0 = arith.constant 0 : i32
    %c0_i32_1 = arith.constant 0 : i32
    %c0_i32_2 = arith.constant 0 : i32
    return %c0_i32, %c0_i32_0, %c0_i32_1 : i32, i32, i32
  }
  func.func @transform_4(%arg0: i32) -> (i32, i32) {
    %c0_i32 = arith.constant 0 : i32
    %c0_i32_0 = arith.constant 0 : i32
    return %arg0, %c0_i32 : i32, i32
  }
  func.func @transform_5(%arg0: i32) -> (i32, i32, i32) {
    %c0_i32 = arith.constant 0 : i32
    %c0_i32_0 = arith.constant 0 : i32
    %c0_i32_1 = arith.constant 0 : i32
    return %arg0, %c0_i32, %c0_i32_0 : i32, i32, i32
  }
}

module attributes {stable_mosaic.version = 11 : i64} {
  func.func @_finalize_kernel(%arg0: i32, %arg1: memref<128x128xbf16, #tpu.memory_space<vmem>>, %arg2: memref<128x128xbf16, #tpu.memory_space<vmem>>, %arg3: memref<1x128xf32, #tpu.memory_space<vmem>>, %arg4: memref<1x128xf32, #tpu.memory_space<vmem>>, %arg5: memref<1x128xf32, #tpu.memory_space<vmem>>, %arg6: memref<1x128xf32, #tpu.memory_space<vmem>>, %arg7: memref<128x128xf32, #tpu.memory_space<vmem>>) attributes {dimension_semantics = [#tpu.dimension_semantics<parallel>], iteration_bounds = array<i64: 1>, scalar_prefetch = 0 : i64, scratch_operands = 0 : i64, tpu.core_type = #tpu.core_type<tc>, window_params = [{transform_indices = @transform_0, window_bounds = array<i64: 128, 128>}, {transform_indices = @transform_1, window_bounds = array<i64: 128, 128>}, {pipeline_mode = #tpu.pipeline_mode<synchronous>, transform_indices = @transform_2, window_bounds = array<i64: 1, 128>}, {pipeline_mode = #tpu.pipeline_mode<synchronous>, transform_indices = @transform_3, window_bounds = array<i64: 1, 128>}, {pipeline_mode = #tpu.pipeline_mode<synchronous>, transform_indices = @transform_4, window_bounds = array<i64: 1, 128>}, {pipeline_mode = #tpu.pipeline_mode<synchronous>, transform_indices = @transform_5, window_bounds = array<i64: 1, 128>}, {transform_indices = @transform_6, window_bounds = array<i64: 128, 128>}]} {
    %c0 = arith.constant 0 : index
    %c0_0 = arith.constant 0 : index
    %0 = vector.load %arg1[%c0, %c0_0] : memref<128x128xbf16, #tpu.memory_space<vmem>>, vector<128x128xbf16>
    %1 = arith.extf %0 : vector<128x128xbf16> to vector<128x128xf32>
    %c0_1 = arith.constant 0 : index
    %c0_2 = arith.constant 0 : index
    %2 = vector.load %arg3[%c0_1, %c0_2] : memref<1x128xf32, #tpu.memory_space<vmem>>, vector<1x128xf32>
    %3 = vector.broadcast %2 : vector<1x128xf32> to vector<128x128xf32>
    %4 = arith.mulf %1, %3 : vector<128x128xf32>
    %c0_3 = arith.constant 0 : index
    %c0_4 = arith.constant 0 : index
    %5 = vector.load %arg4[%c0_3, %c0_4] : memref<1x128xf32, #tpu.memory_space<vmem>>, vector<1x128xf32>
    %6 = vector.broadcast %5 : vector<1x128xf32> to vector<128x128xf32>
    %7 = arith.addf %4, %6 : vector<128x128xf32>
    %c0_5 = arith.constant 0 : index
    %c0_6 = arith.constant 0 : index
    %8 = vector.load %arg2[%c0_5, %c0_6] : memref<128x128xbf16, #tpu.memory_space<vmem>>, vector<128x128xbf16>
    %9 = arith.extf %8 : vector<128x128xbf16> to vector<128x128xf32>
    %c0_7 = arith.constant 0 : index
    %c0_8 = arith.constant 0 : index
    %10 = vector.load %arg5[%c0_7, %c0_8] : memref<1x128xf32, #tpu.memory_space<vmem>>, vector<1x128xf32>
    %11 = vector.broadcast %10 : vector<1x128xf32> to vector<128x128xf32>
    %12 = arith.mulf %9, %11 : vector<128x128xf32>
    %13 = arith.addf %7, %12 : vector<128x128xf32>
    %c0_9 = arith.constant 0 : index
    %c0_10 = arith.constant 0 : index
    %14 = vector.load %arg6[%c0_9, %c0_10] : memref<1x128xf32, #tpu.memory_space<vmem>>, vector<1x128xf32>
    %15 = vector.broadcast %14 : vector<1x128xf32> to vector<128x128xf32>
    %16 = arith.addf %13, %15 : vector<128x128xf32>
    %cst = arith.constant 0.000000e+00 : f32
    %17 = vector.broadcast %cst : f32 to vector<128x128xf32>
    %18 = arith.maximumf %16, %17 : vector<128x128xf32>
    %c0_11 = arith.constant 0 : index
    %c0_12 = arith.constant 0 : index
    %19 = vector.load %arg7[%c0_11, %c0_12] : memref<128x128xf32, #tpu.memory_space<vmem>>, vector<128x128xf32>
    tpu.vector_store %arg7[%c0_11, %c0_12], %18 {strides = array<i32>} : memref<128x128xf32, #tpu.memory_space<vmem>>, vector<128x128xf32>,
    return
  }
  func.func @transform_0(%arg0: i32) -> (i32, i32) {
    %c0_i32 = arith.constant 0 : i32
    %c0_i32_0 = arith.constant 0 : i32
    return %arg0, %c0_i32 : i32, i32
  }
  func.func @transform_1(%arg0: i32) -> (i32, i32) {
    %c0_i32 = arith.constant 0 : i32
    %c0_i32_0 = arith.constant 0 : i32
    return %arg0, %c0_i32 : i32, i32
  }
  func.func @transform_2(%arg0: i32) -> (i32, i32) {
    %c0_i32 = arith.constant 0 : i32
    %c0_i32_0 = arith.constant 0 : i32
    %c0_i32_1 = arith.constant 0 : i32
    return %c0_i32, %c0_i32_0 : i32, i32
  }
  func.func @transform_3(%arg0: i32) -> (i32, i32) {
    %c0_i32 = arith.constant 0 : i32
    %c0_i32_0 = arith.constant 0 : i32
    %c0_i32_1 = arith.constant 0 : i32
    return %c0_i32, %c0_i32_0 : i32, i32
  }
  func.func @transform_4(%arg0: i32) -> (i32, i32) {
    %c0_i32 = arith.constant 0 : i32
    %c0_i32_0 = arith.constant 0 : i32
    %c0_i32_1 = arith.constant 0 : i32
    return %c0_i32, %c0_i32_0 : i32, i32
  }
  func.func @transform_5(%arg0: i32) -> (i32, i32) {
    %c0_i32 = arith.constant 0 : i32
    %c0_i32_0 = arith.constant 0 : i32
    %c0_i32_1 = arith.constant 0 : i32
    return %c0_i32, %c0_i32_0 : i32, i32
  }
  func.func @transform_6(%arg0: i32) -> (i32, i32) {
    %c0_i32 = arith.constant 0 : i32
    %c0_i32_0 = arith.constant 0 : i32
    return %arg0, %c0_i32 : i32, i32
  }
}

</mosaic_0001>

<bundles_post_ra>
// kernel: basic_block_forward.5
= control target key start
LH: loop header
LB: loop body
LE: loop exit
PB: predicated region body
PF: predicated region fallthrough
CT: control target
= control target key end

     0   :  { %s516_s0 = inlined_call_operand.vmem [shape: bf16[128,128], index: 0, kind: input, shape index: {}]   ;;  %s517_s1 = inlined_call_operand.vmem [shape: bf16[128,128], index: 1, kind: input, shape index: {}]   ;;  %s518_s2 = inlined_call_operand.vmem [shape: f32[1,128], index: 2, kind: input, shape index: {}]   ;;  %s519_s3 = inlined_call_operand.vmem [shape: f32[1,128], index: 3, kind: input, shape index: {}]   ;;  %s520_s4 = inlined_call_operand.vmem [shape: f32[1,128], index: 4, kind: input, shape index: {}]   ;;  %s521_s5 = inlined_call_operand.vmem [shape: f32[1,128], index: 5, kind: input, shape index: {}]   ;;  %s522_s6 = inlined_call_operand.vmem [shape: f32[128,128], index: 6, kind: output, shape index: {}]  }
   0x1   :  { %v220_v0 = vld [vmem:[%s516_s0] sm:$0xff]   ;;  %v283_v11 = vld [vmem:[%s516_s0 + $0x8] sm:$0xff]   ;;  %v284_v17 = vld [vmem:[%s516_s0 + $0x10] sm:$0xff]  }
   0x2   :  { %v342_v1 = vld [vmem:[%s518_s2] ss:$0 sm:$0xff]  ;;  %v221_v2 = vunpack.c.l.bf16 %v220_v0  ;;  %v222_v5 = vunpack.c.h.bf16 %v220_v0  ;;  %v290_v12 = vld [vmem:[%s517_s1 + $0x8] sm:$0xff]   ;;  %v225_v15 = vunpack.c.l.bf16 %v283_v11  ;;  %v291_v18 = vld [vmem:[%s517_s1 + $0x10] sm:$0xff]   ;;  %v226_v22 = vunpack.c.h.bf16 %v283_v11 }
   0x3   :  { %v347_v3 = vld [vmem:[%s519_s3] ss:$0 sm:$0xff]  ;;  %v257_v16 = vunpack.c.l.bf16 %v290_v12  ;;  %v258_v23 = vunpack.c.h.bf16 %v290_v12  ;;  %v229_v26 = vunpack.c.l.bf16 %v284_v17  ;;  %v261_v27 = vunpack.c.l.bf16 %v291_v18  ;;  %v285_v32 = vld [vmem:[%s516_s0 + $0x18] sm:$0xff]  }
   0x4   :  { %v252_v4 = vld [vmem:[%s517_s1] sm:$0xff]   ;;  %v59_v9 = vmul.f32 %v342_v1, %v221_v2  ;;  %v60_v10 = vmul.f32 %v342_v1, %v222_v5  ;;  %v61_v24 = vmul.f32 %v342_v1, %v225_v15  ;;  %v62_v30 = vmul.f32 %v342_v1, %v226_v22  ;;  %v292_v45 = vld [vmem:[%s517_s1 + $0x18] sm:$0xff]  }
   0x5   :  { %v253_v6 = vunpack.c.l.bf16 %v252_v4  ;;  %v355_v7 = vld [vmem:[%s520_s4] ss:$0 sm:$0xff]  ;;  %v254_v8 = vunpack.c.h.bf16 %v252_v4  ;;  %v63_v34 = vmul.f32 %v342_v1, %v229_v26  ;;  %v230_v36 = vunpack.c.h.bf16 %v284_v17 }
   0x6   :  { %v79_v19 = vadd.f32 %v347_v3, %v59_v9  ;;  %v377_v20 = vld [vmem:[%s521_s5] ss:$0 sm:$0xff]  ;;  %v80_v21 = vadd.f32 %v347_v3, %v60_v10  ;;  %v133_v25 = vmul.f32 %v355_v7, %v257_v16  ;;  %v134_v31 = vmul.f32 %v355_v7, %v258_v23  ;;  %v294_v16 = vld [vmem:[%s517_s1 + $0x28] sm:$0xff]  }
   0x7   :  { %v131_v13 = vmul.f32 %v355_v7, %v253_v6  ;;  %v132_v14 = vmul.f32 %v355_v7, %v254_v8  ;;  %v81_v33 = vadd.f32 %v347_v3, %v61_v24  ;;  %v135_v35 = vmul.f32 %v355_v7, %v261_v27  ;;  %v286_v58 = vld [vmem:[%s516_s0 + $0x20] sm:$0xff]   ;;  %v287_v6 = vld [vmem:[%s516_s0 + $0x28] sm:$0xff]  }
   0x8   :  { %v82_v39 = vadd.f32 %v347_v3, %v62_v30  ;;  %v262_v40 = vunpack.c.h.bf16 %v291_v18  ;;  %v83_v42 = vadd.f32 %v347_v3, %v63_v34  ;;  %v64_v43 = vmul.f32 %v342_v1, %v230_v36  ;;  %v293_v59 = vld [vmem:[%s517_s1 + $0x20] sm:$0xff]   ;;  %v288_v30 = vld [vmem:[%s516_s0 + $0x30] sm:$0xff]  }
   0x9   :  { %v147_v28 = vadd.f32 %v131_v13, %v79_v19  ;;  %v148_v29 = vadd.f32 %v132_v14, %v80_v21  ;;  %v149_v41 = vadd.f32 %v133_v25, %v81_v33  ;;  %v233_v44 = vunpack.c.l.bf16 %v285_v32 }
   0xa   :  { %v150_v48 = vadd.f32 %v134_v31, %v82_v39  ;;  %v136_v49 = vmul.f32 %v355_v7, %v262_v40  ;;  %v151_v51 = vadd.f32 %v135_v35, %v83_v42  ;;  %v84_v52 = vadd.f32 %v347_v3, %v64_v43  ;;  %v295_v35 = vld [vmem:[%s517_s1 + $0x30] sm:$0xff]  }
   0xb   :  { %v167_v37 = vadd.f32 %v377_v20, %v147_v28  ;;  %v168_v38 = vadd.f32 %v377_v20, %v148_v29  ;;  %v169_v50 = vadd.f32 %v377_v20, %v149_v41  ;;  %v65_v53 = vmul.f32 %v342_v1, %v233_v44 }
   0xc   :  { %v170_v54 = vadd.f32 %v377_v20, %v150_v48  ;;  %v265_v55 = vunpack.c.l.bf16 %v292_v45  ;;  %v234_v56 = vunpack.c.h.bf16 %v285_v32  ;;  %v266_v57 = vunpack.c.h.bf16 %v292_v45 }
   0xd   :  { %v183_v46 = vmax.f32 %v167_v37, 0.0  ;;  %v184_v47 = vmax.f32 %v168_v38, 0.0  ;;  %v185_v60 = vmax.f32 %v169_v50, 0.0  ;;  %v171_v61 = vadd.f32 %v377_v20, %v151_v51 }
   0xe   :  { %v152_v62 = vadd.f32 %v136_v49, %v84_v52  ;;  %v85_v63 = vadd.f32 %v347_v3, %v65_v53  ;;  %v186_v0 = vmax.f32 %v170_v54, 0.0  ;;  %v137_v2 = vmul.f32 %v355_v7, %v265_v55  ;;  %v289_v52 = vld [vmem:[%s516_s0 + $0x38] sm:$0xff]  }
   0xf   :  { %199 = vst [vmem:[%s522_s6] sm:$0xff] %v183_v46  ;;  %v66_v4 = vmul.f32 %v342_v1, %v234_v56  ;;  %v138_v5 = vmul.f32 %v355_v7, %v266_v57  ;;  %v187_v8 = vmax.f32 %v171_v61, 0.0  ;;  %v237_v10 = vunpack.c.l.bf16 %v286_v58  ;;  %v296_v53 = vld [vmem:[%s517_s1 + $0x38] sm:$0xff]  }
  0x10   :  { %200 = vst [vmem:[%s522_s6 + $0x8] sm:$0xff] %v184_v47  ;;  %v172_v9 = vadd.f32 %v377_v20, %v152_v62  ;;  %v269_v11 = vunpack.c.l.bf16 %v293_v59  ;;  %v153_v12 = vadd.f32 %v137_v2, %v85_v63  ;;  %v238_v14 = vunpack.c.h.bf16 %v286_v58 }
  0x11   :  { %201 = vst [vmem:[%s522_s6 + $0x10] sm:$0xff] %v185_v60  ;;  %v86_v13 = vadd.f32 %v347_v3, %v66_v4  ;;  %v270_v15 = vunpack.c.h.bf16 %v293_v59  ;;  %v67_v18 = vmul.f32 %v342_v1, %v237_v10  ;;  %v241_v21 = vunpack.c.l.bf16 %v287_v6 }
  0x12   :  { %202 = vst [vmem:[%s522_s6 + $0x18] sm:$0xff] %v186_v0  ;;  %v188_v17 = vmax.f32 %v172_v9, 0.0  ;;  %v139_v19 = vmul.f32 %v355_v7, %v269_v11  ;;  %v173_v22 = vadd.f32 %v377_v20, %v153_v12  ;;  %v68_v24 = vmul.f32 %v342_v1, %v238_v14 }
  0x13   :  { %203 = vst [vmem:[%s522_s6 + $0x20] sm:$0xff] %v187_v8  ;;  %v154_v23 = vadd.f32 %v138_v5, %v86_v13  ;;  %v140_v25 = vmul.f32 %v355_v7, %v270_v15  ;;  %v87_v26 = vadd.f32 %v347_v3, %v67_v18  ;;  %v69_v27 = vmul.f32 %v342_v1, %v241_v21 }
  0x14   :  { %204 = vst [vmem:[%s522_s6 + $0x28] sm:$0xff] %v188_v17  ;;  %v273_v28 = vunpack.c.l.bf16 %v294_v16  ;;  %v242_v29 = vunpack.c.h.bf16 %v287_v6  ;;  %v189_v31 = vmax.f32 %v173_v22, 0.0  ;;  %v88_v33 = vadd.f32 %v347_v3, %v68_v24 }
  0x15   :  { %v174_v32 = vadd.f32 %v377_v20, %v154_v23  ;;  %v274_v34 = vunpack.c.h.bf16 %v294_v16  ;;  %v155_v36 = vadd.f32 %v139_v19, %v87_v26  ;;  %v89_v37 = vadd.f32 %v347_v3, %v69_v27 }
  0x16   :  { %v141_v38 = vmul.f32 %v355_v7, %v273_v28  ;;  %v70_v39 = vmul.f32 %v342_v1, %v242_v29  ;;  %205 = vst [vmem:[%s522_s6 + $0x30] sm:$0xff] %v189_v31  ;;  %v156_v41 = vadd.f32 %v140_v25, %v88_v33  ;;  %v245_v43 = vunpack.c.l.bf16 %v288_v30 }
  0x17   :  { %v190_v40 = vmax.f32 %v174_v32, 0.0  ;;  %v142_v42 = vmul.f32 %v355_v7, %v274_v34  ;;  %v175_v44 = vadd.f32 %v377_v20, %v155_v36  ;;  %v277_v47 = vunpack.c.l.bf16 %v295_v35 }
  0x18   :  { %v157_v45 = vadd.f32 %v141_v38, %v89_v37  ;;  %v90_v46 = vadd.f32 %v347_v3, %v70_v39  ;;  %v176_v48 = vadd.f32 %v377_v20, %v156_v41  ;;  %v71_v49 = vmul.f32 %v342_v1, %v245_v43 }
  0x19   :  { %206 = vst [vmem:[%s522_s6 + $0x38] sm:$0xff] %v190_v40  ;;  %v246_v50 = vunpack.c.h.bf16 %v288_v30  ;;  %v278_v51 = vunpack.c.h.bf16 %v295_v35  ;;  %v191_v54 = vmax.f32 %v175_v44, 0.0  ;;  %v143_v57 = vmul.f32 %v355_v7, %v277_v47 }
  0x1a   :  { %v177_v55 = vadd.f32 %v377_v20, %v157_v45  ;;  %v158_v56 = vadd.f32 %v142_v42, %v90_v46  ;;  %v192_v58 = vmax.f32 %v176_v48, 0.0  ;;  %v91_v59 = vadd.f32 %v347_v3, %v71_v49 }
  0x1b   :  { %v72_v60 = vmul.f32 %v342_v1, %v246_v50  ;;  %v144_v61 = vmul.f32 %v355_v7, %v278_v51  ;;  %207 = vst [vmem:[%s522_s6 + $0x40] sm:$0xff] %v191_v54  ;;  %v249_v0 = vunpack.c.l.bf16 %v289_v52  ;;  %v281_v2 = vunpack.c.l.bf16 %v296_v53 }
  0x1c   :  { %v193_v62 = vmax.f32 %v177_v55, 0.0  ;;  %v178_v63 = vadd.f32 %v377_v20, %v158_v56  ;;  %208 = vst [vmem:[%s522_s6 + $0x48] sm:$0xff] %v192_v58  ;;  %v159_v4 = vadd.f32 %v143_v57, %v91_v59  ;;  %v250_v6 = vunpack.c.h.bf16 %v289_v52 }
  0x1d   :  { %v92_v5 = vadd.f32 %v347_v3, %v72_v60  ;;  %v282_v8 = vunpack.c.h.bf16 %v296_v53  ;;  %v73_v10 = vmul.f32 %v342_v1, %v249_v0  ;;  %v145_v11 = vmul.f32 %v355_v7, %v281_v2 }
  0x1e   :  { %209 = vst [vmem:[%s522_s6 + $0x50] sm:$0xff] %v193_v62  ;;  %v194_v9 = vmax.f32 %v178_v63, 0.0  ;;  %v179_v12 = vadd.f32 %v377_v20, %v159_v4  ;;  %v74_v14 = vmul.f32 %v342_v1, %v250_v6 }
  0x1f   :  { %v160_v13 = vadd.f32 %v144_v61, %v92_v5  ;;  %v146_v15 = vmul.f32 %v355_v7, %v282_v8  ;;  %v93_v16 = vadd.f32 %v347_v3, %v73_v10 }
  0x20   :  { %210 = vst [vmem:[%s522_s6 + $0x58] sm:$0xff] %v194_v9  ;;  %v195_v17 = vmax.f32 %v179_v12, 0.0  ;;  %v94_v19 = vadd.f32 %v347_v3, %v74_v14 }
  0x21   :  { %v180_v18 = vadd.f32 %v377_v20, %v160_v13  ;;  %v161_v21 = vadd.f32 %v145_v11, %v93_v16 }
  0x22   :  { %211 = vst [vmem:[%s522_s6 + $0x60] sm:$0xff] %v195_v17  ;;  %v162_v1 = vadd.f32 %v146_v15, %v94_v19 }
  0x23   :  { %v196_v22 = vmax.f32 %v180_v18, 0.0  ;;  %v181_v7 = vadd.f32 %v377_v20, %v161_v21 }
  0x24   :  { %v182_v23 = vadd.f32 %v377_v20, %v162_v1 }
  0x25   :  { %212 = vst [vmem:[%s522_s6 + $0x68] sm:$0xff] %v196_v22  ;;  %v197_v24 = vmax.f32 %v181_v7, 0.0 }
  0x26   :  { %v198_v25 = vmax.f32 %v182_v23, 0.0 }
  0x27   :  { %213 = vst [vmem:[%s522_s6 + $0x70] sm:$0xff] %v197_v24 }
  0x28   :  { %214 = vst [vmem:[%s522_s6 + $0x78] sm:$0xff] %v198_v25 }

// kernel: basic_block_forward.3
= control target key start
LH: loop header
LB: loop body
LE: loop exit
PB: predicated region body
PF: predicated region fallthrough
CT: control target
= control target key end

     0   :  { %s2125_s27 = smov 0   ;;  %s2529_s0 = inlined_call_operand.vmem [shape: bf16[18,9,8], index: 0, kind: input, shape index: {}]   ;;  %s2530_s1 = inlined_call_operand.vmem [shape: bf16[18,9,8], index: 1, kind: input, shape index: {}]   ;;  %s2531_s2 = inlined_call_operand.vmem [shape: bf16[18,9,8], index: 2, kind: input, shape index: {}]   ;;  %s2532_s3 = inlined_call_operand.vmem [shape: bf16[18,9,8], index: 3, kind: input, shape index: {}]   ;;  %s2533_s4 = inlined_call_operand.vmem [shape: bf16[9,8,128], index: 4, kind: input, shape index: {}]   ;;  %s2534_s5 = inlined_call_operand.vmem [shape: bf16[8,128], index: 5, kind: input, shape index: {}]   ;;  %s2535_s6 = inlined_call_operand.vmem [shape: bf16[128,128], index: 6, kind: output, shape index: {0}]   ;;  %s2536_s7 = inlined_call_operand.vmem [shape: bf16[128,128], index: 7, kind: output, shape index: {1}]   ;;  %s2537_s8 = inlined_call_operand.vmem [shape: f32[2,8,128], index: 8, kind: output, shape index: {2}]  }
   0x1 LB: > { %s2131_s28 = sadd.s32 4294967295, %s2078_s27   ;;  %p1796_p0 = scmp.ge.s32.totalorder %s2078_s27, 1  ;;  %s2078_s27 = sphi %s2125_s27, %s19_s27  }
   0x2   : > { %p305_p1 = scmp.lt.s32.totalorder %s2078_s27, 3 }
   0x4   : > { %p306_p2 = pnand %p1796_p0, %p305_p1 }
   0x5   : > { %s367_s11 = smul.u32 (!%p306_p2), 9, %s2131_s28  ;;  %p407_p5 = scmp.lt.s32.totalorder (!%p306_p2), %s2131_s28, 1 }
   0x6   : > { %309 = sbr.rel (%p306_p2) target bundleno = 360 (0x168), region = 44 }
   0x7   : > { %p368_p3 = scmp.lt.s32.totalorder (!%p306_p2), %s367_s11, 17 }
   0xb   : > { %v1810_v0 = vld [vmem:[%s2533_s4 + $0x4] sm:$0xf]  ;;  %vm464_vm0 = vcmask 1043456   ;;  %v420_v1 = vld [vmem:[%s2533_s4] sm:$0xf]  ;;  %s2541_s11 = smov (!%p368_p3, %s367_s11), 17 }
   0xc   : > { %v466_v2 = vsel %vm464_vm0, %v1810_v0, 0  ;;  %v530_v3 = vsel %vm464_vm0, %v420_v1, 0  ;;  %v1851_v4 = vld [vmem:[%s2533_s4 + $0x8] sm:$0xf]  ;;  %v1856_v6 = vld [vmem:[%s2533_s4 + $0xc] sm:$0xf] }
   0xd   : > { %2062 = vmatpush.bf16.msra.mxu2 %v466_v2  ;;  %539 = vmatpush.bf16.msra.mxu1 %v530_v3  ;;  %v719_v5 = vsel %vm464_vm0, %v1851_v4, 0  ;;  %v1877_v7 = vld [vmem:[%s2533_s4 + $0x10] sm:$0xf]  ;;  %v801_v8 = vsel %vm464_vm0, %v1856_v6, 0  ;;  %v1898_v10 = vld [vmem:[%s2533_s4 + $0x14] sm:$0xf] }
   0xe   : > { %2063 = vmatpush.bf16.msra.mxu3 %v530_v3  ;;  %475 = vmatpush.bf16.msra.mxu0 %v466_v2  ;;  %v883_v9 = vsel %vm464_vm0, %v1877_v7, 0  ;;  %v1077_v11 = vsel %vm464_vm0, %v1898_v10, 0  ;;  %s2160_s20 = sshll.u32 %s2541_s11, 3  ;;  %vm451_vm1 = vcmask 64512   ;;  %v1911_v48 = vld [vmem:[%s2533_s4 + $0x18] sm:$0xf] }
   0xf   : > { %s2166_s23 = scalar_lea.vmem %s2529_s0, %s2160_s20  ;;  %s2172_s26 = scalar_lea.vmem %s2530_s1, %s2160_s20  ;;  %v1160_v62 = vsel %vm464_vm0, %v1911_v48, 0  ;;  %v1940_v63 = vld [vmem:[%s2533_s4 + $0x1c] sm:$0xf]  ;;  %v1977_v0 = vld [vmem:[%s2533_s4 + $0x20] sm:$0xf]  ;;  %vm1627_vm5 = vcmask 1040384  }
  0x10   : > { %v1821_v12 = vld [vmem:[%s2172_s26 + $0x20] sm:$0xf]  ;;  %v1998_v13 = vld [vmem:[%s2172_s26 + $0x24] sm:$0xf0]  ;;  %s2189_s9 = scalar_lea.vmem %s2531_s2, %s2160_s20  ;;  %v1825_v30 = vld [vmem:[%s2172_s26 + $0x30] sm:$0xf]  ;;  %s2250_s21 = scalar_lea.vmem %s2532_s3, %s2160_s20 }
  0x11   : > { %728 = vmatpush.bf16.msrb.mxu2 %v719_v5  ;;  %1086 = vmatpush.bf16.msrb.mxu1 %v1077_v11  ;;  %v1833_v14 = vld [vmem:[%s2166_s23] sm:$0xf]  ;;  %v1822_v15 = vor.u32 %v1998_v13, %v1821_v12  ;;  %v1992_v16 = vld [vmem:[%s2166_s23 + $0x4] sm:$0xf0]  ;;  %v1999_v31 = vld [vmem:[%s2172_s26 + $0x34] sm:$0xf0] }
  0x12   : > { %810 = vmatpush.bf16.msrb.mxu3 %v801_v8  ;;  %892 = vmatpush.bf16.msrb.mxu0 %v883_v9  ;;  %v1841_v17 = vld [vmem:[%s2166_s23 + $0x20] sm:$0xf]  ;;  %v1994_v18 = vld [vmem:[%s2166_s23 + $0x24] sm:$0xf0]  ;;  %v1834_v19 = vor.u32 %v1992_v16, %v1833_v14  ;;  %v1837_v33 = vld [vmem:[%s2166_s23 + $0x10] sm:$0xf]  ;;  %v1826_v54 = vor.u32 %v1999_v31, %v1825_v30 }
  0x13   : > { %v1842_v20 = vor.u32 %v1994_v18, %v1841_v17  ;;  %v1813_v21 = vld [vmem:[%s2172_s26] sm:$0xf]  ;;  %v1996_v22 = vld [vmem:[%s2172_s26 + $0x4] sm:$0xf0]  ;;  %1829 = vmatmul.msk.bf16.vlgmr.msra.gmra.mxu2 %vm451_vm1, %v1822_v15  ;;  %v1993_v34 = vld [vmem:[%s2166_s23 + $0x14] sm:$0xf0] }
  0x14   : > { %v1814_v23 = vor.u32 %v1996_v22, %v1813_v21  ;;  %1847 = vmatmul.msk.bf16.vlgmr.msra.gmra.mxu1 %vm451_vm1, %v1834_v19  ;;  %v561_v24 = vld [vmem:[%s2166_s23] sm:$0xf]  ;;  %v563_v25 = vld [vmem:[%s2166_s23 + $0x8] sm:$0xf]  ;;  %v1845_v35 = vld [vmem:[%s2166_s23 + $0x30] sm:$0xf]  ;;  %v1838_v59 = vor.u32 %v1993_v34, %v1837_v33 }
  0x15   : > { %1849 = vmatmul.msk.bf16.vlgmr.msra.gmra.mxu3 %vm451_vm1, %v1842_v20  ;;  %v581_v26 = vshrl.u32 %v561_v24, 16  ;;  %v584_v27 = vshll.u32 %v561_v24, 16  ;;  %v595_v28 = vshrl.u32 %v563_v25, 16  ;;  %v598_v29 = vshll.u32 %v563_v25, 16  ;;  %v922_v32 = vld [vmem:[%s2189_s9] sm:$0xf]  ;;  %1169 = vmatpush.bf16.msra.mxu2 %v1160_v62 }
  0x16   : > { %1827 = vmatmul.msk.bf16.vlgmr.msra.gmra.mxu0 %vm451_vm1, %v1814_v23  ;;  %v1995_v36 = vld [vmem:[%s2166_s23 + $0x34] sm:$0xf0]  ;;  %v562_v37 = vld [vmem:[%s2166_s23 + $0x4] sm:$0x1]  ;;  %v564_v38 = vld [vmem:[%s2166_s23 + $0xc] sm:$0x1] }
  0x17   : > { %v583_v39 = vrot.slane %v581_v26, 4  ;;  %v586_v40 = vrot.slane %v584_v27, 5  ;;  %v924_v41 = vld [vmem:[%s2189_s9 + $0x8] sm:$0xf]  ;;  %v939_v42 = vshrl.u32 %v922_v32, 16  ;;  %v942_v43 = vshll.u32 %v922_v32, 16 }
  0x18   : > { %v597_v44 = vrot.slane %v595_v28, 4  ;;  %v600_v45 = vrot.slane %v598_v29, 5  ;;  %v953_v46 = vshrl.u32 %v924_v41, 16  ;;  %v956_v47 = vshll.u32 %v924_v41, 16  ;;  %v1817_v49 = vld [vmem:[%s2172_s26 + $0x10] sm:$0xf] }
  0x19   : > { %v923_v50 = vld [vmem:[%s2189_s9 + $0x4] sm:$0x1]  ;;  %v925_v51 = vld [vmem:[%s2189_s9 + $0xc] sm:$0x1]  ;;  %v941_v52 = vrot.slane %v939_v42, 4  ;;  %v944_v53 = vrot.slane %v942_v43, 5  ;;  %v1846_v60 = vor.u32 %v1995_v36, %v1845_v35  ;;  %v587_v1 = vor.u32 %v586_v40, %v583_v39 }
  0x1a   : > { %v1997_v55 = vld [vmem:[%s2172_s26 + $0x14] sm:$0xf0]  ;;  %v590_v56 = vshll.u32 %v562_v37, 16  ;;  %v955_v57 = vrot.slane %v953_v46, 4  ;;  %v958_v58 = vrot.slane %v956_v47, 5  ;;  %v604_v61 = vshll.u32 %v564_v38, 16 }
  0x1b   : > { %v601_v2 = vor.u32 %v600_v45, %v597_v44  ;;  %v948_v3 = vshll.u32 %v923_v50, 16  ;;  %v962_v4 = vshll.u32 %v925_v51, 16  ;;  %v1535_v5 = vld [vmem:[%s2534_s5] sm:$0xf]  ;;  %v945_v6 = vor.u32 %v944_v53, %v941_v52  ;;  %v565_v16 = vld [vmem:[%s2166_s23 + $0x10] sm:$0xf] }
  0x1c   : > { %v959_v7 = vor.u32 %v958_v58, %v955_v57  ;;  %v1243_v8 = vsel %vm464_vm0, %v1940_v63, 0  ;;  %v1437_v9 = vsel %vm464_vm0, %v1977_v0, 0  ;;  %v1818_v10 = vor.u32 %v1997_v55, %v1817_v49  ;;  %v567_v21 = vld [vmem:[%s2166_s23 + $0x18] sm:$0xf]  ;;  %v926_v25 = vld [vmem:[%s2189_s9 + $0x10] sm:$0xf] }
  0x1d   : > { %1252 = vmatpush.bf16.msra.mxu3 %v1243_v8  ;;  %1446 = vmatpush.bf16.msra.mxu0 %v1437_v9  ;;  %v1537_v11 = vsel %vm464_vm0, %v1535_v5, 0  ;;  %vm577_vm2 = vsmask.f32 3328  ;;  %vm578_vm3 = vsmask.f32 7440  ;;  %v588_v12 = vrot.slane %v587_v1, 4 }
  0x1e   : > { %1546 = vmatpush.bf16.msra.mxu1 %v1537_v11  ;;  %v592_v13 = vrot.slane %v590_v56, 5  ;;  %v602_v14 = vrot.slane %v601_v2, 4  ;;  %v606_v15 = vrot.slane %v604_v61, 5  ;;  %v946_v17 = vrot.slane %v945_v6, 4  ;;  %vm2232_vm4 = vmor %vm577_vm2, %vm578_vm3  ;;  %v928_v26 = vld [vmem:[%s2189_s9 + $0x18] sm:$0xf] }
  0x1f   : > { %v950_v18 = vrot.slane %v948_v3, 5  ;;  %v960_v19 = vrot.slane %v959_v7, 4  ;;  %v964_v20 = vrot.slane %v962_v4, 5  ;;  %v609_v23 = vshrl.u32 %v565_v16, 16  ;;  %v1859_v41 = vld [vmem:[%s2189_s9] sm:$0xf] }
  0x20   : > { %v612_v24 = vshll.u32 %v565_v16, 16  ;;  %v623_v27 = vshrl.u32 %v567_v21, 16  ;;  %v626_v28 = vshll.u32 %v567_v21, 16  ;;  %v593_v29 = vsel %vm2232_vm4, %v588_v12, %v592_v13  ;;  %v566_v42 = vld [vmem:[%s2166_s23 + $0x14] sm:$0x1]  ;;  %s1805_s20 = sshll.u32 %s2131_s28, 3 }
  0x21   : > { %v607_v30 = vsel %vm2232_vm4, %v602_v14, %v606_v15  ;;  %v951_v31 = vsel %vm2232_vm4, %v946_v17, %v950_v18  ;;  %v965_v32 = vsel %vm2232_vm4, %v960_v19, %v964_v20  ;;  %v967_v33 = vshrl.u32 %v926_v25, 16  ;;  %v2000_v45 = vld [vmem:[%s2189_s9 + $0x4] sm:$0xf0]  ;;  %v1880_v48 = vld [vmem:[%s2250_s21] sm:$0xf]  ;;  %p396_p4 = scmp.lt.s32.totalorder %s1805_s20, 15 }
  0x22   : > { %v970_v34 = vshll.u32 %v926_v25, 16  ;;  %v981_v35 = vshrl.u32 %v928_v26, 16  ;;  %v984_v36 = vshll.u32 %v928_v26, 16  ;;  %v611_v37 = vrot.slane %v609_v23, 4  ;;  %v568_v49 = vld [vmem:[%s2166_s23 + $0x1c] sm:$0x1] }
  0x23   : > { %1830 = vmatmul.msk.bf16.gmra.mxu2 %vm451_vm1, %v1826_v54  ;;  %v614_v38 = vrot.slane %v612_v24, 5  ;;  %v694_v39 = vunpack.c.l.b16 %v593_v29  ;;  %v695_v40 = vunpack.c.l.b16 %v607_v30  ;;  %v625_v43 = vrot.slane %v623_v27, 4  ;;  %v2004_v50 = vld [vmem:[%s2250_s21 + $0x4] sm:$0xf0]  ;;  %v927_v57 = vld [vmem:[%s2189_s9 + $0x14] sm:$0x1] }
  0x24   : > { %1848 = vmatmul.msk.bf16.gmra.mxu1 %vm451_vm1, %v1838_v59  ;;  %v628_v44 = vrot.slane %v626_v28, 5  ;;  %v1052_v46 = vunpack.c.l.b16 %v951_v31  ;;  %v1053_v47 = vunpack.c.l.b16 %v965_v32  ;;  %v969_v51 = vrot.slane %v967_v33, 4  ;;  %v929_v58 = vld [vmem:[%s2189_s9 + $0x1c] sm:$0x1]  ;;  %v569_v9 = vld [vmem:[%s2166_s23 + $0x20] sm:$0xf] }
  0x25   : > { %1850 = vmatmul.msk.bf16.gmra.mxu3 %vm451_vm1, %v1846_v60  ;;  %v972_v52 = vrot.slane %v970_v34, 5  ;;  %v983_v53 = vrot.slane %v981_v35, 4  ;;  %v986_v54 = vrot.slane %v984_v36, 5  ;;  %v615_v55 = vor.u32 %v614_v38, %v611_v37  ;;  %v930_v15 = vld [vmem:[%s2189_s9 + $0x20] sm:$0xf]  ;;  %s2543_s20 = smov (!%p396_p4, %s1805_s20), 15 }
  0x26   : > { %1828 = vmatmul.msk.bf16.gmra.mxu0 %vm451_vm1, %v1818_v10  ;;  %v618_v56 = vshll.u32 %v566_v42, 16  ;;  %v702_v59 = vpack.c.b16 %v695_v40, %v694_v39  ;;  %v629_v60 = vor.u32 %v628_v44, %v625_v43  ;;  %v632_v61 = vshll.u32 %v568_v49, 16  ;;  %v571_v10 = vld [vmem:[%s2166_s23 + $0x28] sm:$0xf]  ;;  %v1863_v32 = vld [vmem:[%s2189_s9 + $0x10] sm:$0xf] }
  0x27   : > { %v1860_v62 = vor.u32 %v2000_v45, %v1859_v41  ;;  %v1060_v63 = vpack.c.b16 %v1053_v47, %v1052_v46  ;;  %v2260_v0 = vor.u32 %v2004_v50, %v1880_v48  ;;  %v973_v1 = vor.u32 %v972_v52, %v969_v51  ;;  %v932_v18 = vld [vmem:[%s2189_s9 + $0x28] sm:$0xf]  ;;  %v570_v33 = vld [vmem:[%s2166_s23 + $0x24] sm:$0x1]  ;;  %v2001_v38 = vld [vmem:[%s2189_s9 + $0x14] sm:$0xf0] }
  0x28   : > { %v976_v2 = vshll.u32 %v927_v57, 16  ;;  %v987_v3 = vor.u32 %v986_v54, %v983_v53  ;;  %v990_v4 = vshll.u32 %v929_v58, 16  ;;  %v616_v5 = vrot.slane %v615_v55, 4  ;;  %v572_v41 = vld [vmem:[%s2166_s23 + $0x2c] sm:$0x1]  ;;  %s1806_s22 = sshll.u32 %s2543_s20, 2 }
  0x29   : > { %v620_v6 = vrot.slane %v618_v56, 5  ;;  %v630_v7 = vrot.slane %v629_v60, 4  ;;  %v634_v8 = vrot.slane %v632_v61, 5  ;;  %v974_v11 = vrot.slane %v973_v1, 4  ;;  %v1884_v44 = vld [vmem:[%s2250_s21 + $0x10] sm:$0xf]  ;;  %s2433_s25 = scalar_lea.vmem %s2536_s7, %s1806_s22  ;;  %s2451_s30 = scalar_lea.vmem %s2535_s6, %s1806_s22 }
  0x2a   : > { %v978_v12 = vrot.slane %v976_v2, 5  ;;  %v988_v13 = vrot.slane %v987_v3, 4  ;;  %v992_v14 = vrot.slane %v990_v4, 5  ;;  %v637_v17 = vshrl.u32 %v569_v9, 16  ;;  %v931_v45 = vld [vmem:[%s2189_s9 + $0x24] sm:$0x1] }
  0x2b   : > { %v621_v16 = vsel %vm2232_vm4, %v616_v5, %v620_v6  ;;  %v635_v19 = vsel %vm2232_vm4, %v630_v7, %v634_v8  ;;  %v640_v20 = vshll.u32 %v569_v9, 16  ;;  %v651_v21 = vshrl.u32 %v571_v10, 16  ;;  %v2005_v48 = vld [vmem:[%s2250_s21 + $0x14] sm:$0xf0]  ;;  %v933_v50 = vld [vmem:[%s2189_s9 + $0x2c] sm:$0x1] }
  0x2c   : > { %v654_v23 = vshll.u32 %v571_v10, 16  ;;  %v995_v24 = vshrl.u32 %v930_v15, 16  ;;  %v998_v25 = vshll.u32 %v930_v15, 16  ;;  %v979_v26 = vsel %vm2232_vm4, %v974_v11, %v978_v12  ;;  %v573_v5 = vld [vmem:[%s2166_s23 + $0x30] sm:$0xf]  ;;  %s2545_s28 = smov (!%p407_p5, %s2131_s28), 1 }
  0x2d   : > { %v993_v27 = vsel %vm2232_vm4, %v988_v13, %v992_v14  ;;  %v1009_v28 = vshrl.u32 %v932_v18, 16  ;;  %v1012_v29 = vshll.u32 %v932_v18, 16  ;;  %v696_v30 = vunpack.c.l.b16 %v621_v16  ;;  %v575_v8 = vld [vmem:[%s2166_s23 + $0x38] sm:$0xf]  ;;  %v934_v9 = vld [vmem:[%s2189_s9 + $0x30] sm:$0xf] }
  0x2e   : > { %v697_v31 = vunpack.c.l.b16 %v635_v19  ;;  %v639_v34 = vrot.slane %v637_v17, 4  ;;  %v642_v35 = vrot.slane %v640_v20, 5  ;;  %v653_v36 = vrot.slane %v651_v21, 4  ;;  %v936_v10 = vld [vmem:[%s2189_s9 + $0x38] sm:$0xf] }
  0x2f   : > { %v656_v37 = vrot.slane %v654_v23, 5  ;;  %v1054_v39 = vunpack.c.l.b16 %v979_v26  ;;  %v1055_v40 = vunpack.c.l.b16 %v993_v27  ;;  %v997_v42 = vrot.slane %v995_v24, 4  ;;  %v1867_v24 = vld [vmem:[%s2189_s9 + $0x20] sm:$0xf] }
  0x30   : > { %v1000_v43 = vrot.slane %v998_v25, 5  ;;  %v1011_v46 = vrot.slane %v1009_v28, 4  ;;  %v1014_v47 = vrot.slane %v1012_v29, 5  ;;  %v646_v49 = vshll.u32 %v570_v33, 16  ;;  %v2002_v25 = vld [vmem:[%s2189_s9 + $0x24] sm:$0xf0] }
  0x31   : > { %v703_v51 = vpack.c.b16 %v697_v31, %v696_v30  ;;  %v643_v52 = vor.u32 %v642_v35, %v639_v34  ;;  %v657_v53 = vor.u32 %v656_v37, %v653_v36  ;;  %v660_v54 = vshll.u32 %v572_v41, 16  ;;  %v1888_v29 = vld [vmem:[%s2250_s21 + $0x20] sm:$0xf]  ;;  %v2006_v30 = vld [vmem:[%s2250_s21 + $0x24] sm:$0xf0] }
  0x32   : > { %v1864_v55 = vor.u32 %v2001_v38, %v1863_v32  ;;  %v1061_v56 = vpack.c.b16 %v1055_v40, %v1054_v39  ;;  %v1001_v57 = vor.u32 %v1000_v43, %v997_v42  ;;  %v1004_v58 = vshll.u32 %v931_v45, 16  ;;  %v574_v33 = vld [vmem:[%s2166_s23 + $0x34] sm:$0x1]  ;;  %v576_v37 = vld [vmem:[%s2166_s23 + $0x3c] sm:$0x1] }
  0x33   : > { %1852 = vmatmul.msk.bf16.vlgmr.msrb.gmra.mxu2 %vm451_vm1, %v702_v59  ;;  %v2287_v59 = vor.u32 %v2005_v48, %v1884_v44  ;;  %v1015_v60 = vor.u32 %v1014_v47, %v1011_v46  ;;  %v1018_v61 = vshll.u32 %v933_v50, 16  ;;  %v658_v1 = vrot.slane %v657_v53, 4  ;;  %v935_v42 = vld [vmem:[%s2189_s9 + $0x34] sm:$0x1]  ;;  %v937_v43 = vld [vmem:[%s2189_s9 + $0x3c] sm:$0x1] }
  0x34   : > { %1899 = vmatmul.msk.bf16.vlgmr.msrb.gmra.mxu1 %vm451_vm1, %v1060_v63  ;;  %v648_v63 = vrot.slane %v646_v49, 5  ;;  %v662_v2 = vrot.slane %v660_v54, 5  ;;  %v1002_v3 = vrot.slane %v1001_v57, 4  ;;  %v1006_v4 = vrot.slane %v1004_v58, 5 }
  0x35   : > { %1873 = vmatmul.msk.bf16.vlgmr.msrb.gmra.mxu3 %vm451_vm1, %v1860_v62  ;;  %v644_v62 = vrot.slane %v643_v52, 4  ;;  %v1016_v6 = vrot.slane %v1015_v60, 4  ;;  %v1020_v7 = vrot.slane %v1018_v61, 5  ;;  %v665_v13 = vshrl.u32 %v573_v5, 16 }
  0x36   : > { %1894 = vmatmul.msk.bf16.vlgmr.msrb.gmra.mxu0 %vm451_vm1, %v2260_v0  ;;  %v663_v12 = vsel %vm2232_vm4, %v658_v1, %v662_v2  ;;  %v668_v14 = vshll.u32 %v573_v5, 16  ;;  %v1007_v15 = vsel %vm2232_vm4, %v1002_v3, %v1006_v4  ;;  %v679_v16 = vshrl.u32 %v575_v8, 16  ;;  %v1961_v2 = vld [vmem:[%s2166_s23 + $0x8] sm:$0xf]  ;;  %v1963_v3 = vld [vmem:[%s2166_s23 + $0x10] sm:$0xf] }
  0x37   : > { %v649_v11 = vsel %vm2232_vm4, %v644_v62, %v648_v63  ;;  %v682_v17 = vshll.u32 %v575_v8, 16  ;;  %v1023_v18 = vshrl.u32 %v934_v9, 16  ;;  %v1021_v19 = vsel %vm2232_vm4, %v1016_v6, %v1020_v7 }
  0x38   : > { %v1026_v20 = vshll.u32 %v934_v9, 16  ;;  %v1037_v21 = vshrl.u32 %v936_v10, 16  ;;  %v1040_v23 = vshll.u32 %v936_v10, 16  ;;  %v698_v26 = vunpack.c.l.b16 %v649_v11 }
  0x39   : > { %v699_v27 = vunpack.c.l.b16 %v663_v12  ;;  %v1056_v28 = vunpack.c.l.b16 %v1007_v15  ;;  %v667_v31 = vrot.slane %v665_v13, 4  ;;  %v1057_v32 = vunpack.c.l.b16 %v1021_v19  ;;  %v2007_v19 = vld [vmem:[%s2250_s21 + $0x34] sm:$0xf0] }
  0x3a   : > { %v670_v34 = vrot.slane %v668_v14, 5  ;;  %v681_v35 = vrot.slane %v679_v16, 4  ;;  %v684_v36 = vrot.slane %v682_v17, 5  ;;  %v1025_v38 = vrot.slane %v1023_v18, 4  ;;  %v1871_v16 = vld [vmem:[%s2189_s9 + $0x30] sm:$0xf] }
  0x3b   : > { %v1028_v39 = vrot.slane %v1026_v20, 5  ;;  %v1039_v40 = vrot.slane %v1037_v21, 4  ;;  %v1042_v41 = vrot.slane %v1040_v23, 5  ;;  %v704_v44 = vpack.c.b16 %v699_v27, %v698_v26  ;;  %v2003_v17 = vld [vmem:[%s2189_s9 + $0x34] sm:$0xf0]  ;;  %s1809_s9 = sshll.u32 %s2545_s28, 3 }
  0x3c   : > { %v1868_v45 = vor.u32 %v2002_v25, %v1867_v24  ;;  %v2314_v46 = vor.u32 %v2006_v30, %v1888_v29  ;;  %v674_v47 = vshll.u32 %v574_v33, 16  ;;  %v1062_v48 = vpack.c.b16 %v1057_v32, %v1056_v28  ;;  %v1892_v18 = vld [vmem:[%s2250_s21 + $0x30] sm:$0xf]  ;;  %v1962_v26 = vld [vmem:[%s2166_s23 + $0xc] sm:$0x1]  ;;  %s410_s12 = scalar_lea.vmem %s2537_s8, %s1809_s9 }
  0x3d   : > { %v671_v49 = vor.u32 %v670_v34, %v667_v31  ;;  %v685_v50 = vor.u32 %v684_v36, %v681_v35  ;;  %v1029_v52 = vor.u32 %v1028_v39, %v1025_v38  ;;  %v1032_v53 = vshll.u32 %v935_v42, 16  ;;  %v1964_v27 = vld [vmem:[%s2166_s23 + $0x14] sm:$0x1]  ;;  %v1965_v35 = vld [vmem:[%s2166_s23 + $0x18] sm:$0xf] }
  0x3e   : > { %v1043_v54 = vor.u32 %v1042_v41, %v1039_v40  ;;  %v676_v57 = vrot.slane %v674_v47, 5  ;;  %v1299_v8 = vshrl.u32 %v1961_v2, 16  ;;  %v1302_v9 = vshll.u32 %v1961_v2, 16  ;;  %v1967_v36 = vld [vmem:[%s2166_s23 + $0x20] sm:$0xf] }
  0x3f   : > { %v686_v58 = vrot.slane %v685_v50, 4  ;;  %v1030_v61 = vrot.slane %v1029_v52, 4  ;;  %v1034_v62 = vrot.slane %v1032_v53, 5  ;;  %v1313_v10 = vshrl.u32 %v1963_v3, 16  ;;  %v1943_v50 = vld [vmem:[%s2172_s26 + $0x8] sm:$0xf] }
  0x40   : > { %v1044_v63 = vrot.slane %v1043_v54, 4  ;;  %v1316_v11 = vshll.u32 %v1963_v3, 16  ;;  %v1301_v20 = vrot.slane %v1299_v8, 4  ;;  %v1304_v21 = vrot.slane %v1302_v9, 5  ;;  %v1969_v9 = vld [vmem:[%s2166_s23 + $0x28] sm:$0xf] }
  0x41   : > { %v1035_v6 = vsel %vm2232_vm4, %v1030_v61, %v1034_v62  ;;  %v1315_v23 = vrot.slane %v1313_v10, 4  ;;  %v1872_v28 = vor.u32 %v2003_v17, %v1871_v16  ;;  %v2337_v30 = vor.u32 %v2007_v19, %v1892_v18  ;;  %v1971_v10 = vld [vmem:[%s2166_s23 + $0x30] sm:$0xf]  ;;  %v1918_v16 = vld [vmem:[%s2166_s23 + $0x18] sm:$0xf] }
  0x42   : > { %v1058_v14 = vunpack.c.l.b16 %v1035_v6  ;;  %v1318_v24 = vrot.slane %v1316_v11, 5  ;;  %v1305_v31 = vor.u32 %v1304_v21, %v1301_v20  ;;  %v1308_v32 = vshll.u32 %v1962_v26, 16  ;;  %v2009_v17 = vld [vmem:[%s2166_s23 + $0x1c] sm:$0xf0]  ;;  %v1947_v18 = vld [vmem:[%s2172_s26 + $0x18] sm:$0xf] }
  0x43   : > { %1853 = vmatmul.msk.bf16.gmra.mxu2 %vm451_vm1, %v703_v51  ;;  %v688_v51 = vshll.u32 %v576_v37, 16  ;;  %v1322_v34 = vshll.u32 %v1964_v27, 16  ;;  %v1327_v41 = vshrl.u32 %v1965_v35, 16  ;;  %v1330_v42 = vshll.u32 %v1965_v35, 16  ;;  %v2013_v21 = vld [vmem:[%s2172_s26 + $0x1c] sm:$0xf0] }
  0x44   : > { %1900 = vmatmul.msk.bf16.gmra.mxu1 %vm451_vm1, %v1061_v56  ;;  %v672_v56 = vrot.slane %v671_v49, 4  ;;  %v1319_v33 = vor.u32 %v1318_v24, %v1315_v23  ;;  %v1306_v37 = vrot.slane %v1305_v31, 4  ;;  %v1310_v38 = vrot.slane %v1308_v32, 5  ;;  %v2008_v49 = vld [vmem:[%s2166_s23 + $0xc] sm:$0xf0] }
  0x45   : > { %1874 = vmatmul.msk.bf16.gmra.mxu3 %vm451_vm1, %v1864_v55  ;;  %v1046_v55 = vshll.u32 %v937_v43, 16  ;;  %v690_v60 = vrot.slane %v688_v51, 5  ;;  %v1324_v40 = vrot.slane %v1322_v34, 5  ;;  %v1341_v43 = vshrl.u32 %v1967_v36, 16  ;;  %v2012_v51 = vld [vmem:[%s2172_s26 + $0xc] sm:$0xf0] }
  0x46   : > { %1895 = vmatmul.msk.bf16.gmra.mxu0 %vm451_vm1, %v2287_v59  ;;  %v677_v4 = vsel %vm2232_vm4, %v672_v56, %v676_v57  ;;  %v1320_v39 = vrot.slane %v1319_v33, 4  ;;  %v1329_v52 = vrot.slane %v1327_v41, 4  ;;  %v1332_v53 = vrot.slane %v1330_v42, 5  ;;  %v1970_v27 = vld [vmem:[%s2166_s23 + $0x2c] sm:$0x1] }
  0x47   : > { %v1048_v1 = vrot.slane %v1046_v55, 5  ;;  %v691_v5 = vsel %vm2232_vm4, %v686_v58, %v690_v60  ;;  %v700_v12 = vunpack.c.l.b16 %v677_v4  ;;  %v1343_v54 = vrot.slane %v1341_v43, 4  ;;  %v1966_v58 = vld [vmem:[%s2166_s23 + $0x1c] sm:$0x1]  ;;  %v1968_v60 = vld [vmem:[%s2166_s23 + $0x24] sm:$0x1] }
  0x48   : > { %v701_v13 = vunpack.c.l.b16 %v691_v5  ;;  %v1325_v47 = vsel %vm2232_vm4, %v1320_v39, %v1324_v40  ;;  %v1944_v62 = vor.u32 %v2012_v51, %v1943_v50  ;;  %v1350_v3 = vshll.u32 %v1968_v60, 16  ;;  %v1973_v41 = vld [vmem:[%s2166_s23 + $0x38] sm:$0xf]  ;;  %v1975_v42 = vld [vmem:[%s2166_s23 + $0x40] sm:$0xf] }
  0x49   : > { %v1049_v7 = vsel %vm2232_vm4, %v1044_v63, %v1048_v1  ;;  %v1413_v57 = vunpack.c.l.b16 %v1325_v47  ;;  %v1333_v63 = vor.u32 %v1332_v53, %v1329_v52  ;;  %v1336_v1 = vshll.u32 %v1966_v58, 16  ;;  %v2010_v50 = vld [vmem:[%s2166_s23 + $0x2c] sm:$0xf0]  ;;  %v1951_v51 = vld [vmem:[%s2172_s26 + $0x28] sm:$0xf] }
  0x4a   : > { %v1059_v15 = vunpack.c.l.b16 %v1049_v7  ;;  %v705_v25 = vpack.c.b16 %v701_v13, %v700_v12  ;;  %v1352_v8 = vrot.slane %v1350_v3, 5  ;;  %v1355_v13 = vshrl.u32 %v1969_v9, 16  ;;  %v2014_v52 = vld [vmem:[%s2172_s26 + $0x2c] sm:$0xf0] }
  0x4b   : > { %v1334_v5 = vrot.slane %v1333_v63, 4  ;;  %v1338_v6 = vrot.slane %v1336_v1, 5  ;;  %v1948_v31 = vor.u32 %v2013_v21, %v1947_v18  ;;  %v1364_v34 = vshll.u32 %v1970_v27, 16  ;;  %v1955_v21 = vld [vmem:[%s2172_s26 + $0x38] sm:$0xf] }
  0x4c   : > { %v1063_v29 = vpack.c.b16 %v1059_v15, %v1058_v14  ;;  %v1369_v14 = vshrl.u32 %v1971_v10, 16  ;;  %v1372_v15 = vshll.u32 %v1971_v10, 16  ;;  %v1357_v23 = vrot.slane %v1355_v13, 4 }
  0x4d   : > { %v1339_v11 = vsel %vm2232_vm4, %v1334_v5, %v1338_v6  ;;  %v1397_v47 = vshrl.u32 %v1975_v42, 16  ;;  %v1952_v63 = vor.u32 %v2014_v52, %v1951_v51  ;;  %vm1629_vm6 = vcmask 1041408  }
  0x4e   : > { %v1414_v19 = vunpack.c.l.b16 %v1339_v11  ;;  %v1374_v26 = vrot.slane %v1372_v15, 5  ;;  %vm1631_vm7 = vcmask 1042432  }
  0x53   : > { %1854 = vmatmul.msk.bf16.gmra.mxu2 %vm451_vm1, %v704_v44  ;;  %v1344_v44 = vshll.u32 %v1967_v36, 16 }
  0x54   : > { %1901 = vmatmul.msk.bf16.gmra.mxu1 %vm451_vm1, %v1062_v48  ;;  %v1914_v48 = vld [vmem:[%s2166_s23 + $0x8] sm:$0xf] }
  0x55   : > { %1875 = vmatmul.msk.bf16.gmra.mxu3 %vm451_vm1, %v1868_v45  ;;  %v1311_v45 = vsel %vm2232_vm4, %v1306_v37, %v1310_v38  ;;  %v1346_v55 = vrot.slane %v1344_v44, 5  ;;  %v1915_v61 = vor.u32 %v2008_v49, %v1914_v48  ;;  %v1366_v38 = vrot.slane %v1364_v34, 5  ;;  %v1922_v49 = vld [vmem:[%s2166_s23 + $0x28] sm:$0xf] }
  0x56   : > { %1896 = vmatmul.msk.bf16.gmra.mxu0 %vm451_vm1, %v2314_v46  ;;  %v1412_v56 = vunpack.c.l.b16 %v1311_v45  ;;  %v1383_v45 = vshrl.u32 %v1973_v41, 16  ;;  %v1400_v48 = vshll.u32 %v1975_v42, 16  ;;  %v1923_v60 = vor.u32 %v2010_v50, %v1922_v49 }
  0x57   : > { %v1347_v2 = vor.u32 %v1346_v55, %v1343_v54 }
  0x58   : > { %v1420_v4 = vpack.c.b16 %v1413_v57, %v1412_v56  ;;  %v1385_v55 = vrot.slane %v1383_v45, 4  ;;  %v1399_v57 = vrot.slane %v1397_v47, 4  ;;  %v1402_v58 = vrot.slane %v1400_v48, 5 }
  0x59   : > { %v1348_v7 = vrot.slane %v1347_v2, 4 }
  0x5a   : > { %v1403_v6 = vor.u32 %v1402_v58, %v1399_v57 }
  0x5b   : > { %v1353_v12 = vsel %vm2232_vm4, %v1348_v7, %v1352_v8 }
  0x5c   : > { %v1415_v20 = vunpack.c.l.b16 %v1353_v12  ;;  %v1404_v12 = vrot.slane %v1403_v6, 4 }
  0x5e   : > { %v1421_v32 = vpack.c.b16 %v1415_v20, %v1414_v19  ;;  %v1926_v19 = vld [vmem:[%s2166_s23 + $0x38] sm:$0xf]  ;;  %v2011_v20 = vld [vmem:[%s2166_s23 + $0x3c] sm:$0xf0] }
  0x63   : > { %1855 = vmatmul.msk.bf16.gmra.mxu2 %vm451_vm1, %v705_v25  ;;  %v1371_v25 = vrot.slane %v1369_v14, 4 }
  0x64   : > { %1902 = vmatmul.msk.bf16.gmra.mxu1 %vm451_vm1, %v1063_v29  ;;  %v1919_v29 = vor.u32 %v2009_v17, %v1918_v16 }
  0x65   : > { %1876 = vmatmul.msk.bf16.gmra.mxu3 %vm451_vm1, %v1872_v28  ;;  %v1972_v28 = vld [vmem:[%s2166_s23 + $0x34] sm:$0x1]  ;;  %v1375_v35 = vor.u32 %v1374_v26, %v1371_v25 }
  0x66   : > { %1897 = vmatmul.msk.bf16.gmra.mxu0 %vm451_vm1, %v2337_v30  ;;  %v1378_v36 = vshll.u32 %v1972_v28, 16  ;;  %v1927_v28 = vor.u32 %v2011_v20, %v1926_v19 }
  0x67   : > { %v1376_v39 = vrot.slane %v1375_v35, 4 }
  0x68   : > { %v1380_v40 = vrot.slane %v1378_v36, 5 }
  0x6a   : > { %v1381_v44 = vsel %vm2232_vm4, %v1376_v39, %v1380_v40 }
  0x6b   : > { %v1417_v54 = vunpack.c.l.b16 %v1381_v44 }
  0x73   : > { %1928 = vmatmul.msk.bf16.vlgmr.msra.gmra.mxu2 %vm451_vm1, %v1915_v61  ;;  %v1974_v61 = vld [vmem:[%s2166_s23 + $0x3c] sm:$0x1] }
  0x74   : > { %1982 = vmatmul.msk.bf16.vlgmr.msra.gmra.mxu1 %vm451_vm1, %v2260_v0  ;;  %v1358_v0 = vshll.u32 %v1969_v9, 16  ;;  %v1392_v5 = vshll.u32 %v1974_v61, 16 }
  0x75   : > { %1957 = vmatmul.msk.bf16.vlgmr.msra.gmra.mxu3 %vm451_vm1, %v1944_v62  ;;  %v1976_v62 = vld [vmem:[%s2166_s23 + $0x44] sm:$0x1] }
  0x76   : > { %1978 = vmatmul.msk.bf16.vlgmr.msra.gmra.mxu0 %vm451_vm1, %v1420_v4  ;;  %v1360_v24 = vrot.slane %v1358_v0, 5  ;;  %v1406_v7 = vshll.u32 %v1976_v62, 16  ;;  %v1394_v11 = vrot.slane %v1392_v5, 5 }
  0x78   : > { %v1361_v33 = vor.u32 %v1360_v24, %v1357_v23  ;;  %v1408_v13 = vrot.slane %v1406_v7, 5  ;;  %v2015_v23 = vld [vmem:[%s2172_s26 + $0x3c] sm:$0xf0] }
  0x7a   : > { %v1362_v37 = vrot.slane %v1361_v33, 4 }
  0x7c   : > { %v1367_v43 = vsel %vm2232_vm4, %v1362_v37, %v1366_v38 }
  0x7d   : > { %v1416_v53 = vunpack.c.l.b16 %v1367_v43 }
  0x7f   : > { %v1422_v2 = vpack.c.b16 %v1417_v54, %v1416_v53 }
  0x83   : > { %1929 = vmatmul.msk.bf16.gmra.mxu2 %vm451_vm1, %v1919_v29 }
  0x84   : > { %1983 = vmatmul.msk.bf16.gmra.mxu1 %vm451_vm1, %v2287_v59  ;;  %v1386_v59 = vshll.u32 %v1973_v41, 16 }
  0x85   : > { %1958 = vmatmul.msk.bf16.gmra.mxu3 %vm451_vm1, %v1948_v31  ;;  %v1956_v31 = vor.u32 %v2015_v23, %v1955_v21 }
  0x86   : > { %1979 = vmatmul.msk.bf16.gmra.mxu0 %vm451_vm1, %v1421_v32  ;;  %v1388_v56 = vrot.slane %v1386_v59, 5 }
  0x88   : > { %v1389_v4 = vor.u32 %v1388_v56, %v1385_v55 }
  0x8a   : > { %v1390_v10 = vrot.slane %v1389_v4, 4 }
  0x8c   : > { %v1395_v17 = vsel %vm2232_vm4, %v1390_v10, %v1394_v11 }
  0x8d   : > { %v1418_v24 = vunpack.c.l.b16 %v1395_v17 }
  0x91   : > { %v541_v1 = vpop.f32.mrf.mxu1 }
  0x93   : > { %v477_v3 = vpop.f32.mrf.mxu0  ;;  %1930 = vmatmul.msk.bf16.gmra.mxu2 %vm451_vm1, %v1923_v60 }
  0x94   : > { %v542_v8 = vadd.f32 %v541_v1, %v477_v3  ;;  %1984 = vmatmul.msk.bf16.gmra.mxu1 %vm451_vm1, %v2314_v46  ;;  %v1409_v46 = vsel %vm2232_vm4, %v1404_v12, %v1408_v13 }
  0x95   : > { %1959 = vmatmul.msk.bf16.gmra.mxu3 %vm451_vm1, %v1952_v63  ;;  %v1419_v25 = vunpack.c.l.b16 %v1409_v46 }
  0x96   : > { %1980 = vmatmul.msk.bf16.gmra.mxu0 %vm451_vm1, %v1422_v2  ;;  %v487_v9 = vpop.f32.mrf.mxu2 }
  0x97   : > { %v1423_v33 = vpack.c.b16 %v1419_v25, %v1418_v24 }
  0x98   : > { %v551_v0 = vpop.f32.mrf.mxu3 }
  0x99   : > { %v2395_v14 = vadd.f32 %v551_v0, %v487_v9  ;;  %v543_v15 = vpop.f32.mrf.mxu1 }
  0x9b   : > { %v479_v16 = vpop.f32.mrf.mxu0 }
  0x9c   : > { %v544_v18 = vadd.f32 %v543_v15, %v479_v16 }
  0x9e   : > { %v489_v26 = vpop.f32.mrf.mxu2 }
  0xa0   : > { %v553_v27 = vpop.f32.mrf.mxu3 }
  0xa1   : > { %v554_v29 = vadd.f32 %v553_v27, %v489_v26  ;;  %v546_v32 = vpop.f32.mrf.mxu1 }
  0xa3   : > { %v482_v34 = vpop.f32.mrf.mxu0  ;;  %1931 = vmatmul.msk.bf16.gmra.mxu2 %vm451_vm1, %v1927_v28 }
  0xa4   : > { %v547_v35 = vadd.f32 %v546_v32, %v482_v34  ;;  %1985 = vmatmul.msk.bf16.gmra.mxu1 %vm451_vm1, %v2337_v30 }
  0xa5   : > { %1960 = vmatmul.msk.bf16.gmra.mxu3 %vm451_vm1, %v1956_v31 }
  0xa6   : > { %1981 = vmatmul.msk.bf16.gmra.mxu0 %vm451_vm1, %v1423_v33  ;;  %v492_v22 = vpop.f32.mrf.mxu2 }
  0xa8   : > { %v556_v36 = vpop.f32.mrf.mxu3 }
  0xa9   : > { %v557_v37 = vadd.f32 %v556_v36, %v492_v22  ;;  %v548_v38 = vpop.f32.mrf.mxu1 }
  0xab   : > { %v484_v39 = vpop.f32.mrf.mxu0 }
  0xac   : > { %v549_v40 = vadd.f32 %v548_v38, %v484_v39 }
  0xae   : > { %v494_v41 = vpop.f32.mrf.mxu2 }
  0xb0   : > { %v558_v42 = vpop.f32.mrf.mxu3 }
  0xb1   : > { %v559_v43 = vadd.f32 %v558_v42, %v494_v41  ;;  %v1088_v44 = vpop.f32.mrf.mxu1 }
  0xb3   : > { %v894_v45 = vpop.f32.mrf.mxu0 }
  0xb6   : > { %v730_v59 = vpop.f32.mrf.mxu2 }
  0xb7   : > { %v750_v47 = vadd.f32 %v730_v59, %v542_v8 }
  0xb8   : > { %v812_v48 = vpop.f32.mrf.mxu3 }
  0xb9   : > { %v832_v49 = vadd.f32 %v812_v48, %v750_v47  ;;  %v1090_v50 = vpop.f32.mrf.mxu1 }
  0xbb   : > { %v896_v51 = vpop.f32.mrf.mxu0  ;;  %v914_v30 = vadd.f32 %v894_v45, %v832_v49 }
  0xbd   : > { %v2410_v52 = vadd.f32 %v1088_v44, %v914_v30 }
  0xbe   : > { %v732_v53 = vpop.f32.mrf.mxu2 }
  0xbf   : > { %v751_v54 = vadd.f32 %v732_v53, %v544_v18 }
  0xc0   : > { %v814_v55 = vpop.f32.mrf.mxu3 }
  0xc1   : > { %v833_v56 = vadd.f32 %v814_v55, %v751_v54  ;;  %v1093_v57 = vpop.f32.mrf.mxu1 }
  0xc3   : > { %v899_v58 = vpop.f32.mrf.mxu0  ;;  %v915_v60 = vadd.f32 %v896_v51, %v833_v56 }
  0xc5   : > { %v2412_v61 = vadd.f32 %v1090_v50, %v915_v60 }
  0xc6   : > { %v735_v62 = vpop.f32.mrf.mxu2 }
  0xc7   : > { %v752_v63 = vadd.f32 %v735_v62, %v547_v35 }
  0xc8   : > { %v817_v1 = vpop.f32.mrf.mxu3 }
  0xc9   : > { %v834_v2 = vadd.f32 %v817_v1, %v752_v63  ;;  %v1095_v3 = vpop.f32.mrf.mxu1 }
  0xcb   : > { %v901_v4 = vpop.f32.mrf.mxu0  ;;  %v916_v5 = vadd.f32 %v899_v58, %v834_v2 }
  0xcd   : > { %v2414_v6 = vadd.f32 %v1093_v57, %v916_v5 }
  0xce   : > { %v737_v7 = vpop.f32.mrf.mxu2 }
  0xcf   : > { %v753_v8 = vadd.f32 %v737_v7, %v549_v40 }
  0xd0   : > { %v819_v9 = vpop.f32.mrf.mxu3 }
  0xd1   : > { %v835_v10 = vadd.f32 %v819_v9, %v753_v8  ;;  %v1098_v11 = vpop.f32.mrf.mxu1 }
  0xd3   : > { %v904_v12 = vpop.f32.mrf.mxu0  ;;  %v917_v13 = vadd.f32 %v901_v4, %v835_v10 }
  0xd5   : > { %v2416_v0 = vadd.f32 %v1095_v3, %v917_v13 }
  0xd6   : > { %v740_v15 = vpop.f32.mrf.mxu2 }
  0xd7   : > { %v754_v16 = vadd.f32 %v740_v15, %v2395_v14 }
  0xd8   : > { %v822_v17 = vpop.f32.mrf.mxu3 }
  0xd9   : > { %v836_v46 = vadd.f32 %v822_v17, %v754_v16  ;;  %v1100_v18 = vpop.f32.mrf.mxu1 }
  0xdb   : > { %v906_v19 = vpop.f32.mrf.mxu0  ;;  %v918_v20 = vadd.f32 %v904_v12, %v836_v46 }
  0xdd   : > { %v2419_v21 = vadd.f32 %v1098_v11, %v918_v20 }
  0xde   : > { %v742_v23 = vpop.f32.mrf.mxu2 }
  0xdf   : > { %v755_v24 = vadd.f32 %v742_v23, %v554_v29 }
  0xe0   : > { %v824_v25 = vpop.f32.mrf.mxu3 }
  0xe1   : > { %v837_v26 = vadd.f32 %v824_v25, %v755_v24  ;;  %v1103_v27 = vpop.f32.mrf.mxu1 }
  0xe3   : > { %v909_v28 = vpop.f32.mrf.mxu0  ;;  %v919_v31 = vadd.f32 %v906_v19, %v837_v26 }
  0xe5   : > { %v2421_v32 = vadd.f32 %v1100_v18, %v919_v31 }
  0xe6   : > { %v745_v33 = vpop.f32.mrf.mxu2 }
  0xe7   : > { %v756_v34 = vadd.f32 %v745_v33, %v557_v37 }
  0xe8   : > { %v827_v14 = vpop.f32.mrf.mxu3 }
  0xe9   : > { %v838_v35 = vadd.f32 %v827_v14, %v756_v34  ;;  %v1105_v22 = vpop.f32.mrf.mxu1 }
  0xeb   : > { %v911_v36 = vpop.f32.mrf.mxu0  ;;  %v920_v38 = vadd.f32 %v909_v28, %v838_v35 }
  0xed   : > { %v2424_v39 = vadd.f32 %v1103_v27, %v920_v38 }
  0xee   : > { %v747_v40 = vpop.f32.mrf.mxu2 }
  0xef   : > { %v757_v29 = vadd.f32 %v747_v40, %v559_v43 }
  0xf0   : > { %v829_v41 = vpop.f32.mrf.mxu3 }
  0xf1   : > { %v839_v42 = vadd.f32 %v829_v41, %v757_v29  ;;  %v2426_v44 = vpop.f32.mrf.mxu1 }
  0xf3   : > { %v1448_v45 = vpop.f32.mrf.mxu0  ;;  %v921_v59 = vadd.f32 %v911_v36, %v839_v42 }
  0xf5   : > { %v2428_v47 = vadd.f32 %v1105_v22, %v921_v59 }
  0xf6   : > { %v1171_v37 = vpop.f32.mrf.mxu2 }
  0xf7   : > { %v1191_v51 = vadd.f32 %v1171_v37, %v2410_v52 }
  0xf8   : > { %v1254_v48 = vpop.f32.mrf.mxu3 }
  0xf9   : > { %v2435_v49 = vpop.f32.mrf.mxu1  ;;  %v1274_v53 = vadd.f32 %v1254_v48, %v1191_v51 }
  0xfa   : > { %v2039_v43 = vpack.c.bf16 %v2435_v49, %v2426_v44  ;;  %v1584_v26 = vadd.f32 %v2435_v49, %v2426_v44 }
  0xfb   : > { %v1450_v50 = vpop.f32.mrf.mxu0  ;;  %v2444_v60 = vadd.f32 %v1448_v45, %v1274_v53 }
  0xfc   : > { %2040 = vst [vmem:[%s2433_s25] sm:$0xff] %v2039_v43  }
  0xfe   : > { %v1173_v30 = vpop.f32.mrf.mxu2 }
  0xff   : > { %v1192_v54 = vadd.f32 %v1173_v30, %v2412_v61 }
 0x100   : > { %v1256_v55 = vpop.f32.mrf.mxu3 }
 0x101   : > { %v1275_v56 = vadd.f32 %v1256_v55, %v1192_v54  ;;  %v2442_v57 = vpop.f32.mrf.mxu1 }
 0x103   : > { %v1453_v58 = vpop.f32.mrf.mxu0  ;;  %v2446_v62 = vadd.f32 %v1450_v50, %v1275_v56 }
 0x105   : > { %v2019_v52 = vpack.c.bf16 %v2446_v62, %v2444_v60  ;;  %v1492_v11 = vadd.f32 %v2446_v62, %v2444_v60 }
 0x106   : > { %v1176_v61 = vpop.f32.mrf.mxu2 }
 0x107   : > { %2020 = vst [vmem:[%s2451_s30] sm:$0xff] %v2019_v52   ;;  %v1193_v63 = vadd.f32 %v1176_v61, %v2414_v6 }
 0x108   : > { %v1259_v1 = vpop.f32.mrf.mxu3 }
 0x109   : > { %v2457_v2 = vpop.f32.mrf.mxu1  ;;  %v1276_v5 = vadd.f32 %v1259_v1, %v1193_v63 }
 0x10a   : > { %v2044_v3 = vpack.c.bf16 %v2457_v2, %v2442_v57 }
 0x10b   : > { %v1455_v4 = vpop.f32.mrf.mxu0  ;;  %v2462_v8 = vadd.f32 %v1453_v58, %v1276_v5 }
 0x10c   : > { %2059 = vst [vmem:[%s2433_s25 + $0x8] sm:$0xff] %v2044_v3  }
 0x10d   : > { %v1493_v13 = vadd.f32 %v1492_v11, %v2462_v8 }
 0x10e   : > { %v1178_v7 = vpop.f32.mrf.mxu2 }
 0x10f   : > { %v1194_v9 = vadd.f32 %v1178_v7, %v2416_v0 }
 0x110   : > { %v1261_v10 = vpop.f32.mrf.mxu3 }
 0x111   : > { %v1277_v6 = vadd.f32 %v1261_v10, %v1194_v9  ;;  %v2467_v12 = vpop.f32.mrf.mxu1 }
 0x113   : > { %v2470_v15 = vadd.f32 %v1455_v4, %v1277_v6  ;;  %v1458_v16 = vpop.f32.mrf.mxu0 }
 0x115   : > { %v2024_v17 = vpack.c.bf16 %v2470_v15, %v2462_v8  ;;  %v1494_v46 = vadd.f32 %v1493_v13, %v2470_v15 }
 0x116   : > { %v1181_v18 = vpop.f32.mrf.mxu2 }
 0x117   : > { %2056 = vst [vmem:[%s2451_s30 + $0x8] sm:$0xff] %v2024_v17   ;;  %v1195_v0 = vadd.f32 %v1181_v18, %v2419_v21  ;;  %v1585_v21 = vadd.f32 %v1584_v26, %v2442_v57 }
 0x118   : > { %v1264_v19 = vpop.f32.mrf.mxu3 }
 0x119   : > { %v1278_v20 = vadd.f32 %v1264_v19, %v1195_v0  ;;  %v1560_v23 = vpop.f32.mrf.mxu1  ;;  %v1586_v22 = vadd.f32 %v1585_v21, %v2457_v2 }
 0x11a   : > { %v2049_v24 = vpack.c.bf16 %v1560_v23, %v2467_v12 }
 0x11b   : > { %v2478_v25 = vadd.f32 %v1458_v16, %v1278_v20  ;;  %v1460_v28 = vpop.f32.mrf.mxu0  ;;  %v1587_v38 = vadd.f32 %v1586_v22, %v2467_v12 }
 0x11c   : > { %2060 = vst [vmem:[%s2433_s25 + $0x10] sm:$0xff] %v2049_v24  }
 0x11d   : > { %v1495_v27 = vadd.f32 %v1494_v46, %v2478_v25  ;;  %v1588_v41 = vadd.f32 %v1587_v38, %v1560_v23 }
 0x11e   : > { %v1183_v31 = vpop.f32.mrf.mxu2 }
 0x11f   : > { %v1196_v33 = vadd.f32 %v1183_v31, %v2421_v32 }
 0x120   : > { %v1266_v34 = vpop.f32.mrf.mxu3 }
 0x121   : > { %v1279_v14 = vadd.f32 %v1266_v34, %v1196_v33  ;;  %v1563_v35 = vpop.f32.mrf.mxu1 }
 0x122   : > { %v1589_v59 = vadd.f32 %v1588_v41, %v1563_v35 }
 0x123   : > { %v2487_v36 = vadd.f32 %v1460_v28, %v1279_v14  ;;  %v1463_v37 = vpop.f32.mrf.mxu0 }
 0x125   : > { %v2029_v40 = vpack.c.bf16 %v2487_v36, %v2478_v25  ;;  %v1496_v29 = vadd.f32 %v1495_v27, %v2487_v36 }
 0x126   : > { %v1186_v42 = vpop.f32.mrf.mxu2 }
 0x127   : > { %2057 = vst [vmem:[%s2451_s30 + $0x10] sm:$0xff] %v2029_v40   ;;  %v1197_v32 = vadd.f32 %v1186_v42, %v2424_v39 }
 0x128   : > { %v1269_v45 = vpop.f32.mrf.mxu3 }
 0x129   : > { %v1280_v48 = vadd.f32 %v1269_v45, %v1197_v32  ;;  %v1565_v43 = vpop.f32.mrf.mxu1 }
 0x12a   : > { %v2054_v50 = vpack.c.bf16 %v1565_v43, %v1563_v35  ;;  %v1590_v51 = vadd.f32 %v1589_v59, %v1565_v43 }
 0x12b   : > { %v1474_v30 = vadd.f32 %v1463_v37, %v1280_v48  ;;  %v1465_v1 = vpop.f32.mrf.mxu0 }
 0x12c   : > { %2061 = vst [vmem:[%s2433_s25 + $0x18] sm:$0xff] %v2054_v50   ;;  %v1591_v53 = vrot.slane %v1590_v51, 4 }
 0x12d   : > { %v1497_v54 = vadd.f32 %v1496_v29, %v1474_v30 }
 0x12e   : > { %v1592_v55 = vadd.f32 %v1591_v53, %v1590_v51  ;;  %v1188_v56 = vpop.f32.mrf.mxu2 }
 0x12f   : > { %v1198_v58 = vadd.f32 %v1188_v56, %v2428_v47 }
 0x130   : > { %v1593_v52 = vrot.slane %v1592_v55, 2  ;;  %v1271_v61 = vpop.f32.mrf.mxu3 }
 0x131   : > { %v1281_v63 = vadd.f32 %v1271_v61, %v1198_v58 }
 0x132   : > { %v1594_v39 = vadd.f32 %v1593_v52, %v1592_v55 }
 0x133   : > { %v1475_v3 = vadd.f32 %v1465_v1, %v1281_v63 }
 0x134   : > { %v1595_v4 = vrot.slane %v1594_v39, 1 }
 0x135   : > { %v2034_v5 = vpack.c.bf16 %v1475_v3, %v1474_v30  ;;  %v1498_v7 = vadd.f32 %v1497_v54, %v1475_v3 }
 0x136   : > { %v1596_v9 = vadd.f32 %v1595_v4, %v1594_v39 }
 0x137   : > { %2058 = vst [vmem:[%s2451_s30 + $0x18] sm:$0xff] %v2034_v5   ;;  %v1499_v10 = vrot.slane %v1498_v7, 4 }
 0x138   : > { %v2498_v11 = vmul.f32 0.015625, %v1596_v9 }
 0x139   : > { %v1500_v16 = vadd.f32 %v1499_v10, %v1498_v7 }
 0x13a   : > { %v1598_v6 = vsub.f32 %v2426_v44, %v2498_v11  ;;  %v1599_v47 = vsub.f32 %v2435_v49, %v2498_v11  ;;  %v1600_v13 = vsub.f32 %v2442_v57, %v2498_v11  ;;  %v1601_v17 = vsub.f32 %v2457_v2, %v2498_v11 }
 0x13b   : > { %v1602_v0 = vsub.f32 %v2467_v12, %v2498_v11  ;;  %v1501_v24 = vrot.slane %v1500_v16, 2  ;;  %v1603_v44 = vsub.f32 %v1560_v23, %v2498_v11  ;;  %v1604_v33 = vsub.f32 %v1563_v35, %v2498_v11 }
 0x13c   : > { %v1606_v46 = vmul.f32 %v1598_v6, %v1598_v6  ;;  %v1607_v18 = vmul.f32 %v1599_v47, %v1599_v47  ;;  %v1608_v19 = vmul.f32 %v1600_v13, %v1600_v13  ;;  %v1609_v26 = vmul.f32 %v1601_v17, %v1601_v17 }
 0x13d   : > { %v1502_v49 = vadd.f32 %v1501_v24, %v1500_v16  ;;  %v1610_v28 = vmul.f32 %v1602_v0, %v1602_v0  ;;  %v1611_v34 = vmul.f32 %v1603_v44, %v1603_v44  ;;  %v1605_v12 = vsub.f32 %v1565_v43, %v2498_v11 }
 0x13e   : > { %v1614_v20 = vadd.f32 %v1607_v18, %v1606_v46  ;;  %v1612_v38 = vmul.f32 %v1604_v33, %v1604_v33 }
 0x13f   : > { %v1503_v57 = vrot.slane %v1502_v49, 1  ;;  %v1613_v50 = vmul.f32 %v1605_v12, %v1605_v12 }
 0x140   : > { %v1615_v27 = vadd.f32 %v1614_v20, %v1608_v19 }
 0x141   : > { %v1504_v21 = vadd.f32 %v1503_v57, %v1502_v49 }
 0x142   : > { %v1616_v31 = vadd.f32 %v1615_v27, %v1609_v26 }
 0x143   : > { %v1505_v22 = vmul.f32 0.015625, %v1504_v21 }
 0x144   : > { %v1617_v2 = vadd.f32 %v1616_v31, %v1610_v28 }
 0x145   : > { %v1506_v40 = vsub.f32 %v2444_v60, %v1505_v22  ;;  %v1507_v23 = vsub.f32 %v2446_v62, %v1505_v22  ;;  %v1508_v29 = vsub.f32 %v2462_v8, %v1505_v22  ;;  %v1509_v41 = vsub.f32 %v2470_v15, %v1505_v22 }
 0x146   : > { %v1618_v14 = vadd.f32 %v1617_v2, %v1611_v34  ;;  %v1510_v42 = vsub.f32 %v2478_v25, %v1505_v22  ;;  %v1511_v35 = vsub.f32 %v2487_v36, %v1505_v22  ;;  %v1512_v32 = vsub.f32 %v1474_v30, %v1505_v22 }
 0x147   : > { %v1513_v59 = vsub.f32 %v1475_v3, %v1505_v22  ;;  %v1514_v37 = vmul.f32 %v1506_v40, %v1506_v40  ;;  %v1515_v48 = vmul.f32 %v1507_v23, %v1507_v23  ;;  %v1516_v43 = vmul.f32 %v1508_v29, %v1508_v29 }
 0x148   : > { %v1619_v45 = vadd.f32 %v1618_v14, %v1612_v38  ;;  %v1517_v60 = vmul.f32 %v1509_v41, %v1509_v41  ;;  %v1518_v54 = vmul.f32 %v1510_v42, %v1510_v42  ;;  %v1519_v55 = vmul.f32 %v1511_v35, %v1511_v35 }
 0x149   : > { %v1522_v51 = vadd.f32 %v1515_v48, %v1514_v37  ;;  %v1520_v56 = vmul.f32 %v1512_v32, %v1512_v32  ;;  %v1521_v58 = vmul.f32 %v1513_v59, %v1513_v59 }
 0x14a   : > { %v1620_v53 = vadd.f32 %v1619_v45, %v1613_v50 }
 0x14b   : > { %v1523_v62 = vadd.f32 %v1522_v51, %v1516_v43 }
 0x14c   : > { %v1621_v15 = vrot.slane %v1620_v53, 4 }
 0x14d   : > { %v1524_v8 = vadd.f32 %v1523_v62, %v1517_v60 }
 0x14e   : > { %v1622_v30 = vadd.f32 %v1621_v15, %v1620_v53 }
 0x14f   : > { %v1525_v25 = vadd.f32 %v1524_v8, %v1518_v54 }
 0x150   : > { %v1623_v63 = vrot.slane %v1622_v30, 2 }
 0x151   : > { %v1526_v36 = vadd.f32 %v1525_v25, %v1519_v55 }
 0x152   : > { %v1624_v3 = vadd.f32 %v1623_v63, %v1622_v30 }
 0x153   : > { %v1527_v52 = vadd.f32 %v1526_v36, %v1520_v56 }
 0x154   : > { %v1625_v7 = vrot.slane %v1624_v3, 1 }
 0x155   : > { %v1528_v61 = vadd.f32 %v1527_v52, %v1521_v58 }
 0x156   : > { %v1626_v6 = vadd.f32 %v1625_v7, %v1624_v3 }
 0x157   : > { %v1529_v39 = vrot.slane %v1528_v61, 4 }
 0x159   : > { %v1530_v1 = vadd.f32 %v1529_v39, %v1528_v61 }
 0x15b   : > { %v1531_v4 = vrot.slane %v1530_v1, 2 }
 0x15d   : > { %v1532_v5 = vadd.f32 %v1531_v4, %v1530_v1 }
 0x15f   : > { %v1533_v9 = vrot.slane %v1532_v5, 1 }
 0x161   : > { %v1534_v10 = vadd.f32 %v1533_v9, %v1532_v5 }
 0x163   : > { %v1628_v47 = vsel %vm1627_vm5, %v1505_v22, %v1534_v10 }
 0x164   : > { %v1630_v13 = vsel %vm1629_vm6, %v1628_v47, %v2498_v11 }
 0x165   : > { %v1632_v16 = vsel %vm1631_vm7, %v1630_v13, %v1626_v6 }
 0x166   : > { %v1633_v17 = vsel %vm464_vm0, %v1632_v16, 0.0 }
 0x167   : > { %1634 = vst [vmem:[%s410_s12] sm:$0xff] %v1633_v17 }
 0x168 PF: > { %s19_s27 = sadd.s32 1, %s2078_s27  }
 0x169   : > { %p16_p6 = scmp.ge.s32.totalorder %s19_s27, 4  }
 0x16b   :  { %18 = sbr.rel (!%p16_p6) target bundleno = 1 (0x1), region = 117 }

// kernel: basic_block_forward.4
= control target key start
LH: loop header
LB: loop body
LE: loop exit
PB: predicated region body
PF: predicated region fallthrough
CT: control target
= control target key end

     0   :  { %s2346_s18 = smov 0   ;;  %s2988_s0 = inlined_call_operand.vmem [shape: bf16[128,128], index: 0, kind: input, shape index: {}]   ;;  %s2989_s1 = inlined_call_operand.vmem [shape: f32[1,128], index: 1, kind: input, shape index: {}]   ;;  %s2990_s2 = inlined_call_operand.vmem [shape: f32[1,128], index: 2, kind: input, shape index: {}]   ;;  %s2991_s3 = inlined_call_operand.vmem [shape: bf16[9,128,128], index: 3, kind: input, shape index: {}]   ;;  %s2992_s4 = inlined_call_operand.vmem [shape: bf16[128,128], index: 4, kind: output, shape index: {0}]   ;;  %s2993_s5 = inlined_call_operand.vmem [shape: f32[2,8,128], index: 5, kind: output, shape index: {1}]  }
   0x1 LB: > { %s2352_s19 = sadd.s32 4294967295, %s2313_s18   ;;  %p1733_p0 = scmp.ge.s32.totalorder %s2313_s18, 1  ;;  %s2313_s18 = sphi %s2346_s18, %s16_s18  }
   0x2   : > { %p191_p1 = scmp.lt.s32.totalorder %s2313_s18, 3 }
   0x4   : > { %p192_p2 = pnand %p1733_p0, %p191_p1 }
   0x5   : > { %s1734_s22 = sshll.u32 (!%p192_p2), %s2352_s19, 3  ;;  %p235_p4 = scmp.lt.s32.totalorder (!%p192_p2), %s2352_s19, 1 }
   0x6   : > { %195 = sbr.rel (%p192_p2) target bundleno = 393 (0x189), region = 36  ;;  %p224_p3 = scmp.lt.s32.totalorder (!%p192_p2), %s1734_s22, 15 }
   0xb   : > { %v2181_v0 = vld [vmem:[%s2991_s3 + $0x78] sm:$0xff]  ;;  %v2180_v2 = vld [vmem:[%s2991_s3 + $0x70] sm:$0xff]  ;;  %s3003_s22 = smov (!%p224_p3, %s1734_s22), 15  ;;  %v2179_v5 = vld [vmem:[%s2991_s3 + $0x68] sm:$0xff]  ;;  %vm368_vm0 = vcmask 1040384   ;;  %vm380_vm2 = vcmask 1044480  }
   0xc   : > { %v2189_v1 = vld [vmem:[%s2991_s3 + $0xb8] sm:$0xff]  ;;  %2280 = vmatpush.bf16.msra.mxu1 %v2181_v0  ;;  %644 = vmatpush.bf16.msra.mxu0 %v2181_v0  ;;  %v2188_v3 = vld [vmem:[%s2991_s3 + $0xb0] sm:$0xff]  ;;  %vm369_vm1 = vsmask.f32 256  ;;  %v2315_v6 = vmov 0   ;;  %v2187_v8 = vld [vmem:[%s2991_s3 + $0xa8] sm:$0xff] }
   0xd   : > { %874 = vmatpush.bf16.msra.mxu2 %v2189_v1  ;;  %v2197_v4 = vld [vmem:[%s2991_s3 + $0xf8] sm:$0xff]  ;;  %v299_v7 = vrot.slane %v2315_v6, 7  ;;  %v2196_v9 = vld [vmem:[%s2991_s3 + $0xf0] sm:$0xff]  ;;  %s1735_s12 = sshll.u32 %s3003_s22, 2  ;;  %vm381_vm3 = vsmask.f32 4352  ;;  %vm2403_vm4 = vmand %vm368_vm0, %vm369_vm1 }
   0xe   : > { %986 = vmatpush.bf16.msra.mxu3 %v2197_v4  ;;  %s227_s15 = scalar_lea.vmem %s2988_s0, %s1735_s12  ;;  %v2392_v10 = vld [vmem:[%s2989_s1] ss:$0 sm:$0xff]  ;;  %vm2409_vm5 = vmand %vm380_vm2, %vm381_vm3  ;;  %v2195_v22 = vld [vmem:[%s2991_s3 + $0xe8] sm:$0xff]  ;;  %vm448_vm6 = vsmask.f32 3328  ;;  %vm758_vm8 = vcmask 1042432   ;;  %s2960_s27 = scalar_lea.vmem %s2992_s4, %s1735_s12 }
   0xf   : > { %v2397_v11 = vld [vmem:[%s2990_s2] ss:$0 sm:$0xff]  ;;  %v2399_v12 = vld [vmem:[%s227_s15 + $0x8] sm:$0xff]   ;;  %v2275_v13 = vld [vmem:[%s227_s15 + $0x10] sm:$0xff]   ;;  %v371_v19 = vsel %vm2403_vm4, 0, %v299_v7  ;;  %vm759_vm9 = vcmask 1046532  }
  0x10   : > { %2281 = vmatpush.bf16.msra.mxu1 %v2180_v2  ;;  %645 = vmatpush.bf16.msra.mxu0 %v2180_v2  ;;  %v2245_v15 = vunpack.c.h.bf16 %v2399_v12  ;;  %v2248_v16 = vunpack.c.l.bf16 %v2275_v13  ;;  %v2413_v18 = vld [vmem:[%s227_s15] sm:$0xff]   ;;  %v2276_v20 = vld [vmem:[%s227_s15 + $0x18] sm:$0xff]   ;;  %v2249_v21 = vunpack.c.h.bf16 %v2275_v13  ;;  %v383_v24 = vsel %vm2409_vm5, %v371_v19, 0  ;;  %vm2461_vm10 = vmor %vm758_vm8, %vm759_vm9  ;;  %s3005_s19 = smov (!%p235_p4, %s2352_s19), 1 }
  0x11   : > { %875 = vmatpush.bf16.msra.mxu2 %v2188_v3  ;;  %v2240_v23 = vunpack.c.l.bf16 %v2413_v18  ;;  %v2252_v25 = vunpack.c.l.bf16 %v2276_v20  ;;  %v2241_v26 = vunpack.c.h.bf16 %v2413_v18  ;;  %v2178_v27 = vld [vmem:[%s2991_s3 + $0x60] sm:$0xff]  ;;  %v2429_v30 = vunpack.c.l.b16 %v383_v24  ;;  %v2177_v44 = vld [vmem:[%s2991_s3 + $0x58] sm:$0xff]  ;;  %v2176_v0 = vld [vmem:[%s2991_s3 + $0x50] sm:$0xff]  ;;  %s1738_s22 = sshll.u32 %s3005_s19, 3 }
  0x12   : > { %987 = vmatpush.bf16.msra.mxu3 %v2196_v9  ;;  %v263_v28 = vmul.f32 %v2392_v10, %v2245_v15  ;;  %v264_v29 = vmul.f32 %v2392_v10, %v2248_v16  ;;  %v417_v31 = vunpack.c.h.b16 %v383_v24  ;;  %v2186_v32 = vld [vmem:[%s2991_s3 + $0xa0] sm:$0xff]  ;;  %vm449_vm7 = vsmask.f32 7440  ;;  %v2185_v49 = vld [vmem:[%s2991_s3 + $0x98] sm:$0xff]  ;;  %v2192_v24 = vld [vmem:[%s2991_s3 + $0xd0] sm:$0xff]  ;;  %s238_s29 = scalar_lea.vmem %s2993_s5, %s1738_s22 }
  0x13   : > { %v260_v33 = vmul.f32 %v2392_v10, %v2240_v23  ;;  %v265_v34 = vmul.f32 %v2392_v10, %v2249_v21  ;;  %v266_v35 = vmul.f32 %v2392_v10, %v2252_v25  ;;  %v2244_v36 = vunpack.c.l.bf16 %v2399_v12  ;;  %v2194_v41 = vld [vmem:[%s2991_s3 + $0xe0] sm:$0xff]  ;;  %v2193_v60 = vld [vmem:[%s2991_s3 + $0xd8] sm:$0xff]  ;;  %v2175_v25 = vld [vmem:[%s2991_s3 + $0x48] sm:$0xff] }
  0x14   : > { %2282 = vmatpush.bf16.msra.mxu1 %v2179_v5  ;;  %646 = vmatpush.bf16.msra.mxu0 %v2179_v5  ;;  %v275_v37 = vadd.f32 %v2397_v11, %v263_v28  ;;  %v276_v38 = vadd.f32 %v2397_v11, %v264_v29  ;;  %v432_v39 = vpack.c.b16 %v2429_v30, %v2429_v30  ;;  %v2253_v52 = vunpack.c.h.bf16 %v2276_v20  ;;  %v2184_v5 = vld [vmem:[%s2991_s3 + $0x90] sm:$0xff]  ;;  %vm2486_vm11 = vmor %vm448_vm6, %vm449_vm7 }
  0x15   : > { %876 = vmatpush.bf16.msra.mxu2 %v2187_v8  ;;  %v433_v40 = vpack.c.b16 %v417_v31, %v417_v31  ;;  %v272_v42 = vadd.f32 %v2397_v11, %v260_v33  ;;  %v2447_v43 = vadd.f32 %v2397_v11, %v265_v34  ;;  %v278_v19 = vadd.f32 %v2397_v11, %v266_v35  ;;  %v2183_v33 = vld [vmem:[%s2991_s3 + $0x88] sm:$0xff]  ;;  %v2232_v29 = vld [vmem:[%s2991_s3 + $0x210] sm:$0xff] }
  0x16   : > { %988 = vmatpush.bf16.msra.mxu3 %v2195_v22  ;;  %v283_v45 = vmax.f32 %v275_v37, 0.0  ;;  %v284_v46 = vmax.f32 %v276_v38, 0.0  ;;  %v452_v47 = vshrl.u32 %v432_v39, 16  ;;  %v455_v48 = vshll.u32 %v432_v39, 16 }
  0x17   : > { %v280_v50 = vmax.f32 %v272_v42, 0.0  ;;  %v461_v51 = vshll.u32 %v433_v40, 16  ;;  %v1819_v53 = vrot.slane %v432_v39, 9  ;;  %v267_v61 = vmul.f32 %v2392_v10, %v2253_v52  ;;  %v2182_v52 = vld [vmem:[%s2991_s3 + $0x80] sm:$0xff] }
  0x18   : > { %2283 = vmatpush.bf16.msra.mxu1 %v2178_v27  ;;  %647 = vmatpush.bf16.msra.mxu0 %v2178_v27  ;;  %v291_v54 = vpack.c.bf16 %v283_v45, %v283_v45  ;;  %v292_v55 = vpack.c.bf16 %v284_v46, %v284_v46  ;;  %v454_v56 = vrot.slane %v452_v47, 4  ;;  %v457_v57 = vrot.slane %v455_v48, 5  ;;  %v2191_v45 = vld [vmem:[%s2991_s3 + $0xc8] sm:$0xff]  ;;  %v2174_v46 = vld [vmem:[%s2991_s3 + $0x40] sm:$0xff] }
  0x19   : > { %877 = vmatpush.bf16.msra.mxu2 %v2186_v32  ;;  %v288_v58 = vpack.c.bf16 %v280_v50, %v280_v50  ;;  %v463_v59 = vrot.slane %v461_v51, 5  ;;  %v763_v63 = vrot.slane %v433_v40, 5  ;;  %v279_v9 = vadd.f32 %v2397_v11, %v267_v61  ;;  %v2173_v51 = vld [vmem:[%s2991_s3 + $0x38] sm:$0xff] }
  0x1a   : > { %989 = vmatpush.bf16.msra.mxu3 %v2194_v41  ;;  %v325_v1 = vshrl.u32 %v291_v54, 16  ;;  %v328_v2 = vshll.u32 %v291_v54, 16  ;;  %v332_v3 = vshrl.u32 %v292_v55, 16  ;;  %v335_v4 = vshll.u32 %v292_v55, 16  ;;  %v2205_v61 = vld [vmem:[%s2991_s3 + $0x138] sm:$0xff] }
  0x1b   : > { %v304_v6 = vshrl.u32 %v288_v58, 16  ;;  %v307_v7 = vshll.u32 %v288_v58, 16  ;;  %v458_v8 = vor.u32 %v457_v57, %v454_v56  ;;  %v2474_v16 = vsel %vm2461_vm10, %v1819_v53, %v763_v63 }
  0x1c   : > { %2284 = vmatpush.bf16.msra.mxu1 %v2177_v44  ;;  %648 = vmatpush.bf16.msra.mxu0 %v2177_v44  ;;  %v327_v13 = vrot.slane %v325_v1, 7  ;;  %v334_v15 = vrot.slane %v332_v3, 7  ;;  %v287_v22 = vmax.f32 %v279_v9, 0.0  ;;  %v810_v23 = vunpack.c.l.b16 %v2474_v16  ;;  %v2172_v9 = vld [vmem:[%s2991_s3 + $0x30] sm:$0xff] }
  0x1d   : > { %878 = vmatpush.bf16.msra.mxu2 %v2185_v49  ;;  %v306_v20 = vrot.slane %v304_v6, 7  ;;  %v459_v21 = vrot.slane %v458_v8, 4  ;;  %v285_v31 = vmax.f32 %v2447_v43, 0.0  ;;  %v286_v32 = vmax.f32 %v278_v19, 0.0 }
  0x1e   : > { %990 = vmatpush.bf16.msra.mxu3 %v2193_v60  ;;  %v330_v27 = vor.u32 %v328_v2, %v327_v13  ;;  %v337_v28 = vor.u32 %v335_v4, %v334_v15  ;;  %v295_v37 = vpack.c.bf16 %v287_v22, %v287_v22  ;;  %v2499_v38 = vmul.f32 %v2392_v10, %v2241_v26 }
  0x1f   : > { %v309_v34 = vor.u32 %v307_v7, %v306_v20  ;;  %v464_v35 = vsel %vm2486_vm11, %v459_v21, %v463_v59  ;;  %v2507_v42 = vpack.c.bf16 %v285_v31, %v285_v31  ;;  %v2533_v56 = vpack.c.bf16 %v286_v32, %v286_v32 }
  0x20   : > { %2285 = vmatpush.bf16.msra.mxu1 %v2176_v0  ;;  %649 = vmatpush.bf16.msra.mxu0 %v2176_v0  ;;  %v375_v39 = vsel %vm2403_vm4, 0, %v330_v27  ;;  %v376_v40 = vsel %vm2403_vm4, 0, %v337_v28  ;;  %v2505_v41 = vunpack.c.l.b16 %v464_v35  ;;  %v353_v26 = vshrl.u32 %v295_v37, 16 }
  0x21   : > { %879 = vmatpush.bf16.msra.mxu2 %v2184_v5  ;;  %v387_v43 = vsel %vm2409_vm5, %v375_v39, 0  ;;  %v388_v44 = vsel %vm2409_vm5, %v376_v40, 0  ;;  %v372_v18 = vsel %vm2403_vm4, 0, %v309_v34  ;;  %v356_v55 = vshll.u32 %v295_v37, 16  ;;  %v2221_v37 = vld [vmem:[%s2991_s3 + $0x1b8] sm:$0xff]  ;;  %v2190_v39 = vld [vmem:[%s2991_s3 + $0xc0] sm:$0xff] }
  0x22   : > { %991 = vmatpush.bf16.msra.mxu3 %v2192_v24  ;;  %v2521_v47 = vunpack.c.l.b16 %v387_v43  ;;  %v425_v48 = vunpack.c.h.b16 %v387_v43  ;;  %v2523_v49 = vunpack.c.l.b16 %v388_v44  ;;  %v427_v50 = vunpack.c.h.b16 %v388_v44  ;;  %v2204_v24 = vld [vmem:[%s2991_s3 + $0x130] sm:$0xff] }
  0x23   : > { %v384_v53 = vsel %vm2409_vm5, %v372_v18, 0  ;;  %v355_v54 = vrot.slane %v353_v26, 7  ;;  %v339_v2 = vshrl.u32 %v2507_v42, 16  ;;  %v2171_v18 = vld [vmem:[%s2991_s3 + $0x28] sm:$0xff]  ;;  %vm1639_vm12 = vcmask 1041408  }
  0x24   : > { %2286 = vmatpush.bf16.msra.mxu1 %v2175_v25  ;;  %650 = vmatpush.bf16.msra.mxu0 %v2175_v25  ;;  %v2537_v57 = vpack.c.b16 %v2521_v47, %v2521_v47  ;;  %v2539_v58 = vpack.c.b16 %v425_v48, %v425_v48  ;;  %v2543_v59 = vpack.c.b16 %v2523_v49, %v2523_v49  ;;  %v2550_v63 = vunpack.c.l.b16 %v384_v53 }
  0x25   : > { %880 = vmatpush.bf16.msra.mxu2 %v2183_v33  ;;  %v2545_v60 = vpack.c.b16 %v427_v50, %v427_v50  ;;  %v419_v0 = vunpack.c.h.b16 %v384_v53  ;;  %v358_v1 = vor.u32 %v356_v55, %v355_v54  ;;  %v341_v55 = vrot.slane %v339_v2, 7 }
  0x26   : > { %992 = vmatpush.bf16.msra.mxu3 %v2191_v45  ;;  %v508_v3 = vshrl.u32 %v2537_v57, 16  ;;  %v511_v4 = vshll.u32 %v2537_v57, 16  ;;  %v517_v5 = vshll.u32 %v2539_v58, 16  ;;  %v522_v6 = vshrl.u32 %v2543_v59, 16 }
  0x27   : > { %v525_v7 = vshll.u32 %v2543_v59, 16  ;;  %v531_v8 = vshll.u32 %v2545_v60, 16  ;;  %v434_v13 = vpack.c.b16 %v2550_v63, %v2550_v63  ;;  %v435_v15 = vpack.c.b16 %v419_v0, %v419_v0 }
  0x28   : > { %2287 = vmatpush.bf16.msra.mxu1 %v2174_v46  ;;  %651 = vmatpush.bf16.msra.mxu0 %v2174_v46  ;;  %v510_v19 = vrot.slane %v508_v3, 4  ;;  %v513_v20 = vrot.slane %v511_v4, 5  ;;  %v519_v21 = vrot.slane %v517_v5, 5  ;;  %v524_v22 = vrot.slane %v522_v6, 4 }
  0x29   : > { %881 = vmatpush.bf16.msra.mxu2 %v2182_v52  ;;  %v527_v25 = vrot.slane %v525_v7, 5  ;;  %v533_v27 = vrot.slane %v531_v8, 5  ;;  %v466_v28 = vshrl.u32 %v434_v13, 16  ;;  %v469_v31 = vshll.u32 %v434_v13, 16  ;;  %v2170_v7 = vld [vmem:[%s2991_s3 + $0x20] sm:$0xff] }
  0x2a   : > { %v514_v32 = vor.u32 %v513_v20, %v510_v19  ;;  %v475_v33 = vshll.u32 %v435_v15, 16  ;;  %v379_v34 = vsel %vm2403_vm4, 0, %v358_v1  ;;  %v1820_v35 = vrot.slane %v434_v13, 9  ;;  %993 = vmatpush.bf16.msra.mxu3 %v2190_v39 }
  0x2b   : > { %v528_v40 = vor.u32 %v527_v25, %v524_v22  ;;  %v468_v43 = vrot.slane %v466_v28, 4  ;;  %v471_v44 = vrot.slane %v469_v31, 5  ;;  %v391_v26 = vsel %vm2409_vm5, %v379_v34, 0 }
  0x2c   : > { %729 = vmatpush.bf16.msrb.mxu1 %v2173_v51  ;;  %1114 = vmatpush.bf16.msrb.mxu0 %v2205_v61  ;;  %v515_v45 = vrot.slane %v514_v32, 4  ;;  %v477_v46 = vrot.slane %v475_v33, 5  ;;  %v767_v48 = vrot.slane %v435_v15, 5  ;;  %v2580_v50 = vunpack.c.l.b16 %v391_v26  ;;  %v2203_v51 = vld [vmem:[%s2991_s3 + $0x128] sm:$0xff]  ;;  %v2202_v15 = vld [vmem:[%s2991_s3 + $0x120] sm:$0xff] }
  0x2d   : > { %1333 = vmatpush.bf16.msrb.mxu2 %v2221_v37  ;;  %v529_v52 = vrot.slane %v528_v40, 4  ;;  %v472_v53 = vor.u32 %v471_v44, %v468_v43  ;;  %v1023_v54 = vunpack.c.h.b16 %v391_v26  ;;  %v342_v3 = vshll.u32 %v2507_v42, 16  ;;  %v2220_v44 = vld [vmem:[%s2991_s3 + $0x1b0] sm:$0xff] }
  0x2e   : > { %v520_v61 = vsel %vm2486_vm11, %v515_v45, %v519_v21  ;;  %v2589_v0 = vsel %vm2461_vm10, %v1820_v35, %v767_v48  ;;  %v2593_v1 = vpack.c.b16 %v2580_v50, %v2580_v50  ;;  %v346_v21 = vshrl.u32 %v2533_v56, 16  ;;  %v2229_v45 = vld [vmem:[%s2991_s3 + $0x1f8] sm:$0xff]  ;;  %v2168_v48 = vld [vmem:[%s2991_s3 + $0x10] sm:$0xff] }
  0x2f   : > { %v534_v4 = vsel %vm2486_vm11, %v529_v52, %v533_v27  ;;  %v2598_v5 = vunpack.c.l.b16 %v520_v61  ;;  %v473_v2 = vrot.slane %v472_v53, 4  ;;  %v811_v6 = vunpack.c.l.b16 %v2589_v0  ;;  %1437 = vmatpush.bf16.msrb.mxu3 %v2229_v45  ;;  %v2166_v45 = vld [vmem:[%s2991_s3] sm:$0xff] }
  0x30   : > { %730 = vmatpush.bf16.msrb.mxu1 %v2172_v9  ;;  %1115 = vmatpush.bf16.msrb.mxu0 %v2204_v24  ;;  %v2604_v8 = vunpack.c.l.b16 %v534_v4  ;;  %v2606_v9 = vpack.c.b16 %v1023_v54, %v1023_v54  ;;  %v1971_v13 = vrot.slane %v2593_v1, 9  ;;  %v344_v42 = vor.u32 %v342_v3, %v341_v55  ;;  %v2200_v55 = vld [vmem:[%s2991_s3 + $0x110] sm:$0xff] }
  0x31   : > { %v478_v19 = vsel %vm2486_vm11, %v473_v2, %v477_v46  ;;  %v818_v20 = vpack.c.b16 %v811_v6, %v810_v23  ;;  %v349_v22 = vshll.u32 %v2533_v56, 16  ;;  %v348_v31 = vrot.slane %v346_v21, 7  ;;  %v2169_v56 = vld [vmem:[%s2991_s3 + $0x18] sm:$0xff]  ;;  %1334 = vmatpush.bf16.msrb.mxu2 %v2220_v44 }
  0x32   : > { %v2622_v24 = vpack.c.b16 %v2604_v8, %v2598_v5  ;;  %v2624_v25 = vunpack.c.l.b16 %v478_v19  ;;  %v1153_v27 = vrot.slane %v2606_v9, 5  ;;  %v377_v28 = vsel %vm2403_vm4, 0, %v344_v42 }
  0x33   : > { %882 = vmatmul.bf16.vlgmr.msra.gmra.mxu2 %v818_v20  ;;  %v389_v32 = vsel %vm2409_vm5, %v377_v28, 0  ;;  %v262_v33 = vmul.f32 %v2392_v10, %v2244_v36  ;;  %v273_v34 = vadd.f32 %v2397_v11, %v2499_v38  ;;  %v2201_v10 = vld [vmem:[%s2991_s3 + $0x118] sm:$0xff]  ;;  %v351_v36 = vor.u32 %v349_v22, %v348_v31 }
  0x34   : > { %731 = vmatpush.bf16.msrb.mxu1 %v2171_v18  ;;  %1116 = vmatpush.bf16.msrb.mxu0 %v2203_v51  ;;  %v588_v35 = vpack.c.b16 %v2624_v25, %v2505_v41  ;;  %v2644_v37 = vsel %vm2461_vm10, %v1971_v13, %v1153_v27  ;;  %v2646_v39 = vunpack.c.l.b16 %v389_v32  ;;  %v429_v40 = vunpack.c.h.b16 %v389_v32  ;;  %v2167_v27 = vld [vmem:[%s2991_s3 + $0x8] sm:$0xff] }
  0x35   : > { %662 = vmatmul.bf16.vlgmr.msra.gmra.mxu1 %v2622_v24  ;;  %v1172_v12 = vunpack.c.l.b16 %v2644_v37  ;;  %v274_v38 = vadd.f32 %v2397_v11, %v262_v33  ;;  %v281_v43 = vmax.f32 %v273_v34, 0.0  ;;  %v378_v46 = vsel %vm2403_vm4, 0, %v351_v36 }
  0x36   : > { %652 = vmatmul.bf16.vlgmr.msra.gmra.mxu0 %v588_v35  ;;  %v2658_v18 = vpack.c.b16 %v2646_v39, %v2646_v39  ;;  %v2660_v26 = vpack.c.b16 %v429_v40, %v429_v40  ;;  %v390_v53 = vsel %vm2409_vm5, %v378_v46, 0  ;;  %v1823_v0 = vrot.slane %v2537_v57, 9 }
  0x37   : > { %v2669_v11 = vpack.c.b16 %v810_v23, %v1172_v12  ;;  %v282_v51 = vmax.f32 %v274_v38, 0.0  ;;  %v289_v52 = vpack.c.bf16 %v281_v43, %v281_v43  ;;  %v2684_v61 = vunpack.c.l.b16 %v390_v53 }
  0x38   : > { %732 = vmatpush.bf16.msrb.mxu1 %v2170_v7  ;;  %1117 = vmatpush.bf16.msrb.mxu0 %v2202_v15  ;;  %v536_v54 = vshrl.u32 %v2658_v18, 16  ;;  %v539_v16 = vshll.u32 %v2658_v18, 16  ;;  %v545_v23 = vshll.u32 %v2660_v26, 16  ;;  %v431_v3 = vunpack.c.h.b16 %v390_v53  ;;  %v2219_v15 = vld [vmem:[%s2991_s3 + $0x1a8] sm:$0xff]  ;;  %v2198_v53 = vld [vmem:[%s2991_s3 + $0x100] sm:$0xff] }
  0x39   : > { %v290_v4 = vpack.c.bf16 %v282_v51, %v282_v51  ;;  %v311_v2 = vshrl.u32 %v289_v52, 16  ;;  %v314_v42 = vshll.u32 %v289_v52, 16  ;;  %v2691_v19 = vpack.c.b16 %v2684_v61, %v2684_v61  ;;  %1335 = vmatpush.bf16.msrb.mxu2 %v2219_v15  ;;  %v2213_v52 = vld [vmem:[%s2991_s3 + $0x178] sm:$0xff] }
  0x3a   : > { %v538_v7 = vrot.slane %v536_v54, 4  ;;  %v541_v13 = vrot.slane %v539_v16, 5  ;;  %v2693_v20 = vpack.c.b16 %v431_v3, %v431_v3  ;;  %v547_v31 = vrot.slane %v545_v23, 5 }
  0x3b   : > { %v313_v21 = vrot.slane %v311_v2, 7  ;;  %v318_v22 = vshrl.u32 %v290_v4, 16  ;;  %v321_v32 = vshll.u32 %v290_v4, 16  ;;  %v550_v33 = vshrl.u32 %v2691_v19, 16 }
  0x3c   : > { %733 = vmatpush.bf16.msrb.mxu1 %v2169_v56  ;;  %1118 = vmatpush.bf16.msrb.mxu0 %v2201_v10  ;;  %v542_v28 = vor.u32 %v541_v13, %v538_v7  ;;  %v2199_v56 = vld [vmem:[%s2991_s3 + $0x108] sm:$0xff]  ;;  %v553_v34 = vshll.u32 %v2691_v19, 16  ;;  %v559_v35 = vshll.u32 %v2693_v20, 16 }
  0x3d   : > { %v316_v40 = vor.u32 %v314_v42, %v313_v21  ;;  %v320_v36 = vrot.slane %v318_v22, 7  ;;  %v552_v38 = vrot.slane %v550_v33, 4 }
  0x3e   : > { %v543_v10 = vrot.slane %v542_v28, 4  ;;  %v555_v43 = vrot.slane %v553_v34, 5  ;;  %v561_v46 = vrot.slane %v559_v35, 5 }
  0x3f   : > { %v373_v44 = vsel %vm2403_vm4, 0, %v316_v40 }
  0x40   : > { %734 = vmatpush.bf16.msrb.mxu1 %v2168_v48  ;;  %1119 = vmatpush.bf16.msrb.mxu0 %v2200_v55  ;;  %v323_v48 = vor.u32 %v321_v32, %v320_v36  ;;  %v385_v51 = vsel %vm2409_vm5, %v373_v44, 0  ;;  %v548_v54 = vsel %vm2486_vm11, %v543_v10, %v547_v31  ;;  %v556_v16 = vor.u32 %v555_v43, %v552_v38  ;;  %v2228_v31 = vld [vmem:[%s2991_s3 + $0x1f0] sm:$0xff]  ;;  %v2227_v44 = vld [vmem:[%s2991_s3 + $0x1e8] sm:$0xff] }
  0x41   : > { %v2719_v23 = vunpack.c.l.b16 %v385_v51  ;;  %v421_v55 = vunpack.c.h.b16 %v385_v51  ;;  %v2727_v42 = vunpack.c.l.b16 %v548_v54  ;;  %v2212_v32 = vld [vmem:[%s2991_s3 + $0x170] sm:$0xff]  ;;  %1438 = vmatpush.bf16.msrb.mxu3 %v2228_v31 }
  0x42   : > { %v374_v3 = vsel %vm2403_vm4, 0, %v323_v48  ;;  %v557_v4 = vrot.slane %v556_v16, 4 }
  0x43   : > { %v386_v2 = vsel %vm2409_vm5, %v374_v3, 0  ;;  %v436_v7 = vpack.c.b16 %v2719_v23, %v2719_v23  ;;  %v437_v13 = vpack.c.b16 %v421_v55, %v421_v55  ;;  %v930_v22 = vpack.c.b16 %v2719_v23, %v2550_v63 }
  0x44   : > { %735 = vmatpush.bf16.msrb.mxu1 %v2167_v27  ;;  %1120 = vmatpush.bf16.msrb.mxu0 %v2199_v56  ;;  %v2729_v15 = vunpack.c.l.b16 %v386_v2  ;;  %v423_v21 = vunpack.c.h.b16 %v386_v2  ;;  %v562_v14 = vsel %vm2486_vm11, %v557_v4, %v561_v46  ;;  %v2218_v56 = vld [vmem:[%s2991_s3 + $0x1a0] sm:$0xff]  ;;  %v2211_v2 = vld [vmem:[%s2991_s3 + $0x168] sm:$0xff] }
  0x45   : > { %v480_v17 = vshrl.u32 %v436_v7, 16  ;;  %v483_v27 = vshll.u32 %v436_v7, 16  ;;  %v489_v28 = vshll.u32 %v437_v13, 16  ;;  %v2744_v33 = vunpack.c.l.b16 %v562_v14  ;;  %994 = vmatmul.bf16.vlgmr.msra.gmra.mxu3 %v930_v22  ;;  %1336 = vmatpush.bf16.msrb.mxu2 %v2218_v56 }
  0x46   : > { %v438_v34 = vpack.c.b16 %v2729_v15, %v2729_v15  ;;  %v439_v35 = vpack.c.b16 %v423_v21, %v423_v21  ;;  %v1821_v40 = vrot.slane %v436_v7, 9  ;;  %v771_v43 = vrot.slane %v437_v13, 5  ;;  %v2217_v7 = vld [vmem:[%s2991_s3 + $0x198] sm:$0xff]  ;;  %1439 = vmatpush.bf16.msrb.mxu3 %v2227_v44 }
  0x47   : > { %v482_v10 = vrot.slane %v480_v17, 4  ;;  %v485_v36 = vrot.slane %v483_v27, 5  ;;  %v491_v38 = vrot.slane %v489_v28, 5  ;;  %v2237_v13 = vld [vmem:[%s2991_s3 + $0x238] sm:$0xff]  ;;  %v674_v62 = vpack.c.b16 %v2729_v15, %v2719_v23  ;;  %v2207_v23 = vld [vmem:[%s2991_s3 + $0x148] sm:$0xff] }
  0x48   : > { %736 = vmatpush.bf16.msrb.mxu1 %v2166_v45  ;;  %1121 = vmatpush.bf16.msrb.mxu0 %v2198_v53  ;;  %v2753_v45 = vpack.c.b16 %v2744_v33, %v2727_v42  ;;  %v494_v46 = vshrl.u32 %v438_v34, 16  ;;  %v497_v48 = vshll.u32 %v438_v34, 16  ;;  %v503_v51 = vshll.u32 %v439_v35, 16 }
  0x49   : > { %v772_v53 = vsel %vm2461_vm10, %v1821_v40, %v771_v43  ;;  %v1822_v54 = vrot.slane %v438_v34, 9  ;;  %v775_v16 = vrot.slane %v439_v35, 5  ;;  %1337 = vmatpush.bf16.msrb.mxu2 %v2217_v7  ;;  %v779_v40 = vrot.slane %v2539_v58, 5  ;;  %v2226_v58 = vld [vmem:[%s2991_s3 + $0x1e0] sm:$0xff] }
  0x4a   : > { %667 = vmatmul.bf16.gmra.mxu1 %v2753_v45  ;;  %v496_v55 = vrot.slane %v494_v46, 4  ;;  %v499_v3 = vrot.slane %v497_v48, 5  ;;  %v812_v4 = vunpack.c.l.b16 %v772_v53  ;;  %v505_v17 = vrot.slane %v503_v51, 5  ;;  %v2236_v51 = vld [vmem:[%s2991_s3 + $0x230] sm:$0xff]  ;;  %1440 = vmatpush.bf16.msrb.mxu3 %v2226_v58 }
  0x4b   : > { %v2769_v22 = vsel %vm2461_vm10, %v1822_v54, %v775_v16  ;;  %v2799_v44 = vsel %vm2461_vm10, %v1823_v0, %v779_v40  ;;  %v2816_v46 = vpack.c.b16 %v2523_v49, %v2521_v47  ;;  %v673_v48 = vpack.c.b16 %v2550_v63, %v2429_v30  ;;  %v2215_v63 = vld [vmem:[%s2991_s3 + $0x188] sm:$0xff] }
  0x4c   : > { %1229 = vmatpush.bf16.msra.mxu1 %v2213_v52  ;;  %v486_v52 = vor.u32 %v485_v36, %v482_v10  ;;  %v500_v14 = vor.u32 %v499_v3, %v496_v55  ;;  %v813_v27 = vunpack.c.l.b16 %v2769_v22  ;;  %v2774_v28 = vpack.c.b16 %v812_v4, %v811_v6  ;;  %1541 = vmatpush.bf16.msra.mxu0 %v2237_v13  ;;  %v2235_v16 = vld [vmem:[%s2991_s3 + $0x228] sm:$0xff]  ;;  %v2214_v3 = vld [vmem:[%s2991_s3 + $0x180] sm:$0xff] }
  0x4d   : > { %v1824_v10 = vrot.slane %v2543_v59, 9  ;;  %v783_v36 = vrot.slane %v2545_v60, 5  ;;  %v2210_v59 = vld [vmem:[%s2991_s3 + $0x160] sm:$0xff]  ;;  %v2216_v60 = vld [vmem:[%s2991_s3 + $0x190] sm:$0xff]  ;;  %v814_v53 = vunpack.c.l.b16 %v2799_v44  ;;  %v787_v7 = vrot.slane %v2660_v26, 5 }
  0x4e   : > { %v487_v21 = vrot.slane %v486_v52, 4  ;;  %v2780_v56 = vpack.c.b16 %v813_v27, %v812_v4  ;;  %v2225_v52 = vld [vmem:[%s2991_s3 + $0x1d8] sm:$0xff]  ;;  %1338 = vmatpush.bf16.msrb.mxu2 %v2216_v60  ;;  %v2208_v26 = vld [vmem:[%s2991_s3 + $0x150] sm:$0xff]  ;;  %v1036_v40 = vshll.u32 %v2606_v9, 16 }
  0x4f   : > { %v2803_v57 = vsel %vm2461_vm10, %v1824_v10, %v783_v36  ;;  %1441 = vmatpush.bf16.msrb.mxu3 %v2225_v52  ;;  %v2222_v10 = vld [vmem:[%s2991_s3 + $0x1c0] sm:$0xff] }
  0x50   : > { %1230 = vmatpush.bf16.msra.mxu1 %v2212_v32  ;;  %v492_v31 = vsel %vm2486_vm11, %v487_v21, %v491_v38  ;;  %v501_v32 = vrot.slane %v500_v14, 4  ;;  %887 = vmatmul.bf16.gmra.mxu2 %v2780_v56  ;;  %v931_v38 = vpack.c.b16 %v2521_v47, %v2729_v15  ;;  %v815_v54 = vunpack.c.l.b16 %v2803_v57  ;;  %v2209_v47 = vld [vmem:[%s2991_s3 + $0x158] sm:$0xff]  ;;  %v2206_v52 = vld [vmem:[%s2991_s3 + $0x140] sm:$0xff] }
  0x51   : > { %v582_v34 = vunpack.c.l.b16 %v492_v31  ;;  %1542 = vmatpush.bf16.msra.mxu0 %v2236_v51  ;;  %v1826_v21 = vrot.slane %v2691_v19, 9  ;;  %v791_v14 = vrot.slane %v2693_v20, 5  ;;  %v676_v19 = vpack.c.b16 %v2684_v61, %v2646_v39  ;;  %v2223_v20 = vld [vmem:[%s2991_s3 + $0x1c8] sm:$0xff]  ;;  %v2233_v15 = vld [vmem:[%s2991_s3 + $0x218] sm:$0xff] }
  0x52   : > { %v506_v35 = vsel %vm2486_vm11, %v501_v32, %v505_v17  ;;  %v2841_v55 = vpack.c.b16 %v815_v54, %v814_v53  ;;  %1339 = vmatpush.bf16.msrb.mxu2 %v2215_v63  ;;  %v932_v17 = vpack.c.b16 %v2646_v39, %v2523_v49  ;;  %v2234_v49 = vld [vmem:[%s2991_s3 + $0x220] sm:$0xff]  ;;  %v1030_v39 = vshll.u32 %v2593_v1, 16 }
  0x53   : > { %v2786_v6 = vunpack.c.l.b16 %v506_v35  ;;  %v1058_v4 = vpack.c.b16 %v582_v34, %v2624_v25  ;;  %v2860_v25 = vsel %vm2461_vm10, %v1826_v21, %v791_v14 }
  0x54   : > { %1231 = vmatpush.bf16.msra.mxu1 %v2211_v2  ;;  %v1825_v2 = vrot.slane %v2658_v18, 9  ;;  %v2224_v18 = vld [vmem:[%s2991_s3 + $0x1d0] sm:$0xff]  ;;  %v817_v32 = vunpack.c.l.b16 %v2860_v25  ;;  %v1032_v0 = vrot.slane %v1030_v39, 5 }
  0x55   : > { %v2794_v43 = vpack.c.b16 %v2786_v6, %v582_v34  ;;  %999 = vmatmul.bf16.gmra.mxu3 %v931_v38  ;;  %1543 = vmatpush.bf16.msra.mxu0 %v2235_v16  ;;  %v1027_v34 = vshrl.u32 %v2593_v1, 16  ;;  %v1038_v38 = vrot.slane %v1036_v40, 5 }
  0x56   : > { %1340 = vmatpush.bf16.msrb.mxu2 %v2214_v3  ;;  %v2856_v31 = vsel %vm2461_vm10, %v1825_v2, %v787_v7  ;;  %1442 = vmatpush.bf16.msrb.mxu3 %v2224_v18 }
  0x57   : > { %657 = vmatmul.bf16.gmra.mxu0 %v2794_v43  ;;  %v1029_v35 = vrot.slane %v1027_v34, 4 }
  0x58   : > { %1232 = vmatpush.bf16.msra.mxu1 %v2210_v59  ;;  %v1059_v59 = vpack.c.b16 %v2598_v5, %v2786_v6  ;;  %v2231_v5 = vld [vmem:[%s2991_s3 + $0x208] sm:$0xff]  ;;  %v1174_v6 = vpack.c.b16 %v814_v53, %v813_v27 }
  0x59   : > { %1544 = vmatpush.bf16.msra.mxu0 %v2234_v49  ;;  %v1033_v36 = vor.u32 %v1032_v0, %v1029_v35 }
  0x5a   : > { %737 = vmatmul.bf16.vlgmr.msrb.gmra.mxu1 %v673_v48  ;;  %2288 = vmatpush.bf16.msra.mxu2 %v2237_v13  ;;  %v816_v13 = vunpack.c.l.b16 %v2856_v31  ;;  %v933_v48 = vpack.c.b16 %v2580_v50, %v2684_v61  ;;  %v2230_v61 = vld [vmem:[%s2991_s3 + $0x200] sm:$0xff] }
  0x5b   : > { %1443 = vmatpush.bf16.msrb.mxu3 %v2223_v20  ;;  %v1034_v58 = vrot.slane %v1033_v36, 4 }
  0x5c   : > { %1233 = vmatpush.bf16.msra.mxu1 %v2209_v47  ;;  %v821_v1 = vpack.c.b16 %v817_v32, %v816_v13 }
  0x5d   : > { %1545 = vmatpush.bf16.msra.mxu0 %v2233_v15  ;;  %v1039_v9 = vsel %vm2486_vm11, %v1034_v58, %v1038_v38 }
  0x5e   : > { %2289 = vmatpush.bf16.msra.mxu2 %v2236_v51  ;;  %v1057_v60 = vunpack.c.l.b16 %v1039_v9 }
  0x5f   : > { %1444 = vmatpush.bf16.msrb.mxu3 %v2222_v10 }
  0x60   : > { %892 = vmatmul.bf16.gmra.mxu2 %v2841_v55  ;;  %1234 = vmatpush.bf16.msra.mxu1 %v2208_v26  ;;  %v1061_v51 = vpack.c.b16 %v1057_v60, %v2744_v33  ;;  %v1060_v33 = vpack.c.b16 %v2727_v42, %v2604_v8  ;;  %v1283_v8 = vpack.c.b16 %v2429_v30, %v2580_v50 }
  0x61   : > { %1546 = vmatpush.bf16.msra.mxu0 %v2232_v29  ;;  %v1387_v42 = vpack.c.b16 %v2505_v41, %v1057_v60  ;;  %v1176_v30 = vpack.c.b16 %v1172_v12, %v817_v32 }
  0x62   : > { %2290 = vmatpush.bf16.msra.mxu2 %v2235_v16 }
  0x64   : > { %1235 = vmatpush.bf16.msra.mxu1 %v2207_v23 }
  0x65   : > { %1004 = vmatmul.bf16.gmra.mxu3 %v932_v17  ;;  %1547 = vmatpush.bf16.msra.mxu0 %v2231_v5 }
  0x66   : > { %2291 = vmatpush.bf16.msra.mxu2 %v2234_v49 }
  0x67   : > { %1122 = vmatmul.bf16.vlgmr.msrb.gmra.mxu0 %v1058_v4 }
  0x68   : > { %1236 = vmatpush.bf16.msra.mxu1 %v2206_v52 }
  0x69   : > { %1548 = vmatpush.bf16.msra.mxu0 %v2230_v61 }
  0x6a   : > { %742 = vmatmul.bf16.gmra.mxu1 %v674_v62  ;;  %2292 = vmatpush.bf16.msra.mxu2 %v2233_v15 }
  0x6e   : > { %2293 = vmatpush.bf16.msra.mxu2 %v2232_v29 }
  0x70   : > { %897 = vmatmul.bf16.gmra.mxu2 %v821_v1 }
  0x72   : > { %2294 = vmatpush.bf16.msra.mxu2 %v2231_v5 }
  0x75   : > { %1009 = vmatmul.bf16.gmra.mxu3 %v933_v48 }
  0x76   : > { %2295 = vmatpush.bf16.msra.mxu2 %v2230_v61 }
  0x77   : > { %1127 = vmatmul.bf16.gmra.mxu0 %v1059_v59 }
  0x7a   : > { %747 = vmatmul.bf16.gmra.mxu1 %v2816_v46 }
  0x80   : > { %1341 = vmatmul.bf16.vlgmr.msrb.gmra.mxu2 %v674_v62 }
  0x85   : > { %1445 = vmatmul.bf16.vlgmr.msrb.gmra.mxu3 %v2794_v43 }
  0x87   : > { %1132 = vmatmul.bf16.gmra.mxu0 %v1060_v33 }
  0x8a   : > { %752 = vmatmul.bf16.gmra.mxu1 %v676_v19 }
  0x90   : > { %1346 = vmatmul.bf16.gmra.mxu2 %v2816_v46 }
  0x95   : > { %1450 = vmatmul.bf16.gmra.mxu3 %v2622_v24  ;;  %v1175_v24 = vpack.c.b16 %v816_v13, %v815_v54 }
  0x97   : > { %1137 = vmatmul.bf16.gmra.mxu0 %v1061_v51 }
  0x9a   : > { %1237 = vmatmul.bf16.vlgmr.msra.gmra.mxu1 %v2774_v28 }
  0xa0   : > { %1351 = vmatmul.bf16.gmra.mxu2 %v676_v19 }
  0xa5   : > { %1455 = vmatmul.bf16.gmra.mxu3 %v2753_v45 }
  0xa7   : > { %1549 = vmatmul.bf16.vlgmr.msra.gmra.mxu0 %v2780_v56 }
  0xaa   : > { %1242 = vmatmul.bf16.gmra.mxu1 %v1174_v6 }
  0xb0   : > { %1356 = vmatmul.bf16.gmra.mxu2 %v1283_v8 }
  0xb2   : > { %v663_v22 = vpop.f32.mrf.mxu1 }
  0xb3   : > { %v653_v28 = vpop.f32.mrf.mxu0 }
  0xb5   : > { %1460 = vmatmul.bf16.gmra.mxu3 %v1387_v42 }
  0xb6   : > { %v883_v56 = vpop.f32.mrf.mxu2 }
  0xb7   : > { %1554 = vmatmul.bf16.gmra.mxu0 %v2841_v55 }
  0xba   : > { %1247 = vmatmul.bf16.gmra.mxu1 %v1175_v24  ;;  %v665_v27 = vpop.f32.mrf.mxu1 }
  0xbb   : > { %v655_v50 = vpop.f32.mrf.mxu0 }
  0xbe   : > { %v885_v45 = vpop.f32.mrf.mxu2 }
  0xc0   : > { %1564 = vmatmul.bf16.vlgmr.msra.gmra.mxu2 %v2669_v11 }
  0xc7   : > { %1559 = vmatmul.bf16.gmra.mxu0 %v821_v1  ;;  %v668_v41 = vpop.f32.mrf.mxu1 }
  0xc8   : > { %v995_v43 = vpop.f32.mrf.mxu3 }
  0xca   : > { %1252 = vmatmul.bf16.gmra.mxu1 %v1176_v30 }
  0xcf   : > { %v670_v44 = vpop.f32.mrf.mxu1 }
  0xd0   : > { %v997_v57 = vpop.f32.mrf.mxu3 }
  0xd3   : > { %v888_v53 = vpop.f32.mrf.mxu2 }
  0xd4   : > { %v658_v46 = vpop.f32.mrf.mxu0 }
  0xd7   : > { %v738_v54 = vpop.f32.mrf.mxu1 }
  0xd8   : > { %v739_v47 = vadd.f32 %v738_v54, %v653_v28  ;;  %v1000_v63 = vpop.f32.mrf.mxu3 }
  0xda   : > { %v903_v11 = vadd.f32 %v883_v56, %v739_v47 }
  0xdb   : > { %v890_v55 = vpop.f32.mrf.mxu2 }
  0xdc   : > { %v660_v16 = vpop.f32.mrf.mxu0  ;;  %v1015_v3 = vadd.f32 %v995_v43, %v903_v11 }
  0xdf   : > { %v740_v4 = vpop.f32.mrf.mxu1 }
  0xe0   : > { %v741_v2 = vadd.f32 %v740_v4, %v655_v50  ;;  %v1002_v37 = vpop.f32.mrf.mxu3 }
  0xe2   : > { %v904_v7 = vadd.f32 %v885_v45, %v741_v2 }
  0xe3   : > { %v893_v14 = vpop.f32.mrf.mxu2 }
  0xe4   : > { %v1123_v12 = vpop.f32.mrf.mxu0  ;;  %v1016_v30 = vadd.f32 %v997_v57, %v904_v7 }
  0xe5   : > { %v1143_v21 = vadd.f32 %v1123_v12, %v1015_v3 }
  0xe7   : > { %v743_v17 = vpop.f32.mrf.mxu1 }
  0xe8   : > { %v744_v31 = vadd.f32 %v743_v17, %v658_v46  ;;  %v1005_v25 = vpop.f32.mrf.mxu3 }
  0xea   : > { %v905_v26 = vadd.f32 %v888_v53, %v744_v31 }
  0xeb   : > { %v895_v49 = vpop.f32.mrf.mxu2 }
  0xec   : > { %v1125_v18 = vpop.f32.mrf.mxu0  ;;  %v1017_v19 = vadd.f32 %v1000_v63, %v905_v26 }
  0xed   : > { %v1144_v43 = vadd.f32 %v1125_v18, %v1016_v30 }
  0xef   : > { %v745_v62 = vpop.f32.mrf.mxu1 }
  0xf0   : > { %v746_v20 = vadd.f32 %v745_v62, %v660_v16  ;;  %v2937_v13 = vpop.f32.mrf.mxu3 }
  0xf2   : > { %v906_v34 = vadd.f32 %v890_v55, %v746_v20 }
  0xf3   : > { %v898_v23 = vpop.f32.mrf.mxu2 }
  0xf4   : > { %v1128_v32 = vpop.f32.mrf.mxu0  ;;  %v1018_v2 = vadd.f32 %v1002_v37, %v906_v34 }
  0xf5   : > { %v1145_v39 = vadd.f32 %v1128_v32, %v1017_v19 }
  0xf7   : > { %v748_v15 = vpop.f32.mrf.mxu1 }
  0xf8   : > { %v749_v35 = vadd.f32 %v748_v15, %v663_v22  ;;  %v2939_v0 = vpop.f32.mrf.mxu3 }
  0xfa   : > { %v907_v10 = vadd.f32 %v893_v14, %v749_v35 }
  0xfb   : > { %v900_v1 = vpop.f32.mrf.mxu2 }
  0xfc   : > { %v1130_v40 = vpop.f32.mrf.mxu0  ;;  %v1019_v36 = vadd.f32 %v1005_v25, %v907_v10 }
  0xfd   : > { %v1146_v25 = vadd.f32 %v1130_v40, %v1018_v2 }
  0xff   : > { %v750_v38 = vpop.f32.mrf.mxu1 }
 0x100   : > { %v751_v58 = vadd.f32 %v750_v38, %v665_v27  ;;  %v2941_v51 = vpop.f32.mrf.mxu3 }
 0x102   : > { %v908_v59 = vadd.f32 %v895_v49, %v751_v58 }
 0x103   : > { %v1342_v48 = vpop.f32.mrf.mxu2 }
 0x104   : > { %v1133_v9 = vpop.f32.mrf.mxu0  ;;  %v1020_v10 = vadd.f32 %v2937_v13, %v908_v59 }
 0x105   : > { %v1147_v60 = vadd.f32 %v1133_v9, %v1019_v36 }
 0x107   : > { %v753_v52 = vpop.f32.mrf.mxu1 }
 0x108   : > { %v754_v29 = vadd.f32 %v753_v52, %v668_v41  ;;  %v1446_v6 = vpop.f32.mrf.mxu3 }
 0x10a   : > { %v2943_v61 = vadd.f32 %v898_v23, %v754_v29 }
 0x10b   : > { %v1344_v33 = vpop.f32.mrf.mxu2 }
 0x10c   : > { %v1135_v5 = vpop.f32.mrf.mxu0 }
 0x10d   : > { %v1148_v9 = vadd.f32 %v1135_v5, %v1020_v10 }
 0x10f   : > { %v755_v8 = vpop.f32.mrf.mxu1 }
 0x110   : > { %v756_v42 = vadd.f32 %v755_v8, %v670_v44  ;;  %v1448_v56 = vpop.f32.mrf.mxu3  ;;  %v1021_v8 = vadd.f32 %v2939_v0, %v2943_v61 }
 0x112   : > { %v2947_v24 = vadd.f32 %v900_v1, %v756_v42 }
 0x113   : > { %v1347_v27 = vpop.f32.mrf.mxu2 }
 0x114   : > { %v2945_v22 = vpop.f32.mrf.mxu0 }
 0x115   : > { %v1149_v13 = vadd.f32 %v2945_v22, %v1021_v8 }
 0x117   : > { %v1238_v28 = vpop.f32.mrf.mxu1 }
 0x118   : > { %v1258_v41 = vadd.f32 %v1238_v28, %v1143_v21  ;;  %v1451_v54 = vpop.f32.mrf.mxu3 }
 0x11a   : > { %v1362_v63 = vadd.f32 %v1342_v48, %v1258_v41 }
 0x11b   : > { %v1349_v45 = vpop.f32.mrf.mxu2 }
 0x11c   : > { %v2949_v50 = vpop.f32.mrf.mxu0  ;;  %v1466_v11 = vadd.f32 %v1446_v6, %v1362_v63 }
 0x11f   : > { %v1240_v46 = vpop.f32.mrf.mxu1 }
 0x120   : > { %v1259_v53 = vadd.f32 %v1240_v46, %v1144_v43  ;;  %v1453_v21 = vpop.f32.mrf.mxu3 }
 0x122   : > { %v1363_v44 = vadd.f32 %v1344_v33, %v1259_v53 }
 0x123   : > { %v1352_v16 = vpop.f32.mrf.mxu2 }
 0x124   : > { %v1550_v47 = vpop.f32.mrf.mxu0  ;;  %v1467_v55 = vadd.f32 %v1448_v56, %v1363_v44 }
 0x125   : > { %v2951_v57 = vadd.f32 %v1550_v47, %v1466_v11 }
 0x127   : > { %v1243_v3 = vpop.f32.mrf.mxu1 }
 0x128   : > { %v1260_v4 = vadd.f32 %v1243_v3, %v1145_v39  ;;  %v1456_v34 = vpop.f32.mrf.mxu3 }
 0x12a   : > { %v1364_v14 = vadd.f32 %v1347_v27, %v1260_v4 }
 0x12b   : > { %v1354_v31 = vpop.f32.mrf.mxu2 }
 0x12c   : > { %v1552_v12 = vpop.f32.mrf.mxu0  ;;  %v1468_v18 = vadd.f32 %v1451_v54, %v1364_v14 }
 0x12d   : > { %v2953_v7 = vadd.f32 %v1552_v12, %v1467_v55 }
 0x12f   : > { %v2257_v17 = vpack.c.bf16 %v2953_v7, %v2951_v57  ;;  %v1594_v37 = vadd.f32 %v2953_v7, %v2951_v57  ;;  %v1245_v26 = vpop.f32.mrf.mxu1 }
 0x130   : > { %v1261_v49 = vadd.f32 %v1245_v26, %v1146_v25  ;;  %v1458_v48 = vpop.f32.mrf.mxu3 }
 0x131   : > { %2258 = vst [vmem:[%s2960_s27] sm:$0xff] %v2257_v17  }
 0x132   : > { %v1365_v20 = vadd.f32 %v1349_v45, %v1261_v49  ;;  %v1022_v45 = vadd.f32 %v2941_v51, %v2947_v24 }
 0x133   : > { %v1357_v39 = vpop.f32.mrf.mxu2 }
 0x134   : > { %v1555_v19 = vpop.f32.mrf.mxu0  ;;  %v1469_v23 = vadd.f32 %v1453_v21, %v1365_v20  ;;  %v1150_v47 = vadd.f32 %v2949_v50, %v1022_v45 }
 0x135   : > { %v1572_v62 = vadd.f32 %v1555_v19, %v1468_v18 }
 0x137   : > { %v1595_v32 = vadd.f32 %v1594_v37, %v1572_v62  ;;  %v1248_v15 = vpop.f32.mrf.mxu1 }
 0x138   : > { %v1262_v35 = vadd.f32 %v1248_v15, %v1147_v60  ;;  %v1461_v5 = vpop.f32.mrf.mxu3 }
 0x13a   : > { %v1366_v38 = vadd.f32 %v1352_v16, %v1262_v35 }
 0x13b   : > { %v1359_v6 = vpop.f32.mrf.mxu2 }
 0x13c   : > { %v1557_v1 = vpop.f32.mrf.mxu0  ;;  %v1470_v52 = vadd.f32 %v1456_v34, %v1366_v38 }
 0x13d   : > { %v1573_v36 = vadd.f32 %v1557_v1, %v1469_v23 }
 0x13f   : > { %v2262_v40 = vpack.c.bf16 %v1573_v36, %v1572_v62  ;;  %v1596_v58 = vadd.f32 %v1595_v32, %v1573_v36  ;;  %v1250_v29 = vpop.f32.mrf.mxu1 }
 0x140   : > { %v1263_v33 = vadd.f32 %v1250_v29, %v1148_v9  ;;  %v1463_v55 = vpop.f32.mrf.mxu3 }
 0x141   : > { %2277 = vst [vmem:[%s2960_s27 + $0x8] sm:$0xff] %v2262_v40  }
 0x142   : > { %v1367_v60 = vadd.f32 %v1354_v31, %v1263_v33 }
 0x143   : > { %v1565_v53 = vpop.f32.mrf.mxu2 }
 0x144   : > { %v1560_v42 = vpop.f32.mrf.mxu0  ;;  %v1471_v59 = vadd.f32 %v1458_v48, %v1367_v60 }
 0x145   : > { %v1574_v27 = vadd.f32 %v1560_v42, %v1470_v52 }
 0x147   : > { %v1597_v28 = vadd.f32 %v1596_v58, %v1574_v27  ;;  %v1253_v56 = vpop.f32.mrf.mxu1 }
 0x148   : > { %v1264_v30 = vadd.f32 %v1253_v56, %v1149_v13 }
 0x14a   : > { %v1368_v41 = vadd.f32 %v1357_v39, %v1264_v30 }
 0x14b   : > { %v1567_v4 = vpop.f32.mrf.mxu2 }
 0x14c   : > { %v1562_v43 = vpop.f32.mrf.mxu0  ;;  %v1472_v54 = vadd.f32 %v1461_v5, %v1368_v41 }
 0x14d   : > { %v1575_v46 = vadd.f32 %v1562_v43, %v1471_v59 }
 0x14e   : > { %v1576_v63 = vadd.f32 %v1565_v53, %v1472_v54 }
 0x14f   : > { %v2267_v0 = vpack.c.bf16 %v1575_v46, %v1574_v27  ;;  %v1598_v61 = vadd.f32 %v1597_v28, %v1575_v46  ;;  %v1255_v22 = vpop.f32.mrf.mxu1 }
 0x150   : > { %v1265_v16 = vadd.f32 %v1255_v22, %v1150_v47 }
 0x151   : > { %2278 = vst [vmem:[%s2960_s27 + $0x10] sm:$0xff] %v2267_v0   ;;  %v1599_v44 = vadd.f32 %v1598_v61, %v1576_v63 }
 0x152   : > { %v1369_v11 = vadd.f32 %v1359_v6, %v1265_v16 }
 0x154   : > { %v1473_v3 = vadd.f32 %v1463_v55, %v1369_v11 }
 0x156   : > { %v1577_v51 = vadd.f32 %v1567_v4, %v1473_v3 }
 0x158   : > { %v2272_v24 = vpack.c.bf16 %v1577_v51, %v1576_v63  ;;  %v1600_v2 = vadd.f32 %v1599_v44, %v1577_v51 }
 0x15a   : > { %2279 = vst [vmem:[%s2960_s27 + $0x18] sm:$0xff] %v2272_v24   ;;  %v1601_v12 = vrot.slane %v1600_v2, 4 }
 0x15c   : > { %v1602_v14 = vadd.f32 %v1601_v12, %v1600_v2 }
 0x15e   : > { %v1603_v21 = vrot.slane %v1602_v14, 2 }
 0x160   : > { %v1604_v17 = vadd.f32 %v1603_v21, %v1602_v14 }
 0x162   : > { %v1605_v37 = vrot.slane %v1604_v17, 1 }
 0x164   : > { %v1606_v31 = vadd.f32 %v1605_v37, %v1604_v17 }
 0x166   : > { %v1607_v50 = vmul.f32 0.015625, %v1606_v31 }
 0x168   : > { %v1608_v25 = vsub.f32 %v2951_v57, %v1607_v50  ;;  %v1609_v18 = vsub.f32 %v2953_v7, %v1607_v50  ;;  %v1610_v26 = vsub.f32 %v1572_v62, %v1607_v50  ;;  %v1611_v49 = vsub.f32 %v1573_v36, %v1607_v50 }
 0x169   : > { %v1612_v19 = vsub.f32 %v1574_v27, %v1607_v50  ;;  %v1613_v20 = vsub.f32 %v1575_v46, %v1607_v50  ;;  %v1614_v32 = vsub.f32 %v1576_v63, %v1607_v50  ;;  %v1615_v34 = vsub.f32 %v1577_v51, %v1607_v50 }
 0x16a   : > { %v1616_v39 = vmul.f32 %v1608_v25, %v1608_v25  ;;  %v1617_v23 = vmul.f32 %v1609_v18, %v1609_v18  ;;  %v1618_v15 = vmul.f32 %v1610_v26, %v1610_v26  ;;  %v1619_v10 = vmul.f32 %v1611_v49, %v1611_v49 }
 0x16b   : > { %v1620_v38 = vmul.f32 %v1612_v19, %v1612_v19  ;;  %v1621_v58 = vmul.f32 %v1613_v20, %v1613_v20  ;;  %v1622_v9 = vmul.f32 %v1614_v32, %v1614_v32  ;;  %v1623_v62 = vmul.f32 %v1615_v34, %v1615_v34 }
 0x16c   : > { %v1624_v35 = vadd.f32 %v1617_v23, %v1616_v39 }
 0x16e   : > { %v1625_v1 = vadd.f32 %v1624_v35, %v1618_v15 }
 0x170   : > { %v1626_v40 = vadd.f32 %v1625_v1, %v1619_v10 }
 0x172   : > { %v1627_v57 = vadd.f32 %v1626_v40, %v1620_v38 }
 0x174   : > { %v1628_v7 = vadd.f32 %v1627_v57, %v1621_v58 }
 0x176   : > { %v1629_v36 = vadd.f32 %v1628_v7, %v1622_v9 }
 0x178   : > { %v1630_v48 = vadd.f32 %v1629_v36, %v1623_v62 }
 0x17a   : > { %v1631_v52 = vrot.slane %v1630_v48, 4 }
 0x17c   : > { %v1632_v29 = vadd.f32 %v1631_v52, %v1630_v48 }
 0x17e   : > { %v1633_v33 = vrot.slane %v1632_v29, 2 }
 0x180   : > { %v1634_v6 = vadd.f32 %v1633_v33, %v1632_v29 }
 0x182   : > { %v1635_v8 = vrot.slane %v1634_v6, 1 }
 0x184   : > { %v1636_v42 = vadd.f32 %v1635_v8, %v1634_v6 }
 0x186   : > { %v1638_v27 = vsel %vm368_vm0, %v1607_v50, %v1636_v42 }
 0x187   : > { %v1640_v60 = vsel %vm1639_vm12, %v1638_v27, 0.0 }
 0x188   : > { %1641 = vst [vmem:[%s238_s29] sm:$0xff] %v1640_v60 }
 0x189 PF: > { %s16_s18 = sadd.s32 1, %s2313_s18  }
 0x18a   : > { %p13_p5 = scmp.ge.s32.totalorder %s16_s18, 4  }
 0x18c   :  { %15 = sbr.rel (!%p13_p5) target bundleno = 1 (0x1), region = 86 }

</bundles_post_ra>
